<compile_context>
chip_gen: v6e
topology: v6e:2x2x1
jax: 0.10.0
libtpu: 0.0.40
codegen_flags: <defaults>
</compile_context>

<pallas_src>
import numpy as np
import jax
import jax.numpy as jnp
from jax.experimental import pallas as pl
from jax.experimental.pallas import tpu as pltpu

KERNEL_SIZES = (3, 3, 3, 2)  # layer1..layer4
BN_EPS = 1e-5


# ----------------------------------------------------------------------------
# Static per-layer shape schedule
# ----------------------------------------------------------------------------
def build_schedule(H, W, kernel_sizes):
    sched = []
    hin, win = H, W
    for li, K in enumerate(kernel_sizes):
        hp, wp = hin + 2, win + 2                    # padding = 1 on both sides
        ho, wo = hp - K + 1, wp - K + 1              # conv output (stride 1)
        hpool, wpool = ho // 2, wo // 2              # maxpool(2,2), floor mode
        last = li == len(kernel_sizes) - 1
        htgt = hpool if last else hpool + 2          # next layer's padded H
        wtgt = wpool if last else wpool + 2          # next layer's padded W
        sched.append(dict(K=K, Hp=hp, Wp=wp, Ho=ho, Wo=wo,
                          Hpool=hpool, Wpool=wpool, Htgt=htgt, Wtgt=wtgt))
        hin, win = hpool, wpool
    return sched


# ----------------------------------------------------------------------------
# Precomputed (trace-time, numpy) operands so the kernel is pure matmuls +
# element-wise ops on a lane-dense (H, W*C) layout.
# ----------------------------------------------------------------------------
def build_layer_operands(w, b, meta, C):
    K, Wp, Ho, Wo = meta["K"], meta["Wp"], meta["Ho"], meta["Wo"]
    Hpool, Wpool, Htgt, Wtgt = meta["Hpool"], meta["Wpool"], meta["Htgt"], meta["Wtgt"]

    # Block-Toeplitz conv weights: the whole W-axis convolution plus the channel
    # contraction becomes one matmul per kh:
    #   T[kh, wp*C + ci, wo*C + co] = w[kh, wp - wo, ci, co]  (0 <= wp - wo < K)
    T = np.zeros((K, Wp * C, Wo * C), np.float32)
    for kh in range(K):
        for kw in range(K):
            for wo in range(Wo):
                wp = wo + kw
                T[kh, wp * C:(wp + 1) * C, wo * C:(wo + 1) * C] = w[kh, kw]

    b_tiled = np.tile(b.reshape(1, C), (1, Wo)).astype(np.float32)     # (1, Wo*C)

    # Channel-sum / channel-broadcast selections for BatchNorm statistics.
    G = np.tile(np.eye(C, dtype=np.float32), (Wo, 1))                   # (Wo*C, C)
    GT = np.ascontiguousarray(G.T)                                      # (C, Wo*C)

    # MaxPool(2,2) over H, fused with the next layer's zero H-padding:
    #   max(SH[0] @ y, SH[1] @ y) picks max(y[2i], y[2i+1]) into row (pad + i);
    #   untouched border rows stay exactly 0.
    hoff = 1 if Htgt == Hpool + 2 else 0
    SH = np.zeros((2, Htgt, Ho), np.float32)
    for i in range(Hpool):
        SH[0, hoff + i, 2 * i] = 1.0
        SH[1, hoff + i, 2 * i + 1] = 1.0

    # MaxPool(2,2) over W (per channel within the lane layout w*C + c), fused
    # with the next layer's zero W-padding.
    woff = 1 if Wtgt == Wpool + 2 else 0
    SW = np.zeros((2, Wo * C, Wtgt * C), np.float32)
    for j in range(Wpool):
        for c in range(C):
            SW[0, (2 * j) * C + c, (woff + j) * C + c] = 1.0
            SW[1, (2 * j + 1) * C + c, (woff + j) * C + c] = 1.0

    return [T, b_tiled, G, GT, SH, SW]


# ----------------------------------------------------------------------------
# Fused kernel: all 4 conv blocks in a single invocation.
# ----------------------------------------------------------------------------
def make_encoder_kernel(sched, N, C):
    n_layers = len(sched)

    def kernel(*refs):
        x_ref = refs[0]                                          # (N, Hp1, Wp1*C)
        layer_refs = [refs[1 + 6 * li: 1 + 6 * (li + 1)] for li in range(n_layers)]
        o_ref = refs[1 + 6 * n_layers]                           # (N, C)
        scratch = list(refs[2 + 6 * n_layers:])                  # padded acts, layers 2..4

        src = x_ref
        for li, m in enumerate(sched):
            K, Ho, Wo = m["K"], m["Ho"], m["Wo"]
            last = li == n_layers - 1
            T_ref, b_ref, G_ref, GT_ref, SH_ref, SW_ref = layer_refs[li]

            # ---- Conv2d(k, pad=1) as K block-Toeplitz MXU matmuls/image, + bias + ReLU
            zs = []
            for n in range(N):
                acc = jnp.dot(src[n, 0:Ho, :], T_ref[0],
                              preferred_element_type=jnp.float32)
                for kh in range(1, K):
                    acc = acc + jnp.dot(src[n, kh:kh + Ho, :], T_ref[kh],
                                        preferred_element_type=jnp.float32)
                zs.append(jnp.maximum(acc + b_ref[...], 0.0))    # (Ho, Wo*C)

            # ---- BatchNorm2d, train-mode batch stats, one pass (sum & sum-of-squares)
            s1 = zs[0].sum(axis=0, keepdims=True)
            s2 = (zs[0] * zs[0]).sum(axis=0, keepdims=True)
            for n in range(1, N):
                s1 = s1 + zs[n].sum(axis=0, keepdims=True)
                s2 = s2 + (zs[n] * zs[n]).sum(axis=0, keepdims=True)
            inv_cnt = 1.0 / float(N * Ho * Wo)
            mean = jnp.dot(s1, G_ref[...], preferred_element_type=jnp.float32) * inv_cnt
            ex2 = jnp.dot(s2, G_ref[...], preferred_element_type=jnp.float32) * inv_cnt
            var = jnp.maximum(ex2 - mean * mean, 0.0)
            inv = jax.lax.rsqrt(var + BN_EPS)                                  # (1, C)
            mean_b = jnp.dot(mean, GT_ref[...], preferred_element_type=jnp.float32)
            inv_b = jnp.dot(inv, GT_ref[...], preferred_element_type=jnp.float32)

            # TODO(synk): Dropout2d(p=keep_rate) treated as identity (eval semantics);
            # literal train-mode p=keep_rate=1.0 would zero every activation.

            # ---- normalize + MaxPool2d(2,2) + zero re-pad for the next conv layer
            for n in range(N):
                y = (zs[n] - mean_b) * inv_b                                   # (Ho, Wo*C)
                ph = jnp.maximum(
                    jnp.dot(SH_ref[0], y, preferred_element_type=jnp.float32),
                    jnp.dot(SH_ref[1], y, preferred_element_type=jnp.float32))
                pw = jnp.maximum(
                    jnp.dot(ph, SW_ref[0], preferred_element_type=jnp.float32),
                    jnp.dot(ph, SW_ref[1], preferred_element_type=jnp.float32))
                if last:
                    # final spatial is 1x1, so the row is exactly the C channels
                    o_ref[n:n + 1, :] = pw
                else:
                    scratch[li][n] = pw          # next layer's zero-padded input
            if not last:
                src = scratch[li]

    return kernel


# ----------------------------------------------------------------------------
# Public forward: one XLA layout transform at the boundary, then ONE pallas_call.
# ----------------------------------------------------------------------------
def make_encoder_forward(params, N, C, H, W):
    sched = build_schedule(H, W, KERNEL_SIZES)
    # PyTorch's x.view(N, -1) equals the per-channel vector only when the final
    # spatial size is 1x1 (true for the sizes this module is used with).
    assert sched[-1]["Htgt"] == 1 and sched[-1]["Wtgt"] == 1

    ops = []
    for (w, b), m in zip(params, sched):
        ops += build_layer_operands(np.asarray(w), np.asarray(b), m, C)
    ops = [jnp.asarray(o) for o in ops]

    kernel = make_encoder_kernel(sched, N, C)
    scratch_shapes = [pltpu.VMEM((N, m["Hp"], m["Wp"] * C), jnp.float32)
                      for m in sched[1:]]
    fused = pl.pallas_call(
        kernel,
        out_shape=jax.ShapeDtypeStruct((N, C), jnp.float32),
        scratch_shapes=scratch_shapes,
    )

    Hp1, Wp1 = sched[0]["Hp"], sched[0]["Wp"]

    @jax.jit
    def fwd(x_nchw, operands):
        # NCHW -> zero-padded, lane-dense (N, Hp, Wp*C); lane index = w*C + c.
        xh = jnp.transpose(x_nchw.astype(jnp.float32), (0, 2, 3, 1))
        xh = jnp.pad(xh, ((0, 0), (1, 1), (1, 1), (0, 0)))
        xh = xh.reshape(N, Hp1, Wp1 * C)
        return fused(xh, *operands)

    return lambda x: fwd(x, ops)


# ----------------------------------------------------------------------------
# Parameter init (xavier_uniform gain=sqrt(2), zero bias, as in weights_init)
# ----------------------------------------------------------------------------
def init_encoder_params(key, layer_size, num_channel):
    params = []
    for k in KERNEL_SIZES:
        key, wk = jax.random.split(key)
        fan_in = num_channel * k * k
        fan_out = layer_size * k * k
        bound = float(np.sqrt(2.0) * np.sqrt(6.0 / (fan_in + fan_out)))
        # PyTorch layout is (Cout, Cin, KH, KW); we store the equivalent
        # (KH, KW, Cin, Cout) (weights are randomly initialized anyway).
        w = jax.random.uniform(wk, (k, k, num_channel, layer_size),
                               jnp.float32, minval=-bound, maxval=bound)
        b = jnp.zeros((layer_size,), jnp.float32)
        params.append((w, b))
    return params


# ----------------------------------------------------------------------------
# Pure-JAX reference (for correctness checking only)
# ----------------------------------------------------------------------------
def encoder_reference(x_nchw, params):
    x = jnp.transpose(x_nchw.astype(jnp.float32), (0, 2, 3, 1))   # NHWC
    for (w, b), _k in zip(params, KERNEL_SIZES):
        y = jax.lax.conv_general_dilated(
            x, w, window_strides=(1, 1), padding=((1, 1), (1, 1)),
            dimension_numbers=("NHWC", "HWIO", "NHWC"),
            precision=jax.lax.Precision.HIGHEST)
        y = y + b.reshape(1, 1, 1, -1)
        y = jnp.maximum(y, 0.0)
        mean = jnp.mean(y, axis=(0, 1, 2), keepdims=True)
        var = jnp.mean(jnp.square(y - mean), axis=(0, 1, 2), keepdims=True)
        y = (y - mean) * jax.lax.rsqrt(var + BN_EPS)
        y = jax.lax.reduce_window(y, -jnp.inf, jax.lax.max,
                                  (1, 2, 2, 1), (1, 2, 2, 1), "VALID")
        x = y
    x = jnp.transpose(x, (0, 3, 1, 2))                            # NCHW
    return x.reshape(x.shape[0], -1)


if __name__ == "__main__":
    layer_size = num_channel = 8   # must be equal for the reference forward to chain
    H = W = 16
    batch = 2

    key = jax.random.PRNGKey(0)
    pkey, xkey = jax.random.split(key)
    params = init_encoder_params(pkey, layer_size, num_channel)
    x = jax.random.normal(xkey, (batch, num_channel, H, W), jnp.float32)  # NCHW

    encoder_forward = make_encoder_forward(params, batch, num_channel, H, W)
    out = encoder_forward(x)
    jax.block_until_ready(out)

    # 16 -> 8 -> 4 -> 2 -> 1 spatially; flatten gives (batch, layer_size)
    assert out.shape == (batch, layer_size), out.shape
    assert bool(jnp.all(jnp.isfinite(out)))

    ref = encoder_reference(x, params)
    np.testing.assert_allclose(np.asarray(out), np.asarray(ref), rtol=5e-2, atol=5e-2)

    print("KERNEL_OK")
</pallas_src>

<mosaic_0001>
module attributes {stable_mosaic.version = 11 : i64} {
  func.func @kernel(%arg0: memref<2x18x144xf32, #tpu.memory_space<vmem>>, %arg1: memref<3x144x128xf32, #tpu.memory_space<vmem>>, %arg2: memref<1x128xf32, #tpu.memory_space<vmem>>, %arg3: memref<128x8xf32, #tpu.memory_space<vmem>>, %arg4: memref<8x128xf32, #tpu.memory_space<vmem>>, %arg5: memref<2x10x16xf32, #tpu.memory_space<vmem>>, %arg6: memref<2x128x80xf32, #tpu.memory_space<vmem>>, %arg7: memref<3x80x64xf32, #tpu.memory_space<vmem>>, %arg8: memref<1x64xf32, #tpu.memory_space<vmem>>, %arg9: memref<64x8xf32, #tpu.memory_space<vmem>>, %arg10: memref<8x64xf32, #tpu.memory_space<vmem>>, %arg11: memref<2x6x8xf32, #tpu.memory_space<vmem>>, %arg12: memref<2x64x48xf32, #tpu.memory_space<vmem>>, %arg13: memref<3x48x32xf32, #tpu.memory_space<vmem>>, %arg14: memref<1x32xf32, #tpu.memory_space<vmem>>, %arg15: memref<32x8xf32, #tpu.memory_space<vmem>>, %arg16: memref<8x32xf32, #tpu.memory_space<vmem>>, %arg17: memref<2x4x4xf32, #tpu.memory_space<vmem>>, %arg18: memref<2x32x32xf32, #tpu.memory_space<vmem>>, %arg19: memref<2x32x24xf32, #tpu.memory_space<vmem>>, %arg20: memref<1x24xf32, #tpu.memory_space<vmem>>, %arg21: memref<24x8xf32, #tpu.memory_space<vmem>>, %arg22: memref<8x24xf32, #tpu.memory_space<vmem>>, %arg23: memref<2x1x3xf32, #tpu.memory_space<vmem>>, %arg24: memref<2x24x8xf32, #tpu.memory_space<vmem>>, %arg25: memref<2x8xf32, #tpu.memory_space<vmem>>, %arg26: memref<2x10x80xf32, #tpu.memory_space<vmem>>, %arg27: memref<2x6x48xf32, #tpu.memory_space<vmem>>, %arg28: memref<2x4x32xf32, #tpu.memory_space<vmem>>) attributes {dimension_semantics = [], scalar_prefetch = 0 : i64, scratch_operands = 3 : i64, tpu.core_type = #tpu.core_type<tc>} {
    %c0 = arith.constant 0 : index
    %c0_0 = arith.constant 0 : index
    %c0_1 = arith.constant 0 : index
    %0 = vector.load %arg0[%c0, %c0_0, %c0_1] : memref<2x18x144xf32, #tpu.memory_space<vmem>>, vector<1x16x144xf32>
    %1 = vector.shape_cast %0 : vector<1x16x144xf32> to vector<16x144xf32>
    %c0_2 = arith.constant 0 : index
    %c0_3 = arith.constant 0 : index
    %c0_4 = arith.constant 0 : index
    %2 = vector.load %arg1[%c0_2, %c0_3, %c0_4] : memref<3x144x128xf32, #tpu.memory_space<vmem>>, vector<1x144x128xf32>
    %3 = vector.shape_cast %2 : vector<1x144x128xf32> to vector<144x128xf32>
    %cst = arith.constant dense<0.000000e+00> : vector<16x128xf32>
    %4 = tpu.matmul %1, %3, %cst {dimension_numbers = #tpu.dot_dimension_numbers<[1], [0], [0], [1], [0, 0, 1, 1], [], []>} : vector<16x144xf32>, vector<144x128xf32>, vector<16x128xf32> -> vector<16x128xf32>
    %c0_5 = arith.constant 0 : index
    %c1 = arith.constant 1 : index
    %c0_6 = arith.constant 0 : index
    %5 = vector.load %arg0[%c0_5, %c1, %c0_6] : memref<2x18x144xf32, #tpu.memory_space<vmem>>, vector<1x16x144xf32>
    %6 = vector.shape_cast %5 : vector<1x16x144xf32> to vector<16x144xf32>
    %c1_7 = arith.constant 1 : index
    %c0_8 = arith.constant 0 : index
    %c0_9 = arith.constant 0 : index
    %7 = vector.load %arg1[%c1_7, %c0_8, %c0_9] : memref<3x144x128xf32, #tpu.memory_space<vmem>>, vector<1x144x128xf32>
    %8 = vector.shape_cast %7 : vector<1x144x128xf32> to vector<144x128xf32>
    %cst_10 = arith.constant dense<0.000000e+00> : vector<16x128xf32>
    %9 = tpu.matmul %6, %8, %cst_10 {dimension_numbers = #tpu.dot_dimension_numbers<[1], [0], [0], [1], [0, 0, 1, 1], [], []>} : vector<16x144xf32>, vector<144x128xf32>, vector<16x128xf32> -> vector<16x128xf32>
    %10 = arith.addf %4, %9 : vector<16x128xf32>
    %c0_11 = arith.constant 0 : index
    %c2 = arith.constant 2 : index
    %c0_12 = arith.constant 0 : index
    %11 = vector.load %arg0[%c0_11, %c2, %c0_12] : memref<2x18x144xf32, #tpu.memory_space<vmem>>, vector<1x16x144xf32>
    %12 = vector.shape_cast %11 : vector<1x16x144xf32> to vector<16x144xf32>
    %c2_13 = arith.constant 2 : index
    %c0_14 = arith.constant 0 : index
    %c0_15 = arith.constant 0 : index
    %13 = vector.load %arg1[%c2_13, %c0_14, %c0_15] : memref<3x144x128xf32, #tpu.memory_space<vmem>>, vector<1x144x128xf32>
    %14 = vector.shape_cast %13 : vector<1x144x128xf32> to vector<144x128xf32>
    %cst_16 = arith.constant dense<0.000000e+00> : vector<16x128xf32>
    %15 = tpu.matmul %12, %14, %cst_16 {dimension_numbers = #tpu.dot_dimension_numbers<[1], [0], [0], [1], [0, 0, 1, 1], [], []>} : vector<16x144xf32>, vector<144x128xf32>, vector<16x128xf32> -> vector<16x128xf32>
    %16 = arith.addf %10, %15 : vector<16x128xf32>
    %c0_17 = arith.constant 0 : index
    %c0_18 = arith.constant 0 : index
    %17 = vector.load %arg2[%c0_17, %c0_18] : memref<1x128xf32, #tpu.memory_space<vmem>>, vector<1x128xf32>
    %18 = vector.broadcast %17 : vector<1x128xf32> to vector<16x128xf32>
    %19 = arith.addf %16, %18 : vector<16x128xf32>
    %cst_19 = arith.constant 0.000000e+00 : f32
    %20 = vector.broadcast %cst_19 : f32 to vector<16x128xf32>
    %21 = arith.maximumf %19, %20 : vector<16x128xf32>
    %c1_20 = arith.constant 1 : index
    %c0_21 = arith.constant 0 : index
    %c0_22 = arith.constant 0 : index
    %22 = vector.load %arg0[%c1_20, %c0_21, %c0_22] : memref<2x18x144xf32, #tpu.memory_space<vmem>>, vector<1x16x144xf32>
    %23 = vector.shape_cast %22 : vector<1x16x144xf32> to vector<16x144xf32>
    %c0_23 = arith.constant 0 : index
    %c0_24 = arith.constant 0 : index
    %c0_25 = arith.constant 0 : index
    %24 = vector.load %arg1[%c0_23, %c0_24, %c0_25] : memref<3x144x128xf32, #tpu.memory_space<vmem>>, vector<1x144x128xf32>
    %25 = vector.shape_cast %24 : vector<1x144x128xf32> to vector<144x128xf32>
    %cst_26 = arith.constant dense<0.000000e+00> : vector<16x128xf32>
    %26 = tpu.matmul %23, %25, %cst_26 {dimension_numbers = #tpu.dot_dimension_numbers<[1], [0], [0], [1], [0, 0, 1, 1], [], []>} : vector<16x144xf32>, vector<144x128xf32>, vector<16x128xf32> -> vector<16x128xf32>
    %c1_27 = arith.constant 1 : index
    %c1_28 = arith.constant 1 : index
    %c0_29 = arith.constant 0 : index
    %27 = vector.load %arg0[%c1_27, %c1_28, %c0_29] : memref<2x18x144xf32, #tpu.memory_space<vmem>>, vector<1x16x144xf32>
    %28 = vector.shape_cast %27 : vector<1x16x144xf32> to vector<16x144xf32>
    %c1_30 = arith.constant 1 : index
    %c0_31 = arith.constant 0 : index
    %c0_32 = arith.constant 0 : index
    %29 = vector.load %arg1[%c1_30, %c0_31, %c0_32] : memref<3x144x128xf32, #tpu.memory_space<vmem>>, vector<1x144x128xf32>
    %30 = vector.shape_cast %29 : vector<1x144x128xf32> to vector<144x128xf32>
    %cst_33 = arith.constant dense<0.000000e+00> : vector<16x128xf32>
    %31 = tpu.matmul %28, %30, %cst_33 {dimension_numbers = #tpu.dot_dimension_numbers<[1], [0], [0], [1], [0, 0, 1, 1], [], []>} : vector<16x144xf32>, vector<144x128xf32>, vector<16x128xf32> -> vector<16x128xf32>
    %32 = arith.addf %26, %31 : vector<16x128xf32>
    %c1_34 = arith.constant 1 : index
    %c2_35 = arith.constant 2 : index
    %c0_36 = arith.constant 0 : index
    %33 = vector.load %arg0[%c1_34, %c2_35, %c0_36] : memref<2x18x144xf32, #tpu.memory_space<vmem>>, vector<1x16x144xf32>
    %34 = vector.shape_cast %33 : vector<1x16x144xf32> to vector<16x144xf32>
    %c2_37 = arith.constant 2 : index
    %c0_38 = arith.constant 0 : index
    %c0_39 = arith.constant 0 : index
    %35 = vector.load %arg1[%c2_37, %c0_38, %c0_39] : memref<3x144x128xf32, #tpu.memory_space<vmem>>, vector<1x144x128xf32>
    %36 = vector.shape_cast %35 : vector<1x144x128xf32> to vector<144x128xf32>
    %cst_40 = arith.constant dense<0.000000e+00> : vector<16x128xf32>
    %37 = tpu.matmul %34, %36, %cst_40 {dimension_numbers = #tpu.dot_dimension_numbers<[1], [0], [0], [1], [0, 0, 1, 1], [], []>} : vector<16x144xf32>, vector<144x128xf32>, vector<16x128xf32> -> vector<16x128xf32>
    %38 = arith.addf %32, %37 : vector<16x128xf32>
    %c0_41 = arith.constant 0 : index
    %c0_42 = arith.constant 0 : index
    %39 = vector.load %arg2[%c0_41, %c0_42] : memref<1x128xf32, #tpu.memory_space<vmem>>, vector<1x128xf32>
    %40 = vector.broadcast %39 : vector<1x128xf32> to vector<16x128xf32>
    %41 = arith.addf %38, %40 : vector<16x128xf32>
    %cst_43 = arith.constant 0.000000e+00 : f32
    %42 = vector.broadcast %cst_43 : f32 to vector<16x128xf32>
    %43 = arith.maximumf %41, %42 : vector<16x128xf32>
    %cst_44 = arith.constant dense<0.000000e+00> : vector<128xf32>
    %44 = vector.multi_reduction <add>, %21, %cst_44 [0] : vector<16x128xf32> to vector<128xf32>
    %45 = vector.shape_cast %44 : vector<128xf32> to vector<1x128xf32>
    %46 = arith.mulf %21, %21 : vector<16x128xf32>
    %cst_45 = arith.constant dense<0.000000e+00> : vector<128xf32>
    %47 = vector.multi_reduction <add>, %46, %cst_45 [0] : vector<16x128xf32> to vector<128xf32>
    %48 = vector.shape_cast %47 : vector<128xf32> to vector<1x128xf32>
    %cst_46 = arith.constant dense<0.000000e+00> : vector<128xf32>
    %49 = vector.multi_reduction <add>, %43, %cst_46 [0] : vector<16x128xf32> to vector<128xf32>
    %50 = vector.shape_cast %49 : vector<128xf32> to vector<1x128xf32>
    %51 = arith.addf %45, %50 : vector<1x128xf32>
    %52 = arith.mulf %43, %43 : vector<16x128xf32>
    %cst_47 = arith.constant dense<0.000000e+00> : vector<128xf32>
    %53 = vector.multi_reduction <add>, %52, %cst_47 [0] : vector<16x128xf32> to vector<128xf32>
    %54 = vector.shape_cast %53 : vector<128xf32> to vector<1x128xf32>
    %55 = arith.addf %48, %54 : vector<1x128xf32>
    %c0_48 = arith.constant 0 : index
    %c0_49 = arith.constant 0 : index
    %56 = vector.load %arg3[%c0_48, %c0_49] : memref<128x8xf32, #tpu.memory_space<vmem>>, vector<128x8xf32>
    %cst_50 = arith.constant dense<0.000000e+00> : vector<1x8xf32>
    %57 = tpu.matmul %51, %56, %cst_50 {dimension_numbers = #tpu.dot_dimension_numbers<[1], [0], [0], [1], [0, 0, 1, 1], [], []>} : vector<1x128xf32>, vector<128x8xf32>, vector<1x8xf32> -> vector<1x8xf32>
    %cst_51 = arith.constant 0.001953125 : f32
    %58 = vector.broadcast %cst_51 : f32 to vector<1x8xf32>
    %59 = arith.mulf %57, %58 : vector<1x8xf32>
    %c0_52 = arith.constant 0 : index
    %c0_53 = arith.constant 0 : index
    %60 = vector.load %arg3[%c0_52, %c0_53] : memref<128x8xf32, #tpu.memory_space<vmem>>, vector<128x8xf32>
    %cst_54 = arith.constant dense<0.000000e+00> : vector<1x8xf32>
    %61 = tpu.matmul %55, %60, %cst_54 {dimension_numbers = #tpu.dot_dimension_numbers<[1], [0], [0], [1], [0, 0, 1, 1], [], []>} : vector<1x128xf32>, vector<128x8xf32>, vector<1x8xf32> -> vector<1x8xf32>
    %cst_55 = arith.constant 0.001953125 : f32
    %62 = vector.broadcast %cst_55 : f32 to vector<1x8xf32>
    %63 = arith.mulf %61, %62 : vector<1x8xf32>
    %64 = arith.mulf %59, %59 : vector<1x8xf32>
    %65 = arith.subf %63, %64 : vector<1x8xf32>
    %cst_56 = arith.constant 0.000000e+00 : f32
    %66 = vector.broadcast %cst_56 : f32 to vector<1x8xf32>
    %67 = arith.maximumf %65, %66 : vector<1x8xf32>
    %cst_57 = arith.constant 9.99999974E-6 : f32
    %68 = vector.broadcast %cst_57 : f32 to vector<1x8xf32>
    %69 = arith.addf %67, %68 : vector<1x8xf32>
    %70 = math.rsqrt %69 : vector<1x8xf32>
    %c0_58 = arith.constant 0 : index
    %c0_59 = arith.constant 0 : index
    %71 = vector.load %arg4[%c0_58, %c0_59] : memref<8x128xf32, #tpu.memory_space<vmem>>, vector<8x128xf32>
    %cst_60 = arith.constant dense<0.000000e+00> : vector<1x128xf32>
    %72 = tpu.matmul %59, %71, %cst_60 {dimension_numbers = #tpu.dot_dimension_numbers<[1], [0], [0], [1], [0, 0, 1, 1], [], []>} : vector<1x8xf32>, vector<8x128xf32>, vector<1x128xf32> -> vector<1x128xf32>
    %c0_61 = arith.constant 0 : index
    %c0_62 = arith.constant 0 : index
    %73 = vector.load %arg4[%c0_61, %c0_62] : memref<8x128xf32, #tpu.memory_space<vmem>>, vector<8x128xf32>
    %cst_63 = arith.constant dense<0.000000e+00> : vector<1x128xf32>
    %74 = tpu.matmul %70, %73, %cst_63 {dimension_numbers = #tpu.dot_dimension_numbers<[1], [0], [0], [1], [0, 0, 1, 1], [], []>} : vector<1x8xf32>, vector<8x128xf32>, vector<1x128xf32> -> vector<1x128xf32>
    %75 = vector.broadcast %72 : vector<1x128xf32> to vector<16x128xf32>
    %76 = arith.subf %21, %75 : vector<16x128xf32>
    %77 = vector.broadcast %74 : vector<1x128xf32> to vector<16x128xf32>
    %78 = arith.mulf %76, %77 : vector<16x128xf32>
    %c0_64 = arith.constant 0 : index
    %c0_65 = arith.constant 0 : index
    %c0_66 = arith.constant 0 : index
    %79 = vector.load %arg5[%c0_64, %c0_65, %c0_66] : memref<2x10x16xf32, #tpu.memory_space<vmem>>, vector<1x10x16xf32>
    %80 = vector.shape_cast %79 : vector<1x10x16xf32> to vector<10x16xf32>
    %cst_67 = arith.constant dense<0.000000e+00> : vector<10x128xf32>
    %81 = tpu.matmul %80, %78, %cst_67 {dimension_numbers = #tpu.dot_dimension_numbers<[1], [0], [0], [1], [0, 0, 1, 1], [], []>} : vector<10x16xf32>, vector<16x128xf32>, vector<10x128xf32> -> vector<10x128xf32>
    %c1_68 = arith.constant 1 : index
    %c0_69 = arith.constant 0 : index
    %c0_70 = arith.constant 0 : index
    %82 = vector.load %arg5[%c1_68, %c0_69, %c0_70] : memref<2x10x16xf32, #tpu.memory_space<vmem>>, vector<1x10x16xf32>
    %83 = vector.shape_cast %82 : vector<1x10x16xf32> to vector<10x16xf32>
    %cst_71 = arith.constant dense<0.000000e+00> : vector<10x128xf32>
    %84 = tpu.matmul %83, %78, %cst_71 {dimension_numbers = #tpu.dot_dimension_numbers<[1], [0], [0], [1], [0, 0, 1, 1], [], []>} : vector<10x16xf32>, vector<16x128xf32>, vector<10x128xf32> -> vector<10x128xf32>
    %85 = arith.maximumf %81, %84 : vector<10x128xf32>
    %c0_72 = arith.constant 0 : index
    %c0_73 = arith.constant 0 : index
    %c0_74 = arith.constant 0 : index
    %86 = vector.load %arg6[%c0_72, %c0_73, %c0_74] : memref<2x128x80xf32, #tpu.memory_space<vmem>>, vector<1x128x80xf32>
    %87 = vector.shape_cast %86 : vector<1x128x80xf32> to vector<128x80xf32>
    %cst_75 = arith.constant dense<0.000000e+00> : vector<10x80xf32>
    %88 = tpu.matmul %85, %87, %cst_75 {dimension_numbers = #tpu.dot_dimension_numbers<[1], [0], [0], [1], [0, 0, 1, 1], [], []>} : vector<10x128xf32>, vector<128x80xf32>, vector<10x80xf32> -> vector<10x80xf32>
    %c1_76 = arith.constant 1 : index
    %c0_77 = arith.constant 0 : index
    %c0_78 = arith.constant 0 : index
    %89 = vector.load %arg6[%c1_76, %c0_77, %c0_78] : memref<2x128x80xf32, #tpu.memory_space<vmem>>, vector<1x128x80xf32>
    %90 = vector.shape_cast %89 : vector<1x128x80xf32> to vector<128x80xf32>
    %cst_79 = arith.constant dense<0.000000e+00> : vector<10x80xf32>
    %91 = tpu.matmul %85, %90, %cst_79 {dimension_numbers = #tpu.dot_dimension_numbers<[1], [0], [0], [1], [0, 0, 1, 1], [], []>} : vector<10x128xf32>, vector<128x80xf32>, vector<10x80xf32> -> vector<10x80xf32>
    %92 = arith.maximumf %88, %91 : vector<10x80xf32>
    %c0_80 = arith.constant 0 : index
    %c0_81 = arith.constant 0 : index
    %c0_82 = arith.constant 0 : index
    %93 = vector.load %arg26[%c0_80, %c0_81, %c0_82] : memref<2x10x80xf32, #tpu.memory_space<vmem>>, vector<1x10x80xf32>
    %94 = vector.shape_cast %93 : vector<1x10x80xf32> to vector<10x80xf32>
    %95 = vector.shape_cast %92 : vector<10x80xf32> to vector<1x10x80xf32>
    tpu.vector_store %arg26[%c0_80, %c0_81, %c0_82], %95 {strides = array<i32>} : memref<2x10x80xf32, #tpu.memory_space<vmem>>, vector<1x10x80xf32>,
    %96 = vector.broadcast %72 : vector<1x128xf32> to vector<16x128xf32>
    %97 = arith.subf %43, %96 : vector<16x128xf32>
    %98 = vector.broadcast %74 : vector<1x128xf32> to vector<16x128xf32>
    %99 = arith.mulf %97, %98 : vector<16x128xf32>
    %c0_83 = arith.constant 0 : index
    %c0_84 = arith.constant 0 : index
    %c0_85 = arith.constant 0 : index
    %100 = vector.load %arg5[%c0_83, %c0_84, %c0_85] : memref<2x10x16xf32, #tpu.memory_space<vmem>>, vector<1x10x16xf32>
    %101 = vector.shape_cast %100 : vector<1x10x16xf32> to vector<10x16xf32>
    %cst_86 = arith.constant dense<0.000000e+00> : vector<10x128xf32>
    %102 = tpu.matmul %101, %99, %cst_86 {dimension_numbers = #tpu.dot_dimension_numbers<[1], [0], [0], [1], [0, 0, 1, 1], [], []>} : vector<10x16xf32>, vector<16x128xf32>, vector<10x128xf32> -> vector<10x128xf32>
    %c1_87 = arith.constant 1 : index
    %c0_88 = arith.constant 0 : index
    %c0_89 = arith.constant 0 : index
    %103 = vector.load %arg5[%c1_87, %c0_88, %c0_89] : memref<2x10x16xf32, #tpu.memory_space<vmem>>, vector<1x10x16xf32>
    %104 = vector.shape_cast %103 : vector<1x10x16xf32> to vector<10x16xf32>
    %cst_90 = arith.constant dense<0.000000e+00> : vector<10x128xf32>
    %105 = tpu.matmul %104, %99, %cst_90 {dimension_numbers = #tpu.dot_dimension_numbers<[1], [0], [0], [1], [0, 0, 1, 1], [], []>} : vector<10x16xf32>, vector<16x128xf32>, vector<10x128xf32> -> vector<10x128xf32>
    %106 = arith.maximumf %102, %105 : vector<10x128xf32>
    %c0_91 = arith.constant 0 : index
    %c0_92 = arith.constant 0 : index
    %c0_93 = arith.constant 0 : index
    %107 = vector.load %arg6[%c0_91, %c0_92, %c0_93] : memref<2x128x80xf32, #tpu.memory_space<vmem>>, vector<1x128x80xf32>
    %108 = vector.shape_cast %107 : vector<1x128x80xf32> to vector<128x80xf32>
    %cst_94 = arith.constant dense<0.000000e+00> : vector<10x80xf32>
    %109 = tpu.matmul %106, %108, %cst_94 {dimension_numbers = #tpu.dot_dimension_numbers<[1], [0], [0], [1], [0, 0, 1, 1], [], []>} : vector<10x128xf32>, vector<128x80xf32>, vector<10x80xf32> -> vector<10x80xf32>
    %c1_95 = arith.constant 1 : index
    %c0_96 = arith.constant 0 : index
    %c0_97 = arith.constant 0 : index
    %110 = vector.load %arg6[%c1_95, %c0_96, %c0_97] : memref<2x128x80xf32, #tpu.memory_space<vmem>>, vector<1x128x80xf32>
    %111 = vector.shape_cast %110 : vector<1x128x80xf32> to vector<128x80xf32>
    %cst_98 = arith.constant dense<0.000000e+00> : vector<10x80xf32>
    %112 = tpu.matmul %106, %111, %cst_98 {dimension_numbers = #tpu.dot_dimension_numbers<[1], [0], [0], [1], [0, 0, 1, 1], [], []>} : vector<10x128xf32>, vector<128x80xf32>, vector<10x80xf32> -> vector<10x80xf32>
    %113 = arith.maximumf %109, %112 : vector<10x80xf32>
    %c1_99 = arith.constant 1 : index
    %c0_100 = arith.constant 0 : index
    %c0_101 = arith.constant 0 : index
    %114 = vector.load %arg26[%c1_99, %c0_100, %c0_101] : memref<2x10x80xf32, #tpu.memory_space<vmem>>, vector<1x10x80xf32>
    %115 = vector.shape_cast %114 : vector<1x10x80xf32> to vector<10x80xf32>
    %116 = vector.shape_cast %113 : vector<10x80xf32> to vector<1x10x80xf32>
    tpu.vector_store %arg26[%c1_99, %c0_100, %c0_101], %116 {strides = array<i32>} : memref<2x10x80xf32, #tpu.memory_space<vmem>>, vector<1x10x80xf32>,
    %c0_102 = arith.constant 0 : index
    %c0_103 = arith.constant 0 : index
    %c0_104 = arith.constant 0 : index
    %117 = vector.load %arg26[%c0_102, %c0_103, %c0_104] : memref<2x10x80xf32, #tpu.memory_space<vmem>>, vector<1x8x80xf32>
    %118 = vector.shape_cast %117 : vector<1x8x80xf32> to vector<8x80xf32>
    %c0_105 = arith.constant 0 : index
    %c0_106 = arith.constant 0 : index
    %c0_107 = arith.constant 0 : index
    %119 = vector.load %arg7[%c0_105, %c0_106, %c0_107] : memref<3x80x64xf32, #tpu.memory_space<vmem>>, vector<1x80x64xf32>
    %120 = vector.shape_cast %119 : vector<1x80x64xf32> to vector<80x64xf32>
    %cst_108 = arith.constant dense<0.000000e+00> : vector<8x64xf32>
    %121 = tpu.matmul %118, %120, %cst_108 {dimension_numbers = #tpu.dot_dimension_numbers<[1], [0], [0], [1], [0, 0, 1, 1], [], []>} : vector<8x80xf32>, vector<80x64xf32>, vector<8x64xf32> -> vector<8x64xf32>
    %c0_109 = arith.constant 0 : index
    %c1_110 = arith.constant 1 : index
    %c0_111 = arith.constant 0 : index
    %122 = vector.load %arg26[%c0_109, %c1_110, %c0_111] : memref<2x10x80xf32, #tpu.memory_space<vmem>>, vector<1x8x80xf32>
    %123 = vector.shape_cast %122 : vector<1x8x80xf32> to vector<8x80xf32>
    %c1_112 = arith.constant 1 : index
    %c0_113 = arith.constant 0 : index
    %c0_114 = arith.constant 0 : index
    %124 = vector.load %arg7[%c1_112, %c0_113, %c0_114] : memref<3x80x64xf32, #tpu.memory_space<vmem>>, vector<1x80x64xf32>
    %125 = vector.shape_cast %124 : vector<1x80x64xf32> to vector<80x64xf32>
    %cst_115 = arith.constant dense<0.000000e+00> : vector<8x64xf32>
    %126 = tpu.matmul %123, %125, %cst_115 {dimension_numbers = #tpu.dot_dimension_numbers<[1], [0], [0], [1], [0, 0, 1, 1], [], []>} : vector<8x80xf32>, vector<80x64xf32>, vector<8x64xf32> -> vector<8x64xf32>
    %127 = arith.addf %121, %126 : vector<8x64xf32>
    %c0_116 = arith.constant 0 : index
    %c2_117 = arith.constant 2 : index
    %c0_118 = arith.constant 0 : index
    %128 = vector.load %arg26[%c0_116, %c2_117, %c0_118] : memref<2x10x80xf32, #tpu.memory_space<vmem>>, vector<1x8x80xf32>
    %129 = vector.shape_cast %128 : vector<1x8x80xf32> to vector<8x80xf32>
    %c2_119 = arith.constant 2 : index
    %c0_120 = arith.constant 0 : index
    %c0_121 = arith.constant 0 : index
    %130 = vector.load %arg7[%c2_119, %c0_120, %c0_121] : memref<3x80x64xf32, #tpu.memory_space<vmem>>, vector<1x80x64xf32>
    %131 = vector.shape_cast %130 : vector<1x80x64xf32> to vector<80x64xf32>
    %cst_122 = arith.constant dense<0.000000e+00> : vector<8x64xf32>
    %132 = tpu.matmul %129, %131, %cst_122 {dimension_numbers = #tpu.dot_dimension_numbers<[1], [0], [0], [1], [0, 0, 1, 1], [], []>} : vector<8x80xf32>, vector<80x64xf32>, vector<8x64xf32> -> vector<8x64xf32>
    %133 = arith.addf %127, %132 : vector<8x64xf32>
    %c0_123 = arith.constant 0 : index
    %c0_124 = arith.constant 0 : index
    %134 = vector.load %arg8[%c0_123, %c0_124] : memref<1x64xf32, #tpu.memory_space<vmem>>, vector<1x64xf32>
    %135 = vector.broadcast %134 : vector<1x64xf32> to vector<8x64xf32>
    %136 = arith.addf %133, %135 : vector<8x64xf32>
    %cst_125 = arith.constant 0.000000e+00 : f32
    %137 = vector.broadcast %cst_125 : f32 to vector<8x64xf32>
    %138 = arith.maximumf %136, %137 : vector<8x64xf32>
    %c1_126 = arith.constant 1 : index
    %c0_127 = arith.constant 0 : index
    %c0_128 = arith.constant 0 : index
    %139 = vector.load %arg26[%c1_126, %c0_127, %c0_128] : memref<2x10x80xf32, #tpu.memory_space<vmem>>, vector<1x8x80xf32>
    %140 = vector.shape_cast %139 : vector<1x8x80xf32> to vector<8x80xf32>
    %c0_129 = arith.constant 0 : index
    %c0_130 = arith.constant 0 : index
    %c0_131 = arith.constant 0 : index
    %141 = vector.load %arg7[%c0_129, %c0_130, %c0_131] : memref<3x80x64xf32, #tpu.memory_space<vmem>>, vector<1x80x64xf32>
    %142 = vector.shape_cast %141 : vector<1x80x64xf32> to vector<80x64xf32>
    %cst_132 = arith.constant dense<0.000000e+00> : vector<8x64xf32>
    %143 = tpu.matmul %140, %142, %cst_132 {dimension_numbers = #tpu.dot_dimension_numbers<[1], [0], [0], [1], [0, 0, 1, 1], [], []>} : vector<8x80xf32>, vector<80x64xf32>, vector<8x64xf32> -> vector<8x64xf32>
    %c1_133 = arith.constant 1 : index
    %c1_134 = arith.constant 1 : index
    %c0_135 = arith.constant 0 : index
    %144 = vector.load %arg26[%c1_133, %c1_134, %c0_135] : memref<2x10x80xf32, #tpu.memory_space<vmem>>, vector<1x8x80xf32>
    %145 = vector.shape_cast %144 : vector<1x8x80xf32> to vector<8x80xf32>
    %c1_136 = arith.constant 1 : index
    %c0_137 = arith.constant 0 : index
    %c0_138 = arith.constant 0 : index
    %146 = vector.load %arg7[%c1_136, %c0_137, %c0_138] : memref<3x80x64xf32, #tpu.memory_space<vmem>>, vector<1x80x64xf32>
    %147 = vector.shape_cast %146 : vector<1x80x64xf32> to vector<80x64xf32>
    %cst_139 = arith.constant dense<0.000000e+00> : vector<8x64xf32>
    %148 = tpu.matmul %145, %147, %cst_139 {dimension_numbers = #tpu.dot_dimension_numbers<[1], [0], [0], [1], [0, 0, 1, 1], [], []>} : vector<8x80xf32>, vector<80x64xf32>, vector<8x64xf32> -> vector<8x64xf32>
    %149 = arith.addf %143, %148 : vector<8x64xf32>
    %c1_140 = arith.constant 1 : index
    %c2_141 = arith.constant 2 : index
    %c0_142 = arith.constant 0 : index
    %150 = vector.load %arg26[%c1_140, %c2_141, %c0_142] : memref<2x10x80xf32, #tpu.memory_space<vmem>>, vector<1x8x80xf32>
    %151 = vector.shape_cast %150 : vector<1x8x80xf32> to vector<8x80xf32>
    %c2_143 = arith.constant 2 : index
    %c0_144 = arith.constant 0 : index
    %c0_145 = arith.constant 0 : index
    %152 = vector.load %arg7[%c2_143, %c0_144, %c0_145] : memref<3x80x64xf32, #tpu.memory_space<vmem>>, vector<1x80x64xf32>
    %153 = vector.shape_cast %152 : vector<1x80x64xf32> to vector<80x64xf32>
    %cst_146 = arith.constant dense<0.000000e+00> : vector<8x64xf32>
    %154 = tpu.matmul %151, %153, %cst_146 {dimension_numbers = #tpu.dot_dimension_numbers<[1], [0], [0], [1], [0, 0, 1, 1], [], []>} : vector<8x80xf32>, vector<80x64xf32>, vector<8x64xf32> -> vector<8x64xf32>
    %155 = arith.addf %149, %154 : vector<8x64xf32>
    %c0_147 = arith.constant 0 : index
    %c0_148 = arith.constant 0 : index
    %156 = vector.load %arg8[%c0_147, %c0_148] : memref<1x64xf32, #tpu.memory_space<vmem>>, vector<1x64xf32>
    %157 = vector.broadcast %156 : vector<1x64xf32> to vector<8x64xf32>
    %158 = arith.addf %155, %157 : vector<8x64xf32>
    %cst_149 = arith.constant 0.000000e+00 : f32
    %159 = vector.broadcast %cst_149 : f32 to vector<8x64xf32>
    %160 = arith.maximumf %158, %159 : vector<8x64xf32>
    %cst_150 = arith.constant dense<0.000000e+00> : vector<64xf32>
    %161 = vector.multi_reduction <add>, %138, %cst_150 [0] : vector<8x64xf32> to vector<64xf32>
    %162 = vector.shape_cast %161 : vector<64xf32> to vector<1x64xf32>
    %163 = arith.mulf %138, %138 : vector<8x64xf32>
    %cst_151 = arith.constant dense<0.000000e+00> : vector<64xf32>
    %164 = vector.multi_reduction <add>, %163, %cst_151 [0] : vector<8x64xf32> to vector<64xf32>
    %165 = vector.shape_cast %164 : vector<64xf32> to vector<1x64xf32>
    %cst_152 = arith.constant dense<0.000000e+00> : vector<64xf32>
    %166 = vector.multi_reduction <add>, %160, %cst_152 [0] : vector<8x64xf32> to vector<64xf32>
    %167 = vector.shape_cast %166 : vector<64xf32> to vector<1x64xf32>
    %168 = arith.addf %162, %167 : vector<1x64xf32>
    %169 = arith.mulf %160, %160 : vector<8x64xf32>
    %cst_153 = arith.constant dense<0.000000e+00> : vector<64xf32>
    %170 = vector.multi_reduction <add>, %169, %cst_153 [0] : vector<8x64xf32> to vector<64xf32>
    %171 = vector.shape_cast %170 : vector<64xf32> to vector<1x64xf32>
    %172 = arith.addf %165, %171 : vector<1x64xf32>
    %c0_154 = arith.constant 0 : index
    %c0_155 = arith.constant 0 : index
    %173 = vector.load %arg9[%c0_154, %c0_155] : memref<64x8xf32, #tpu.memory_space<vmem>>, vector<64x8xf32>
    %cst_156 = arith.constant dense<0.000000e+00> : vector<1x8xf32>
    %174 = tpu.matmul %168, %173, %cst_156 {dimension_numbers = #tpu.dot_dimension_numbers<[1], [0], [0], [1], [0, 0, 1, 1], [], []>} : vector<1x64xf32>, vector<64x8xf32>, vector<1x8xf32> -> vector<1x8xf32>
    %cst_157 = arith.constant 7.812500e-03 : f32
    %175 = vector.broadcast %cst_157 : f32 to vector<1x8xf32>
    %176 = arith.mulf %174, %175 : vector<1x8xf32>
    %c0_158 = arith.constant 0 : index
    %c0_159 = arith.constant 0 : index
    %177 = vector.load %arg9[%c0_158, %c0_159] : memref<64x8xf32, #tpu.memory_space<vmem>>, vector<64x8xf32>
    %cst_160 = arith.constant dense<0.000000e+00> : vector<1x8xf32>
    %178 = tpu.matmul %172, %177, %cst_160 {dimension_numbers = #tpu.dot_dimension_numbers<[1], [0], [0], [1], [0, 0, 1, 1], [], []>} : vector<1x64xf32>, vector<64x8xf32>, vector<1x8xf32> -> vector<1x8xf32>
    %cst_161 = arith.constant 7.812500e-03 : f32
    %179 = vector.broadcast %cst_161 : f32 to vector<1x8xf32>
    %180 = arith.mulf %178, %179 : vector<1x8xf32>
    %181 = arith.mulf %176, %176 : vector<1x8xf32>
    %182 = arith.subf %180, %181 : vector<1x8xf32>
    %cst_162 = arith.constant 0.000000e+00 : f32
    %183 = vector.broadcast %cst_162 : f32 to vector<1x8xf32>
    %184 = arith.maximumf %182, %183 : vector<1x8xf32>
    %cst_163 = arith.constant 9.99999974E-6 : f32
    %185 = vector.broadcast %cst_163 : f32 to vector<1x8xf32>
    %186 = arith.addf %184, %185 : vector<1x8xf32>
    %187 = math.rsqrt %186 : vector<1x8xf32>
    %c0_164 = arith.constant 0 : index
    %c0_165 = arith.constant 0 : index
    %188 = vector.load %arg10[%c0_164, %c0_165] : memref<8x64xf32, #tpu.memory_space<vmem>>, vector<8x64xf32>
    %cst_166 = arith.constant dense<0.000000e+00> : vector<1x64xf32>
    %189 = tpu.matmul %176, %188, %cst_166 {dimension_numbers = #tpu.dot_dimension_numbers<[1], [0], [0], [1], [0, 0, 1, 1], [], []>} : vector<1x8xf32>, vector<8x64xf32>, vector<1x64xf32> -> vector<1x64xf32>
    %c0_167 = arith.constant 0 : index
    %c0_168 = arith.constant 0 : index
    %190 = vector.load %arg10[%c0_167, %c0_168] : memref<8x64xf32, #tpu.memory_space<vmem>>, vector<8x64xf32>
    %cst_169 = arith.constant dense<0.000000e+00> : vector<1x64xf32>
    %191 = tpu.matmul %187, %190, %cst_169 {dimension_numbers = #tpu.dot_dimension_numbers<[1], [0], [0], [1], [0, 0, 1, 1], [], []>} : vector<1x8xf32>, vector<8x64xf32>, vector<1x64xf32> -> vector<1x64xf32>
    %192 = vector.broadcast %189 : vector<1x64xf32> to vector<8x64xf32>
    %193 = arith.subf %138, %192 : vector<8x64xf32>
    %194 = vector.broadcast %191 : vector<1x64xf32> to vector<8x64xf32>
    %195 = arith.mulf %193, %194 : vector<8x64xf32>
    %c0_170 = arith.constant 0 : index
    %c0_171 = arith.constant 0 : index
    %c0_172 = arith.constant 0 : index
    %196 = vector.load %arg11[%c0_170, %c0_171, %c0_172] : memref<2x6x8xf32, #tpu.memory_space<vmem>>, vector<1x6x8xf32>
    %197 = vector.shape_cast %196 : vector<1x6x8xf32> to vector<6x8xf32>
    %cst_173 = arith.constant dense<0.000000e+00> : vector<6x64xf32>
    %198 = tpu.matmul %197, %195, %cst_173 {dimension_numbers = #tpu.dot_dimension_numbers<[1], [0], [0], [1], [0, 0, 1, 1], [], []>} : vector<6x8xf32>, vector<8x64xf32>, vector<6x64xf32> -> vector<6x64xf32>
    %c1_174 = arith.constant 1 : index
    %c0_175 = arith.constant 0 : index
    %c0_176 = arith.constant 0 : index
    %199 = vector.load %arg11[%c1_174, %c0_175, %c0_176] : memref<2x6x8xf32, #tpu.memory_space<vmem>>, vector<1x6x8xf32>
    %200 = vector.shape_cast %199 : vector<1x6x8xf32> to vector<6x8xf32>
    %cst_177 = arith.constant dense<0.000000e+00> : vector<6x64xf32>
    %201 = tpu.matmul %200, %195, %cst_177 {dimension_numbers = #tpu.dot_dimension_numbers<[1], [0], [0], [1], [0, 0, 1, 1], [], []>} : vector<6x8xf32>, vector<8x64xf32>, vector<6x64xf32> -> vector<6x64xf32>
    %202 = arith.maximumf %198, %201 : vector<6x64xf32>
    %c0_178 = arith.constant 0 : index
    %c0_179 = arith.constant 0 : index
    %c0_180 = arith.constant 0 : index
    %203 = vector.load %arg12[%c0_178, %c0_179, %c0_180] : memref<2x64x48xf32, #tpu.memory_space<vmem>>, vector<1x64x48xf32>
    %204 = vector.shape_cast %203 : vector<1x64x48xf32> to vector<64x48xf32>
    %cst_181 = arith.constant dense<0.000000e+00> : vector<6x48xf32>
    %205 = tpu.matmul %202, %204, %cst_181 {dimension_numbers = #tpu.dot_dimension_numbers<[1], [0], [0], [1], [0, 0, 1, 1], [], []>} : vector<6x64xf32>, vector<64x48xf32>, vector<6x48xf32> -> vector<6x48xf32>
    %c1_182 = arith.constant 1 : index
    %c0_183 = arith.constant 0 : index
    %c0_184 = arith.constant 0 : index
    %206 = vector.load %arg12[%c1_182, %c0_183, %c0_184] : memref<2x64x48xf32, #tpu.memory_space<vmem>>, vector<1x64x48xf32>
    %207 = vector.shape_cast %206 : vector<1x64x48xf32> to vector<64x48xf32>
    %cst_185 = arith.constant dense<0.000000e+00> : vector<6x48xf32>
    %208 = tpu.matmul %202, %207, %cst_185 {dimension_numbers = #tpu.dot_dimension_numbers<[1], [0], [0], [1], [0, 0, 1, 1], [], []>} : vector<6x64xf32>, vector<64x48xf32>, vector<6x48xf32> -> vector<6x48xf32>
    %209 = arith.maximumf %205, %208 : vector<6x48xf32>
    %c0_186 = arith.constant 0 : index
    %c0_187 = arith.constant 0 : index
    %c0_188 = arith.constant 0 : index
    %210 = vector.load %arg27[%c0_186, %c0_187, %c0_188] : memref<2x6x48xf32, #tpu.memory_space<vmem>>, vector<1x6x48xf32>
    %211 = vector.shape_cast %210 : vector<1x6x48xf32> to vector<6x48xf32>
    %212 = vector.shape_cast %209 : vector<6x48xf32> to vector<1x6x48xf32>
    tpu.vector_store %arg27[%c0_186, %c0_187, %c0_188], %212 {strides = array<i32>} : memref<2x6x48xf32, #tpu.memory_space<vmem>>, vector<1x6x48xf32>,
    %213 = vector.broadcast %189 : vector<1x64xf32> to vector<8x64xf32>
    %214 = arith.subf %160, %213 : vector<8x64xf32>
    %215 = vector.broadcast %191 : vector<1x64xf32> to vector<8x64xf32>
    %216 = arith.mulf %214, %215 : vector<8x64xf32>
    %c0_189 = arith.constant 0 : index
    %c0_190 = arith.constant 0 : index
    %c0_191 = arith.constant 0 : index
    %217 = vector.load %arg11[%c0_189, %c0_190, %c0_191] : memref<2x6x8xf32, #tpu.memory_space<vmem>>, vector<1x6x8xf32>
    %218 = vector.shape_cast %217 : vector<1x6x8xf32> to vector<6x8xf32>
    %cst_192 = arith.constant dense<0.000000e+00> : vector<6x64xf32>
    %219 = tpu.matmul %218, %216, %cst_192 {dimension_numbers = #tpu.dot_dimension_numbers<[1], [0], [0], [1], [0, 0, 1, 1], [], []>} : vector<6x8xf32>, vector<8x64xf32>, vector<6x64xf32> -> vector<6x64xf32>
    %c1_193 = arith.constant 1 : index
    %c0_194 = arith.constant 0 : index
    %c0_195 = arith.constant 0 : index
    %220 = vector.load %arg11[%c1_193, %c0_194, %c0_195] : memref<2x6x8xf32, #tpu.memory_space<vmem>>, vector<1x6x8xf32>
    %221 = vector.shape_cast %220 : vector<1x6x8xf32> to vector<6x8xf32>
    %cst_196 = arith.constant dense<0.000000e+00> : vector<6x64xf32>
    %222 = tpu.matmul %221, %216, %cst_196 {dimension_numbers = #tpu.dot_dimension_numbers<[1], [0], [0], [1], [0, 0, 1, 1], [], []>} : vector<6x8xf32>, vector<8x64xf32>, vector<6x64xf32> -> vector<6x64xf32>
    %223 = arith.maximumf %219, %222 : vector<6x64xf32>
    %c0_197 = arith.constant 0 : index
    %c0_198 = arith.constant 0 : index
    %c0_199 = arith.constant 0 : index
    %224 = vector.load %arg12[%c0_197, %c0_198, %c0_199] : memref<2x64x48xf32, #tpu.memory_space<vmem>>, vector<1x64x48xf32>
    %225 = vector.shape_cast %224 : vector<1x64x48xf32> to vector<64x48xf32>
    %cst_200 = arith.constant dense<0.000000e+00> : vector<6x48xf32>
    %226 = tpu.matmul %223, %225, %cst_200 {dimension_numbers = #tpu.dot_dimension_numbers<[1], [0], [0], [1], [0, 0, 1, 1], [], []>} : vector<6x64xf32>, vector<64x48xf32>, vector<6x48xf32> -> vector<6x48xf32>
    %c1_201 = arith.constant 1 : index
    %c0_202 = arith.constant 0 : index
    %c0_203 = arith.constant 0 : index
    %227 = vector.load %arg12[%c1_201, %c0_202, %c0_203] : memref<2x64x48xf32, #tpu.memory_space<vmem>>, vector<1x64x48xf32>
    %228 = vector.shape_cast %227 : vector<1x64x48xf32> to vector<64x48xf32>
    %cst_204 = arith.constant dense<0.000000e+00> : vector<6x48xf32>
    %229 = tpu.matmul %223, %228, %cst_204 {dimension_numbers = #tpu.dot_dimension_numbers<[1], [0], [0], [1], [0, 0, 1, 1], [], []>} : vector<6x64xf32>, vector<64x48xf32>, vector<6x48xf32> -> vector<6x48xf32>
    %230 = arith.maximumf %226, %229 : vector<6x48xf32>
    %c1_205 = arith.constant 1 : index
    %c0_206 = arith.constant 0 : index
    %c0_207 = arith.constant 0 : index
    %231 = vector.load %arg27[%c1_205, %c0_206, %c0_207] : memref<2x6x48xf32, #tpu.memory_space<vmem>>, vector<1x6x48xf32>
    %232 = vector.shape_cast %231 : vector<1x6x48xf32> to vector<6x48xf32>
    %233 = vector.shape_cast %230 : vector<6x48xf32> to vector<1x6x48xf32>
    tpu.vector_store %arg27[%c1_205, %c0_206, %c0_207], %233 {strides = array<i32>} : memref<2x6x48xf32, #tpu.memory_space<vmem>>, vector<1x6x48xf32>,
    %c0_208 = arith.constant 0 : index
    %c0_209 = arith.constant 0 : index
    %c0_210 = arith.constant 0 : index
    %234 = vector.load %arg27[%c0_208, %c0_209, %c0_210] : memref<2x6x48xf32, #tpu.memory_space<vmem>>, vector<1x4x48xf32>
    %235 = vector.shape_cast %234 : vector<1x4x48xf32> to vector<4x48xf32>
    %c0_211 = arith.constant 0 : index
    %c0_212 = arith.constant 0 : index
    %c0_213 = arith.constant 0 : index
    %236 = vector.load %arg13[%c0_211, %c0_212, %c0_213] : memref<3x48x32xf32, #tpu.memory_space<vmem>>, vector<1x48x32xf32>
    %237 = vector.shape_cast %236 : vector<1x48x32xf32> to vector<48x32xf32>
    %cst_214 = arith.constant dense<0.000000e+00> : vector<4x32xf32>
    %238 = tpu.matmul %235, %237, %cst_214 {dimension_numbers = #tpu.dot_dimension_numbers<[1], [0], [0], [1], [0, 0, 1, 1], [], []>} : vector<4x48xf32>, vector<48x32xf32>, vector<4x32xf32> -> vector<4x32xf32>
    %c0_215 = arith.constant 0 : index
    %c1_216 = arith.constant 1 : index
    %c0_217 = arith.constant 0 : index
    %239 = vector.load %arg27[%c0_215, %c1_216, %c0_217] : memref<2x6x48xf32, #tpu.memory_space<vmem>>, vector<1x4x48xf32>
    %240 = vector.shape_cast %239 : vector<1x4x48xf32> to vector<4x48xf32>
    %c1_218 = arith.constant 1 : index
    %c0_219 = arith.constant 0 : index
    %c0_220 = arith.constant 0 : index
    %241 = vector.load %arg13[%c1_218, %c0_219, %c0_220] : memref<3x48x32xf32, #tpu.memory_space<vmem>>, vector<1x48x32xf32>
    %242 = vector.shape_cast %241 : vector<1x48x32xf32> to vector<48x32xf32>
    %cst_221 = arith.constant dense<0.000000e+00> : vector<4x32xf32>
    %243 = tpu.matmul %240, %242, %cst_221 {dimension_numbers = #tpu.dot_dimension_numbers<[1], [0], [0], [1], [0, 0, 1, 1], [], []>} : vector<4x48xf32>, vector<48x32xf32>, vector<4x32xf32> -> vector<4x32xf32>
    %244 = arith.addf %238, %243 : vector<4x32xf32>
    %c0_222 = arith.constant 0 : index
    %c2_223 = arith.constant 2 : index
    %c0_224 = arith.constant 0 : index
    %245 = vector.load %arg27[%c0_222, %c2_223, %c0_224] : memref<2x6x48xf32, #tpu.memory_space<vmem>>, vector<1x4x48xf32>
    %246 = vector.shape_cast %245 : vector<1x4x48xf32> to vector<4x48xf32>
    %c2_225 = arith.constant 2 : index
    %c0_226 = arith.constant 0 : index
    %c0_227 = arith.constant 0 : index
    %247 = vector.load %arg13[%c2_225, %c0_226, %c0_227] : memref<3x48x32xf32, #tpu.memory_space<vmem>>, vector<1x48x32xf32>
    %248 = vector.shape_cast %247 : vector<1x48x32xf32> to vector<48x32xf32>
    %cst_228 = arith.constant dense<0.000000e+00> : vector<4x32xf32>
    %249 = tpu.matmul %246, %248, %cst_228 {dimension_numbers = #tpu.dot_dimension_numbers<[1], [0], [0], [1], [0, 0, 1, 1], [], []>} : vector<4x48xf32>, vector<48x32xf32>, vector<4x32xf32> -> vector<4x32xf32>
    %250 = arith.addf %244, %249 : vector<4x32xf32>
    %c0_229 = arith.constant 0 : index
    %c0_230 = arith.constant 0 : index
    %251 = vector.load %arg14[%c0_229, %c0_230] : memref<1x32xf32, #tpu.memory_space<vmem>>, vector<1x32xf32>
    %252 = vector.broadcast %251 : vector<1x32xf32> to vector<4x32xf32>
    %253 = arith.addf %250, %252 : vector<4x32xf32>
    %cst_231 = arith.constant 0.000000e+00 : f32
    %254 = vector.broadcast %cst_231 : f32 to vector<4x32xf32>
    %255 = arith.maximumf %253, %254 : vector<4x32xf32>
    %c1_232 = arith.constant 1 : index
    %c0_233 = arith.constant 0 : index
    %c0_234 = arith.constant 0 : index
    %256 = vector.load %arg27[%c1_232, %c0_233, %c0_234] : memref<2x6x48xf32, #tpu.memory_space<vmem>>, vector<1x4x48xf32>
    %257 = vector.shape_cast %256 : vector<1x4x48xf32> to vector<4x48xf32>
    %c0_235 = arith.constant 0 : index
    %c0_236 = arith.constant 0 : index
    %c0_237 = arith.constant 0 : index
    %258 = vector.load %arg13[%c0_235, %c0_236, %c0_237] : memref<3x48x32xf32, #tpu.memory_space<vmem>>, vector<1x48x32xf32>
    %259 = vector.shape_cast %258 : vector<1x48x32xf32> to vector<48x32xf32>
    %cst_238 = arith.constant dense<0.000000e+00> : vector<4x32xf32>
    %260 = tpu.matmul %257, %259, %cst_238 {dimension_numbers = #tpu.dot_dimension_numbers<[1], [0], [0], [1], [0, 0, 1, 1], [], []>} : vector<4x48xf32>, vector<48x32xf32>, vector<4x32xf32> -> vector<4x32xf32>
    %c1_239 = arith.constant 1 : index
    %c1_240 = arith.constant 1 : index
    %c0_241 = arith.constant 0 : index
    %261 = vector.load %arg27[%c1_239, %c1_240, %c0_241] : memref<2x6x48xf32, #tpu.memory_space<vmem>>, vector<1x4x48xf32>
    %262 = vector.shape_cast %261 : vector<1x4x48xf32> to vector<4x48xf32>
    %c1_242 = arith.constant 1 : index
    %c0_243 = arith.constant 0 : index
    %c0_244 = arith.constant 0 : index
    %263 = vector.load %arg13[%c1_242, %c0_243, %c0_244] : memref<3x48x32xf32, #tpu.memory_space<vmem>>, vector<1x48x32xf32>
    %264 = vector.shape_cast %263 : vector<1x48x32xf32> to vector<48x32xf32>
    %cst_245 = arith.constant dense<0.000000e+00> : vector<4x32xf32>
    %265 = tpu.matmul %262, %264, %cst_245 {dimension_numbers = #tpu.dot_dimension_numbers<[1], [0], [0], [1], [0, 0, 1, 1], [], []>} : vector<4x48xf32>, vector<48x32xf32>, vector<4x32xf32> -> vector<4x32xf32>
    %266 = arith.addf %260, %265 : vector<4x32xf32>
    %c1_246 = arith.constant 1 : index
    %c2_247 = arith.constant 2 : index
    %c0_248 = arith.constant 0 : index
    %267 = vector.load %arg27[%c1_246, %c2_247, %c0_248] : memref<2x6x48xf32, #tpu.memory_space<vmem>>, vector<1x4x48xf32>
    %268 = vector.shape_cast %267 : vector<1x4x48xf32> to vector<4x48xf32>
    %c2_249 = arith.constant 2 : index
    %c0_250 = arith.constant 0 : index
    %c0_251 = arith.constant 0 : index
    %269 = vector.load %arg13[%c2_249, %c0_250, %c0_251] : memref<3x48x32xf32, #tpu.memory_space<vmem>>, vector<1x48x32xf32>
    %270 = vector.shape_cast %269 : vector<1x48x32xf32> to vector<48x32xf32>
    %cst_252 = arith.constant dense<0.000000e+00> : vector<4x32xf32>
    %271 = tpu.matmul %268, %270, %cst_252 {dimension_numbers = #tpu.dot_dimension_numbers<[1], [0], [0], [1], [0, 0, 1, 1], [], []>} : vector<4x48xf32>, vector<48x32xf32>, vector<4x32xf32> -> vector<4x32xf32>
    %272 = arith.addf %266, %271 : vector<4x32xf32>
    %c0_253 = arith.constant 0 : index
    %c0_254 = arith.constant 0 : index
    %273 = vector.load %arg14[%c0_253, %c0_254] : memref<1x32xf32, #tpu.memory_space<vmem>>, vector<1x32xf32>
    %274 = vector.broadcast %273 : vector<1x32xf32> to vector<4x32xf32>
    %275 = arith.addf %272, %274 : vector<4x32xf32>
    %cst_255 = arith.constant 0.000000e+00 : f32
    %276 = vector.broadcast %cst_255 : f32 to vector<4x32xf32>
    %277 = arith.maximumf %275, %276 : vector<4x32xf32>
    %cst_256 = arith.constant dense<0.000000e+00> : vector<32xf32>
    %278 = vector.multi_reduction <add>, %255, %cst_256 [0] : vector<4x32xf32> to vector<32xf32>
    %279 = vector.shape_cast %278 : vector<32xf32> to vector<1x32xf32>
    %280 = arith.mulf %255, %255 : vector<4x32xf32>
    %cst_257 = arith.constant dense<0.000000e+00> : vector<32xf32>
    %281 = vector.multi_reduction <add>, %280, %cst_257 [0] : vector<4x32xf32> to vector<32xf32>
    %282 = vector.shape_cast %281 : vector<32xf32> to vector<1x32xf32>
    %cst_258 = arith.constant dense<0.000000e+00> : vector<32xf32>
    %283 = vector.multi_reduction <add>, %277, %cst_258 [0] : vector<4x32xf32> to vector<32xf32>
    %284 = vector.shape_cast %283 : vector<32xf32> to vector<1x32xf32>
    %285 = arith.addf %279, %284 : vector<1x32xf32>
    %286 = arith.mulf %277, %277 : vector<4x32xf32>
    %cst_259 = arith.constant dense<0.000000e+00> : vector<32xf32>
    %287 = vector.multi_reduction <add>, %286, %cst_259 [0] : vector<4x32xf32> to vector<32xf32>
    %288 = vector.shape_cast %287 : vector<32xf32> to vector<1x32xf32>
    %289 = arith.addf %282, %288 : vector<1x32xf32>
    %c0_260 = arith.constant 0 : index
    %c0_261 = arith.constant 0 : index
    %290 = vector.load %arg15[%c0_260, %c0_261] : memref<32x8xf32, #tpu.memory_space<vmem>>, vector<32x8xf32>
    %cst_262 = arith.constant dense<0.000000e+00> : vector<1x8xf32>
    %291 = tpu.matmul %285, %290, %cst_262 {dimension_numbers = #tpu.dot_dimension_numbers<[1], [0], [0], [1], [0, 0, 1, 1], [], []>} : vector<1x32xf32>, vector<32x8xf32>, vector<1x8xf32> -> vector<1x8xf32>
    %cst_263 = arith.constant 3.125000e-02 : f32
    %292 = vector.broadcast %cst_263 : f32 to vector<1x8xf32>
    %293 = arith.mulf %291, %292 : vector<1x8xf32>
    %c0_264 = arith.constant 0 : index
    %c0_265 = arith.constant 0 : index
    %294 = vector.load %arg15[%c0_264, %c0_265] : memref<32x8xf32, #tpu.memory_space<vmem>>, vector<32x8xf32>
    %cst_266 = arith.constant dense<0.000000e+00> : vector<1x8xf32>
    %295 = tpu.matmul %289, %294, %cst_266 {dimension_numbers = #tpu.dot_dimension_numbers<[1], [0], [0], [1], [0, 0, 1, 1], [], []>} : vector<1x32xf32>, vector<32x8xf32>, vector<1x8xf32> -> vector<1x8xf32>
    %cst_267 = arith.constant 3.125000e-02 : f32
    %296 = vector.broadcast %cst_267 : f32 to vector<1x8xf32>
    %297 = arith.mulf %295, %296 : vector<1x8xf32>
    %298 = arith.mulf %293, %293 : vector<1x8xf32>
    %299 = arith.subf %297, %298 : vector<1x8xf32>
    %cst_268 = arith.constant 0.000000e+00 : f32
    %300 = vector.broadcast %cst_268 : f32 to vector<1x8xf32>
    %301 = arith.maximumf %299, %300 : vector<1x8xf32>
    %cst_269 = arith.constant 9.99999974E-6 : f32
    %302 = vector.broadcast %cst_269 : f32 to vector<1x8xf32>
    %303 = arith.addf %301, %302 : vector<1x8xf32>
    %304 = math.rsqrt %303 : vector<1x8xf32>
    %c0_270 = arith.constant 0 : index
    %c0_271 = arith.constant 0 : index
    %305 = vector.load %arg16[%c0_270, %c0_271] : memref<8x32xf32, #tpu.memory_space<vmem>>, vector<8x32xf32>
    %cst_272 = arith.constant dense<0.000000e+00> : vector<1x32xf32>
    %306 = tpu.matmul %293, %305, %cst_272 {dimension_numbers = #tpu.dot_dimension_numbers<[1], [0], [0], [1], [0, 0, 1, 1], [], []>} : vector<1x8xf32>, vector<8x32xf32>, vector<1x32xf32> -> vector<1x32xf32>
    %c0_273 = arith.constant 0 : index
    %c0_274 = arith.constant 0 : index
    %307 = vector.load %arg16[%c0_273, %c0_274] : memref<8x32xf32, #tpu.memory_space<vmem>>, vector<8x32xf32>
    %cst_275 = arith.constant dense<0.000000e+00> : vector<1x32xf32>
    %308 = tpu.matmul %304, %307, %cst_275 {dimension_numbers = #tpu.dot_dimension_numbers<[1], [0], [0], [1], [0, 0, 1, 1], [], []>} : vector<1x8xf32>, vector<8x32xf32>, vector<1x32xf32> -> vector<1x32xf32>
    %309 = vector.broadcast %306 : vector<1x32xf32> to vector<4x32xf32>
    %310 = arith.subf %255, %309 : vector<4x32xf32>
    %311 = vector.broadcast %308 : vector<1x32xf32> to vector<4x32xf32>
    %312 = arith.mulf %310, %311 : vector<4x32xf32>
    %c0_276 = arith.constant 0 : index
    %c0_277 = arith.constant 0 : index
    %c0_278 = arith.constant 0 : index
    %313 = vector.load %arg17[%c0_276, %c0_277, %c0_278] : memref<2x4x4xf32, #tpu.memory_space<vmem>>, vector<1x4x4xf32>
    %314 = vector.shape_cast %313 : vector<1x4x4xf32> to vector<4x4xf32>
    %cst_279 = arith.constant dense<0.000000e+00> : vector<4x32xf32>
    %315 = tpu.matmul %314, %312, %cst_279 {dimension_numbers = #tpu.dot_dimension_numbers<[1], [0], [0], [1], [0, 0, 1, 1], [], []>} : vector<4x4xf32>, vector<4x32xf32>, vector<4x32xf32> -> vector<4x32xf32>
    %c1_280 = arith.constant 1 : index
    %c0_281 = arith.constant 0 : index
    %c0_282 = arith.constant 0 : index
    %316 = vector.load %arg17[%c1_280, %c0_281, %c0_282] : memref<2x4x4xf32, #tpu.memory_space<vmem>>, vector<1x4x4xf32>
    %317 = vector.shape_cast %316 : vector<1x4x4xf32> to vector<4x4xf32>
    %cst_283 = arith.constant dense<0.000000e+00> : vector<4x32xf32>
    %318 = tpu.matmul %317, %312, %cst_283 {dimension_numbers = #tpu.dot_dimension_numbers<[1], [0], [0], [1], [0, 0, 1, 1], [], []>} : vector<4x4xf32>, vector<4x32xf32>, vector<4x32xf32> -> vector<4x32xf32>
    %319 = arith.maximumf %315, %318 : vector<4x32xf32>
    %c0_284 = arith.constant 0 : index
    %c0_285 = arith.constant 0 : index
    %c0_286 = arith.constant 0 : index
    %320 = vector.load %arg18[%c0_284, %c0_285, %c0_286] : memref<2x32x32xf32, #tpu.memory_space<vmem>>, vector<1x32x32xf32>
    %321 = vector.shape_cast %320 : vector<1x32x32xf32> to vector<32x32xf32>
    %cst_287 = arith.constant dense<0.000000e+00> : vector<4x32xf32>
    %322 = tpu.matmul %319, %321, %cst_287 {dimension_numbers = #tpu.dot_dimension_numbers<[1], [0], [0], [1], [0, 0, 1, 1], [], []>} : vector<4x32xf32>, vector<32x32xf32>, vector<4x32xf32> -> vector<4x32xf32>
    %c1_288 = arith.constant 1 : index
    %c0_289 = arith.constant 0 : index
    %c0_290 = arith.constant 0 : index
    %323 = vector.load %arg18[%c1_288, %c0_289, %c0_290] : memref<2x32x32xf32, #tpu.memory_space<vmem>>, vector<1x32x32xf32>
    %324 = vector.shape_cast %323 : vector<1x32x32xf32> to vector<32x32xf32>
    %cst_291 = arith.constant dense<0.000000e+00> : vector<4x32xf32>
    %325 = tpu.matmul %319, %324, %cst_291 {dimension_numbers = #tpu.dot_dimension_numbers<[1], [0], [0], [1], [0, 0, 1, 1], [], []>} : vector<4x32xf32>, vector<32x32xf32>, vector<4x32xf32> -> vector<4x32xf32>
    %326 = arith.maximumf %322, %325 : vector<4x32xf32>
    %c0_292 = arith.constant 0 : index
    %c0_293 = arith.constant 0 : index
    %c0_294 = arith.constant 0 : index
    %327 = vector.load %arg28[%c0_292, %c0_293, %c0_294] : memref<2x4x32xf32, #tpu.memory_space<vmem>>, vector<1x4x32xf32>
    %328 = vector.shape_cast %327 : vector<1x4x32xf32> to vector<4x32xf32>
    %329 = vector.shape_cast %326 : vector<4x32xf32> to vector<1x4x32xf32>
    tpu.vector_store %arg28[%c0_292, %c0_293, %c0_294], %329 {strides = array<i32>} : memref<2x4x32xf32, #tpu.memory_space<vmem>>, vector<1x4x32xf32>,
    %330 = vector.broadcast %306 : vector<1x32xf32> to vector<4x32xf32>
    %331 = arith.subf %277, %330 : vector<4x32xf32>
    %332 = vector.broadcast %308 : vector<1x32xf32> to vector<4x32xf32>
    %333 = arith.mulf %331, %332 : vector<4x32xf32>
    %c0_295 = arith.constant 0 : index
    %c0_296 = arith.constant 0 : index
    %c0_297 = arith.constant 0 : index
    %334 = vector.load %arg17[%c0_295, %c0_296, %c0_297] : memref<2x4x4xf32, #tpu.memory_space<vmem>>, vector<1x4x4xf32>
    %335 = vector.shape_cast %334 : vector<1x4x4xf32> to vector<4x4xf32>
    %cst_298 = arith.constant dense<0.000000e+00> : vector<4x32xf32>
    %336 = tpu.matmul %335, %333, %cst_298 {dimension_numbers = #tpu.dot_dimension_numbers<[1], [0], [0], [1], [0, 0, 1, 1], [], []>} : vector<4x4xf32>, vector<4x32xf32>, vector<4x32xf32> -> vector<4x32xf32>
    %c1_299 = arith.constant 1 : index
    %c0_300 = arith.constant 0 : index
    %c0_301 = arith.constant 0 : index
    %337 = vector.load %arg17[%c1_299, %c0_300, %c0_301] : memref<2x4x4xf32, #tpu.memory_space<vmem>>, vector<1x4x4xf32>
    %338 = vector.shape_cast %337 : vector<1x4x4xf32> to vector<4x4xf32>
    %cst_302 = arith.constant dense<0.000000e+00> : vector<4x32xf32>
    %339 = tpu.matmul %338, %333, %cst_302 {dimension_numbers = #tpu.dot_dimension_numbers<[1], [0], [0], [1], [0, 0, 1, 1], [], []>} : vector<4x4xf32>, vector<4x32xf32>, vector<4x32xf32> -> vector<4x32xf32>
    %340 = arith.maximumf %336, %339 : vector<4x32xf32>
    %c0_303 = arith.constant 0 : index
    %c0_304 = arith.constant 0 : index
    %c0_305 = arith.constant 0 : index
    %341 = vector.load %arg18[%c0_303, %c0_304, %c0_305] : memref<2x32x32xf32, #tpu.memory_space<vmem>>, vector<1x32x32xf32>
    %342 = vector.shape_cast %341 : vector<1x32x32xf32> to vector<32x32xf32>
    %cst_306 = arith.constant dense<0.000000e+00> : vector<4x32xf32>
    %343 = tpu.matmul %340, %342, %cst_306 {dimension_numbers = #tpu.dot_dimension_numbers<[1], [0], [0], [1], [0, 0, 1, 1], [], []>} : vector<4x32xf32>, vector<32x32xf32>, vector<4x32xf32> -> vector<4x32xf32>
    %c1_307 = arith.constant 1 : index
    %c0_308 = arith.constant 0 : index
    %c0_309 = arith.constant 0 : index
    %344 = vector.load %arg18[%c1_307, %c0_308, %c0_309] : memref<2x32x32xf32, #tpu.memory_space<vmem>>, vector<1x32x32xf32>
    %345 = vector.shape_cast %344 : vector<1x32x32xf32> to vector<32x32xf32>
    %cst_310 = arith.constant dense<0.000000e+00> : vector<4x32xf32>
    %346 = tpu.matmul %340, %345, %cst_310 {dimension_numbers = #tpu.dot_dimension_numbers<[1], [0], [0], [1], [0, 0, 1, 1], [], []>} : vector<4x32xf32>, vector<32x32xf32>, vector<4x32xf32> -> vector<4x32xf32>
    %347 = arith.maximumf %343, %346 : vector<4x32xf32>
    %c1_311 = arith.constant 1 : index
    %c0_312 = arith.constant 0 : index
    %c0_313 = arith.constant 0 : index
    %348 = vector.load %arg28[%c1_311, %c0_312, %c0_313] : memref<2x4x32xf32, #tpu.memory_space<vmem>>, vector<1x4x32xf32>
    %349 = vector.shape_cast %348 : vector<1x4x32xf32> to vector<4x32xf32>
    %350 = vector.shape_cast %347 : vector<4x32xf32> to vector<1x4x32xf32>
    tpu.vector_store %arg28[%c1_311, %c0_312, %c0_313], %350 {strides = array<i32>} : memref<2x4x32xf32, #tpu.memory_space<vmem>>, vector<1x4x32xf32>,
    %c0_314 = arith.constant 0 : index
    %c0_315 = arith.constant 0 : index
    %c0_316 = arith.constant 0 : index
    %351 = vector.load %arg28[%c0_314, %c0_315, %c0_316] : memref<2x4x32xf32, #tpu.memory_space<vmem>>, vector<1x3x32xf32>
    %352 = vector.shape_cast %351 : vector<1x3x32xf32> to vector<3x32xf32>
    %c0_317 = arith.constant 0 : index
    %c0_318 = arith.constant 0 : index
    %c0_319 = arith.constant 0 : index
    %353 = vector.load %arg19[%c0_317, %c0_318, %c0_319] : memref<2x32x24xf32, #tpu.memory_space<vmem>>, vector<1x32x24xf32>
    %354 = vector.shape_cast %353 : vector<1x32x24xf32> to vector<32x24xf32>
    %cst_320 = arith.constant dense<0.000000e+00> : vector<3x24xf32>
    %355 = tpu.matmul %352, %354, %cst_320 {dimension_numbers = #tpu.dot_dimension_numbers<[1], [0], [0], [1], [0, 0, 1, 1], [], []>} : vector<3x32xf32>, vector<32x24xf32>, vector<3x24xf32> -> vector<3x24xf32>
    %c0_321 = arith.constant 0 : index
    %c1_322 = arith.constant 1 : index
    %c0_323 = arith.constant 0 : index
    %356 = vector.load %arg28[%c0_321, %c1_322, %c0_323] : memref<2x4x32xf32, #tpu.memory_space<vmem>>, vector<1x3x32xf32>
    %357 = vector.shape_cast %356 : vector<1x3x32xf32> to vector<3x32xf32>
    %c1_324 = arith.constant 1 : index
    %c0_325 = arith.constant 0 : index
    %c0_326 = arith.constant 0 : index
    %358 = vector.load %arg19[%c1_324, %c0_325, %c0_326] : memref<2x32x24xf32, #tpu.memory_space<vmem>>, vector<1x32x24xf32>
    %359 = vector.shape_cast %358 : vector<1x32x24xf32> to vector<32x24xf32>
    %cst_327 = arith.constant dense<0.000000e+00> : vector<3x24xf32>
    %360 = tpu.matmul %357, %359, %cst_327 {dimension_numbers = #tpu.dot_dimension_numbers<[1], [0], [0], [1], [0, 0, 1, 1], [], []>} : vector<3x32xf32>, vector<32x24xf32>, vector<3x24xf32> -> vector<3x24xf32>
    %361 = arith.addf %355, %360 : vector<3x24xf32>
    %c0_328 = arith.constant 0 : index
    %c0_329 = arith.constant 0 : index
    %362 = vector.load %arg20[%c0_328, %c0_329] : memref<1x24xf32, #tpu.memory_space<vmem>>, vector<1x24xf32>
    %363 = vector.broadcast %362 : vector<1x24xf32> to vector<3x24xf32>
    %364 = arith.addf %361, %363 : vector<3x24xf32>
    %cst_330 = arith.constant 0.000000e+00 : f32
    %365 = vector.broadcast %cst_330 : f32 to vector<3x24xf32>
    %366 = arith.maximumf %364, %365 : vector<3x24xf32>
    %c1_331 = arith.constant 1 : index
    %c0_332 = arith.constant 0 : index
    %c0_333 = arith.constant 0 : index
    %367 = vector.load %arg28[%c1_331, %c0_332, %c0_333] : memref<2x4x32xf32, #tpu.memory_space<vmem>>, vector<1x3x32xf32>
    %368 = vector.shape_cast %367 : vector<1x3x32xf32> to vector<3x32xf32>
    %c0_334 = arith.constant 0 : index
    %c0_335 = arith.constant 0 : index
    %c0_336 = arith.constant 0 : index
    %369 = vector.load %arg19[%c0_334, %c0_335, %c0_336] : memref<2x32x24xf32, #tpu.memory_space<vmem>>, vector<1x32x24xf32>
    %370 = vector.shape_cast %369 : vector<1x32x24xf32> to vector<32x24xf32>
    %cst_337 = arith.constant dense<0.000000e+00> : vector<3x24xf32>
    %371 = tpu.matmul %368, %370, %cst_337 {dimension_numbers = #tpu.dot_dimension_numbers<[1], [0], [0], [1], [0, 0, 1, 1], [], []>} : vector<3x32xf32>, vector<32x24xf32>, vector<3x24xf32> -> vector<3x24xf32>
    %c1_338 = arith.constant 1 : index
    %c1_339 = arith.constant 1 : index
    %c0_340 = arith.constant 0 : index
    %372 = vector.load %arg28[%c1_338, %c1_339, %c0_340] : memref<2x4x32xf32, #tpu.memory_space<vmem>>, vector<1x3x32xf32>
    %373 = vector.shape_cast %372 : vector<1x3x32xf32> to vector<3x32xf32>
    %c1_341 = arith.constant 1 : index
    %c0_342 = arith.constant 0 : index
    %c0_343 = arith.constant 0 : index
    %374 = vector.load %arg19[%c1_341, %c0_342, %c0_343] : memref<2x32x24xf32, #tpu.memory_space<vmem>>, vector<1x32x24xf32>
    %375 = vector.shape_cast %374 : vector<1x32x24xf32> to vector<32x24xf32>
    %cst_344 = arith.constant dense<0.000000e+00> : vector<3x24xf32>
    %376 = tpu.matmul %373, %375, %cst_344 {dimension_numbers = #tpu.dot_dimension_numbers<[1], [0], [0], [1], [0, 0, 1, 1], [], []>} : vector<3x32xf32>, vector<32x24xf32>, vector<3x24xf32> -> vector<3x24xf32>
    %377 = arith.addf %371, %376 : vector<3x24xf32>
    %c0_345 = arith.constant 0 : index
    %c0_346 = arith.constant 0 : index
    %378 = vector.load %arg20[%c0_345, %c0_346] : memref<1x24xf32, #tpu.memory_space<vmem>>, vector<1x24xf32>
    %379 = vector.broadcast %378 : vector<1x24xf32> to vector<3x24xf32>
    %380 = arith.addf %377, %379 : vector<3x24xf32>
    %cst_347 = arith.constant 0.000000e+00 : f32
    %381 = vector.broadcast %cst_347 : f32 to vector<3x24xf32>
    %382 = arith.maximumf %380, %381 : vector<3x24xf32>
    %cst_348 = arith.constant dense<0.000000e+00> : vector<24xf32>
    %383 = vector.multi_reduction <add>, %366, %cst_348 [0] : vector<3x24xf32> to vector<24xf32>
    %384 = vector.shape_cast %383 : vector<24xf32> to vector<1x24xf32>
    %385 = arith.mulf %366, %366 : vector<3x24xf32>
    %cst_349 = arith.constant dense<0.000000e+00> : vector<24xf32>
    %386 = vector.multi_reduction <add>, %385, %cst_349 [0] : vector<3x24xf32> to vector<24xf32>
    %387 = vector.shape_cast %386 : vector<24xf32> to vector<1x24xf32>
    %cst_350 = arith.constant dense<0.000000e+00> : vector<24xf32>
    %388 = vector.multi_reduction <add>, %382, %cst_350 [0] : vector<3x24xf32> to vector<24xf32>
    %389 = vector.shape_cast %388 : vector<24xf32> to vector<1x24xf32>
    %390 = arith.addf %384, %389 : vector<1x24xf32>
    %391 = arith.mulf %382, %382 : vector<3x24xf32>
    %cst_351 = arith.constant dense<0.000000e+00> : vector<24xf32>
    %392 = vector.multi_reduction <add>, %391, %cst_351 [0] : vector<3x24xf32> to vector<24xf32>
    %393 = vector.shape_cast %392 : vector<24xf32> to vector<1x24xf32>
    %394 = arith.addf %387, %393 : vector<1x24xf32>
    %c0_352 = arith.constant 0 : index
    %c0_353 = arith.constant 0 : index
    %395 = vector.load %arg21[%c0_352, %c0_353] : memref<24x8xf32, #tpu.memory_space<vmem>>, vector<24x8xf32>
    %cst_354 = arith.constant dense<0.000000e+00> : vector<1x8xf32>
    %396 = tpu.matmul %390, %395, %cst_354 {dimension_numbers = #tpu.dot_dimension_numbers<[1], [0], [0], [1], [0, 0, 1, 1], [], []>} : vector<1x24xf32>, vector<24x8xf32>, vector<1x8xf32> -> vector<1x8xf32>
    %cst_355 = arith.constant 0.055555556 : f32
    %397 = vector.broadcast %cst_355 : f32 to vector<1x8xf32>
    %398 = arith.mulf %396, %397 : vector<1x8xf32>
    %c0_356 = arith.constant 0 : index
    %c0_357 = arith.constant 0 : index
    %399 = vector.load %arg21[%c0_356, %c0_357] : memref<24x8xf32, #tpu.memory_space<vmem>>, vector<24x8xf32>
    %cst_358 = arith.constant dense<0.000000e+00> : vector<1x8xf32>
    %400 = tpu.matmul %394, %399, %cst_358 {dimension_numbers = #tpu.dot_dimension_numbers<[1], [0], [0], [1], [0, 0, 1, 1], [], []>} : vector<1x24xf32>, vector<24x8xf32>, vector<1x8xf32> -> vector<1x8xf32>
    %cst_359 = arith.constant 0.055555556 : f32
    %401 = vector.broadcast %cst_359 : f32 to vector<1x8xf32>
    %402 = arith.mulf %400, %401 : vector<1x8xf32>
    %403 = arith.mulf %398, %398 : vector<1x8xf32>
    %404 = arith.subf %402, %403 : vector<1x8xf32>
    %cst_360 = arith.constant 0.000000e+00 : f32
    %405 = vector.broadcast %cst_360 : f32 to vector<1x8xf32>
    %406 = arith.maximumf %404, %405 : vector<1x8xf32>
    %cst_361 = arith.constant 9.99999974E-6 : f32
    %407 = vector.broadcast %cst_361 : f32 to vector<1x8xf32>
    %408 = arith.addf %406, %407 : vector<1x8xf32>
    %409 = math.rsqrt %408 : vector<1x8xf32>
    %c0_362 = arith.constant 0 : index
    %c0_363 = arith.constant 0 : index
    %410 = vector.load %arg22[%c0_362, %c0_363] : memref<8x24xf32, #tpu.memory_space<vmem>>, vector<8x24xf32>
    %cst_364 = arith.constant dense<0.000000e+00> : vector<1x24xf32>
    %411 = tpu.matmul %398, %410, %cst_364 {dimension_numbers = #tpu.dot_dimension_numbers<[1], [0], [0], [1], [0, 0, 1, 1], [], []>} : vector<1x8xf32>, vector<8x24xf32>, vector<1x24xf32> -> vector<1x24xf32>
    %c0_365 = arith.constant 0 : index
    %c0_366 = arith.constant 0 : index
    %412 = vector.load %arg22[%c0_365, %c0_366] : memref<8x24xf32, #tpu.memory_space<vmem>>, vector<8x24xf32>
    %cst_367 = arith.constant dense<0.000000e+00> : vector<1x24xf32>
    %413 = tpu.matmul %409, %412, %cst_367 {dimension_numbers = #tpu.dot_dimension_numbers<[1], [0], [0], [1], [0, 0, 1, 1], [], []>} : vector<1x8xf32>, vector<8x24xf32>, vector<1x24xf32> -> vector<1x24xf32>
    %414 = vector.broadcast %411 : vector<1x24xf32> to vector<3x24xf32>
    %415 = arith.subf %366, %414 : vector<3x24xf32>
    %416 = vector.broadcast %413 : vector<1x24xf32> to vector<3x24xf32>
    %417 = arith.mulf %415, %416 : vector<3x24xf32>
    %c0_368 = arith.constant 0 : index
    %c0_369 = arith.constant 0 : index
    %c0_370 = arith.constant 0 : index
    %418 = vector.load %arg23[%c0_368, %c0_369, %c0_370] : memref<2x1x3xf32, #tpu.memory_space<vmem>>, vector<1x1x3xf32>
    %419 = vector.shape_cast %418 : vector<1x1x3xf32> to vector<1x3xf32>
    %cst_371 = arith.constant dense<0.000000e+00> : vector<1x24xf32>
    %420 = tpu.matmul %419, %417, %cst_371 {dimension_numbers = #tpu.dot_dimension_numbers<[1], [0], [0], [1], [0, 0, 1, 1], [], []>} : vector<1x3xf32>, vector<3x24xf32>, vector<1x24xf32> -> vector<1x24xf32>
    %c1_372 = arith.constant 1 : index
    %c0_373 = arith.constant 0 : index
    %c0_374 = arith.constant 0 : index
    %421 = vector.load %arg23[%c1_372, %c0_373, %c0_374] : memref<2x1x3xf32, #tpu.memory_space<vmem>>, vector<1x1x3xf32>
    %422 = vector.shape_cast %421 : vector<1x1x3xf32> to vector<1x3xf32>
    %cst_375 = arith.constant dense<0.000000e+00> : vector<1x24xf32>
    %423 = tpu.matmul %422, %417, %cst_375 {dimension_numbers = #tpu.dot_dimension_numbers<[1], [0], [0], [1], [0, 0, 1, 1], [], []>} : vector<1x3xf32>, vector<3x24xf32>, vector<1x24xf32> -> vector<1x24xf32>
    %424 = arith.maximumf %420, %423 : vector<1x24xf32>
    %c0_376 = arith.constant 0 : index
    %c0_377 = arith.constant 0 : index
    %c0_378 = arith.constant 0 : index
    %425 = vector.load %arg24[%c0_376, %c0_377, %c0_378] : memref<2x24x8xf32, #tpu.memory_space<vmem>>, vector<1x24x8xf32>
    %426 = vector.shape_cast %425 : vector<1x24x8xf32> to vector<24x8xf32>
    %cst_379 = arith.constant dense<0.000000e+00> : vector<1x8xf32>
    %427 = tpu.matmul %424, %426, %cst_379 {dimension_numbers = #tpu.dot_dimension_numbers<[1], [0], [0], [1], [0, 0, 1, 1], [], []>} : vector<1x24xf32>, vector<24x8xf32>, vector<1x8xf32> -> vector<1x8xf32>
    %c1_380 = arith.constant 1 : index
    %c0_381 = arith.constant 0 : index
    %c0_382 = arith.constant 0 : index
    %428 = vector.load %arg24[%c1_380, %c0_381, %c0_382] : memref<2x24x8xf32, #tpu.memory_space<vmem>>, vector<1x24x8xf32>
    %429 = vector.shape_cast %428 : vector<1x24x8xf32> to vector<24x8xf32>
    %cst_383 = arith.constant dense<0.000000e+00> : vector<1x8xf32>
    %430 = tpu.matmul %424, %429, %cst_383 {dimension_numbers = #tpu.dot_dimension_numbers<[1], [0], [0], [1], [0, 0, 1, 1], [], []>} : vector<1x24xf32>, vector<24x8xf32>, vector<1x8xf32> -> vector<1x8xf32>
    %431 = arith.maximumf %427, %430 : vector<1x8xf32>
    %c0_384 = arith.constant 0 : index
    %c0_385 = arith.constant 0 : index
    %432 = vector.load %arg25[%c0_384, %c0_385] : memref<2x8xf32, #tpu.memory_space<vmem>>, vector<1x8xf32>
    tpu.vector_store %arg25[%c0_384, %c0_385], %431 {strides = array<i32>} : memref<2x8xf32, #tpu.memory_space<vmem>>, vector<1x8xf32>,
    %433 = vector.broadcast %411 : vector<1x24xf32> to vector<3x24xf32>
    %434 = arith.subf %382, %433 : vector<3x24xf32>
    %435 = vector.broadcast %413 : vector<1x24xf32> to vector<3x24xf32>
    %436 = arith.mulf %434, %435 : vector<3x24xf32>
    %c0_386 = arith.constant 0 : index
    %c0_387 = arith.constant 0 : index
    %c0_388 = arith.constant 0 : index
    %437 = vector.load %arg23[%c0_386, %c0_387, %c0_388] : memref<2x1x3xf32, #tpu.memory_space<vmem>>, vector<1x1x3xf32>
    %438 = vector.shape_cast %437 : vector<1x1x3xf32> to vector<1x3xf32>
    %cst_389 = arith.constant dense<0.000000e+00> : vector<1x24xf32>
    %439 = tpu.matmul %438, %436, %cst_389 {dimension_numbers = #tpu.dot_dimension_numbers<[1], [0], [0], [1], [0, 0, 1, 1], [], []>} : vector<1x3xf32>, vector<3x24xf32>, vector<1x24xf32> -> vector<1x24xf32>
    %c1_390 = arith.constant 1 : index
    %c0_391 = arith.constant 0 : index
    %c0_392 = arith.constant 0 : index
    %440 = vector.load %arg23[%c1_390, %c0_391, %c0_392] : memref<2x1x3xf32, #tpu.memory_space<vmem>>, vector<1x1x3xf32>
    %441 = vector.shape_cast %440 : vector<1x1x3xf32> to vector<1x3xf32>
    %cst_393 = arith.constant dense<0.000000e+00> : vector<1x24xf32>
    %442 = tpu.matmul %441, %436, %cst_393 {dimension_numbers = #tpu.dot_dimension_numbers<[1], [0], [0], [1], [0, 0, 1, 1], [], []>} : vector<1x3xf32>, vector<3x24xf32>, vector<1x24xf32> -> vector<1x24xf32>
    %443 = arith.maximumf %439, %442 : vector<1x24xf32>
    %c0_394 = arith.constant 0 : index
    %c0_395 = arith.constant 0 : index
    %c0_396 = arith.constant 0 : index
    %444 = vector.load %arg24[%c0_394, %c0_395, %c0_396] : memref<2x24x8xf32, #tpu.memory_space<vmem>>, vector<1x24x8xf32>
    %445 = vector.shape_cast %444 : vector<1x24x8xf32> to vector<24x8xf32>
    %cst_397 = arith.constant dense<0.000000e+00> : vector<1x8xf32>
    %446 = tpu.matmul %443, %445, %cst_397 {dimension_numbers = #tpu.dot_dimension_numbers<[1], [0], [0], [1], [0, 0, 1, 1], [], []>} : vector<1x24xf32>, vector<24x8xf32>, vector<1x8xf32> -> vector<1x8xf32>
    %c1_398 = arith.constant 1 : index
    %c0_399 = arith.constant 0 : index
    %c0_400 = arith.constant 0 : index
    %447 = vector.load %arg24[%c1_398, %c0_399, %c0_400] : memref<2x24x8xf32, #tpu.memory_space<vmem>>, vector<1x24x8xf32>
    %448 = vector.shape_cast %447 : vector<1x24x8xf32> to vector<24x8xf32>
    %cst_401 = arith.constant dense<0.000000e+00> : vector<1x8xf32>
    %449 = tpu.matmul %443, %448, %cst_401 {dimension_numbers = #tpu.dot_dimension_numbers<[1], [0], [0], [1], [0, 0, 1, 1], [], []>} : vector<1x24xf32>, vector<24x8xf32>, vector<1x8xf32> -> vector<1x8xf32>
    %450 = arith.maximumf %446, %449 : vector<1x8xf32>
    %c1_402 = arith.constant 1 : index
    %c0_403 = arith.constant 0 : index
    %451 = vector.load %arg25[%c1_402, %c0_403] : memref<2x8xf32, #tpu.memory_space<vmem>>, vector<1x8xf32>
    tpu.vector_store %arg25[%c1_402, %c0_403], %450 {strides = array<i32>} : memref<2x8xf32, #tpu.memory_space<vmem>>, vector<1x8xf32>,
    return
  }
}

</mosaic_0001>

<bundles_post_ra>
// kernel: fwd.1
= control target key start
LH: loop header
LB: loop body
LE: loop exit
PB: predicated region body
PF: predicated region fallthrough
CT: control target
= control target key end

     0   :  { %s9721_s0 = inlined_call_operand.vmem [shape: f32[2,18,144], index: 0, kind: input, shape index: {}]   ;;  %s9722_s1 = inlined_call_operand.vmem [shape: f32[3,144,128], index: 1, kind: input, shape index: {}]   ;;  %s9723_s2 = inlined_call_operand.vmem [shape: f32[1,128], index: 2, kind: input, shape index: {}]   ;;  %s9724_s3 = inlined_call_operand.vmem [shape: f32[128,8], index: 3, kind: input, shape index: {}]   ;;  %s9725_s4 = inlined_call_operand.vmem [shape: f32[8,128], index: 4, kind: input, shape index: {}]   ;;  %s9726_s5 = inlined_call_operand.vmem [shape: f32[2,10,16], index: 5, kind: input, shape index: {}]   ;;  %s9727_s6 = inlined_call_operand.vmem [shape: f32[2,128,80], index: 6, kind: input, shape index: {}]   ;;  %s9728_s7 = inlined_call_operand.vmem [shape: f32[3,80,64], index: 7, kind: input, shape index: {}]   ;;  %s9729_s8 = inlined_call_operand.vmem [shape: f32[1,64], index: 8, kind: input, shape index: {}]   ;;  %s9730_s9 = inlined_call_operand.vmem [shape: f32[64,8], index: 9, kind: input, shape index: {}]   ;;  %s9731_s10 = inlined_call_operand.vmem [shape: f32[8,64], index: 10, kind: input, shape index: {}]   ;;  %s9732_s11 = inlined_call_operand.vmem [shape: f32[2,6,8], index: 11, kind: input, shape index: {}]   ;;  %s9733_s12 = inlined_call_operand.vmem [shape: f32[2,64,48], index: 12, kind: input, shape index: {}]   ;;  %s9734_s13 = inlined_call_operand.vmem [shape: f32[3,48,32], index: 13, kind: input, shape index: {}]   ;;  %s9735_s14 = inlined_call_operand.vmem [shape: f32[1,32], index: 14, kind: input, shape index: {}]   ;;  %s9736_s15 = inlined_call_operand.vmem [shape: f32[32,8], index: 15, kind: input, shape index: {}]   ;;  %s9737_s16 = inlined_call_operand.vmem [shape: f32[8,32], index: 16, kind: input, shape index: {}]   ;;  %s9738_s17 = inlined_call_operand.vmem [shape: f32[2,4,4], index: 17, kind: input, shape index: {}]   ;;  %s9739_s18 = inlined_call_operand.vmem [shape: f32[2,32,32], index: 18, kind: input, shape index: {}]   ;;  %s9740_s19 = inlined_call_operand.vmem [shape: f32[2,32,24], index: 19, kind: input, shape index: {}]   ;;  %s9741_s20 = inlined_call_operand.vmem [shape: f32[1,24], index: 20, kind: input, shape index: {}]   ;;  %s9742_s21 = inlined_call_operand.vmem [shape: f32[24,8], index: 21, kind: input, shape index: {}]   ;;  %s9743_s22 = inlined_call_operand.vmem [shape: f32[8,24], index: 22, kind: input, shape index: {}]   ;;  %s9744_s23 = inlined_call_operand.vmem [shape: f32[2,1,3], index: 23, kind: input, shape index: {}]   ;;  %s9745_s24 = inlined_call_operand.vmem [shape: f32[2,24,8], index: 24, kind: input, shape index: {}]   ;;  %s9746_s25 = inlined_call_operand.hbm [shape: f32[2,8], index: 25, kind: output, shape index: {}]  }
   0x1   :  { %9754 = sst [smem:[#allocation8_spill]] %s9721_s0 }
   0x2   :  { %9755 = sst [smem:[#allocation9_spill]] %s9722_s1 }
   0x3   :  { %9756 = sst [smem:[#allocation10_spill]] %s9723_s2 }
   0x4   :  { %9757 = sst [smem:[#allocation11_spill]] %s9724_s3 }
   0x5   :  { %9758 = sst [smem:[#allocation12_spill]] %s9725_s4 }
   0x6   :  { %9759 = sst [smem:[#allocation13_spill]] %s9726_s5 }
   0x7   :  { %9760 = sst [smem:[#allocation14_spill]] %s9727_s6 }
   0x8   :  { %9761 = sst [smem:[#allocation15_spill]] %s9728_s7 }
   0x9   :  { %9762 = sst [smem:[#allocation16_spill]] %s9729_s8 }
   0xa   :  { %9763 = sst [smem:[#allocation17_spill]] %s9730_s9 }
   0xb   :  { %s9764_s6 = sld [smem:[#allocation9_spill]]  ;;  %v7518_v2 = vmov 0.0  }
   0xc   :  { %150 = vmatprep.subr.mxu0 %v7518_v2  ;;  %230 = vmatprep.subr.mxu1 %v7518_v2  ;;  %s9765_s3 = sld [smem:[#allocation8_spill]] }
  0x11   :  { %v7654_v0 = vld [vmem:[%s9764_s6 + $0x108] sm:$0xff]  ;;  %v7659_v1 = vld [vmem:[%s9764_s6 + $0x78] sm:$0xff]  ;;  %v7666_v3 = vld [vmem:[%s9764_s6 + $0x100] sm:$0xff] }
  0x12   :  { %v7671_v4 = vld [vmem:[%s9764_s6 + $0x70] sm:$0xff]  ;;  %151 = vmatpush1.msra.mxu0 %v7654_v0  ;;  %231 = vmatpush1.msra.mxu1 %v7659_v1  ;;  %v7680_v5 = vld [vmem:[%s9764_s6 + $0xf8] sm:$0xff]  ;;  %v7685_v6 = vld [vmem:[%s9764_s6 + $0x68] sm:$0xff] }
  0x13   :  { %152 = vmatprep.subr.mxu0 %v7518_v2  ;;  %232 = vmatprep.subr.mxu1 %v7518_v2  ;;  %v7694_v7 = vld [vmem:[%s9764_s6 + $0xf0] sm:$0xff]  ;;  %v7699_v8 = vld [vmem:[%s9764_s6 + $0x60] sm:$0xff]  ;;  %v7708_v9 = vld [vmem:[%s9764_s6 + $0xe8] sm:$0xff] }
  0x14   :  { %153 = vmatpush1.msra.mxu0 %v7666_v3  ;;  %233 = vmatpush1.msra.mxu1 %v7671_v4  ;;  %v7713_v10 = vld [vmem:[%s9764_s6 + $0x58] sm:$0xff]  ;;  %v7722_v11 = vld [vmem:[%s9764_s6 + $0xe0] sm:$0xff]  ;;  %v7727_v12 = vld [vmem:[%s9764_s6 + $0x50] sm:$0xff] }
  0x15   :  { %154 = vmatprep.subr.mxu0 %v7518_v2  ;;  %234 = vmatprep.subr.mxu1 %v7518_v2  ;;  %v7736_v13 = vld [vmem:[%s9764_s6 + $0xd8] sm:$0xff]  ;;  %v7741_v14 = vld [vmem:[%s9764_s6 + $0x48] sm:$0xff]  ;;  %v7750_v15 = vld [vmem:[%s9764_s6 + $0xd0] sm:$0xff] }
  0x16   :  { %155 = vmatpush1.msra.mxu0 %v7680_v5  ;;  %235 = vmatpush1.msra.mxu1 %v7685_v6  ;;  %v7755_v16 = vld [vmem:[%s9764_s6 + $0x40] sm:$0xff]  ;;  %v7764_v17 = vld [vmem:[%s9764_s6 + $0xc8] sm:$0xff]  ;;  %v7769_v18 = vld [vmem:[%s9764_s6 + $0x38] sm:$0xff] }
  0x17   :  { %156 = vmatprep.subr.mxu0 %v7518_v2  ;;  %236 = vmatprep.subr.mxu1 %v7518_v2  ;;  %v7778_v19 = vld [vmem:[%s9764_s6 + $0xc0] sm:$0xff]  ;;  %v7783_v20 = vld [vmem:[%s9764_s6 + $0x30] sm:$0xff]  ;;  %v7792_v21 = vld [vmem:[%s9764_s6 + $0xb8] sm:$0xff] }
  0x18   :  { %157 = vmatpush1.msra.mxu0 %v7694_v7  ;;  %237 = vmatpush1.msra.mxu1 %v7699_v8  ;;  %v7797_v22 = vld [vmem:[%s9764_s6 + $0x28] sm:$0xff]  ;;  %v7806_v23 = vld [vmem:[%s9764_s6 + $0xb0] sm:$0xff]  ;;  %v7811_v24 = vld [vmem:[%s9764_s6 + $0x20] sm:$0xff] }
  0x19   :  { %158 = vmatprep.subr.mxu0 %v7518_v2  ;;  %238 = vmatprep.subr.mxu1 %v7518_v2  ;;  %v7820_v25 = vld [vmem:[%s9764_s6 + $0xa8] sm:$0xff]  ;;  %v7825_v26 = vld [vmem:[%s9764_s6 + $0x18] sm:$0xff]  ;;  %v7834_v27 = vld [vmem:[%s9764_s6 + $0xa0] sm:$0xff] }
  0x1a   :  { %159 = vmatpush1.msra.mxu0 %v7708_v9  ;;  %239 = vmatpush1.msra.mxu1 %v7713_v10  ;;  %v7839_v28 = vld [vmem:[%s9764_s6 + $0x10] sm:$0xff]  ;;  %v7846_v29 = vld [vmem:[%s9764_s6 + $0x98] sm:$0xff]  ;;  %v104_v31 = vld [vmem:[%s9765_s3 + $0x8] sm:$0xfe] }
  0x1b   :  { %160 = vmatprep.subr.mxu0 %v7518_v2  ;;  %240 = vmatprep.subr.mxu1 %v7518_v2  ;;  %v7851_v30 = vld [vmem:[%s9765_s3 + $0x18] sm:$0xff]  ;;  %v7861_v32 = vld [vmem:[%s9764_s6 + $0x8] sm:$0xff]  ;;  %v7866_v33 = vld [vmem:[%s9765_s3 + $0x10] sm:$0xff] }
  0x1c   :  { %161 = vmatpush1.msra.mxu0 %v7722_v11  ;;  %241 = vmatpush1.msra.mxu1 %v7727_v12  ;;  %v103_v34 = vld [vmem:[%s9765_s3] sm:$0xfe] }
  0x1d   :  { %162 = vmatprep.subr.mxu0 %v7518_v2  ;;  %242 = vmatprep.subr.mxu1 %v7518_v2 }
  0x1e   :  { %163 = vmatpush1.msra.mxu0 %v7736_v13  ;;  %243 = vmatpush1.msra.mxu1 %v7741_v14 }
  0x1f   :  { %164 = vmatprep.subr.mxu0 %v7518_v2  ;;  %244 = vmatprep.subr.mxu1 %v7518_v2 }
  0x20   :  { %165 = vmatpush1.msra.mxu0 %v7750_v15  ;;  %245 = vmatpush1.msra.mxu1 %v7755_v16 }
  0x21   :  { %166 = vmatprep.subr.mxu0 %v7518_v2  ;;  %246 = vmatprep.subr.mxu1 %v7518_v2 }
  0x22   :  { %167 = vmatpush1.msra.mxu0 %v7764_v17  ;;  %247 = vmatpush1.msra.mxu1 %v7769_v18 }
  0x23   :  { %168 = vmatprep.subr.mxu0 %v7518_v2  ;;  %248 = vmatprep.subr.mxu1 %v7518_v2 }
  0x24   :  { %169 = vmatpush1.msra.mxu0 %v7778_v19  ;;  %249 = vmatpush1.msra.mxu1 %v7783_v20 }
  0x25   :  { %170 = vmatprep.subr.mxu0 %v7518_v2  ;;  %250 = vmatprep.subr.mxu1 %v7518_v2 }
  0x26   :  { %171 = vmatpush1.msra.mxu0 %v7792_v21  ;;  %251 = vmatpush1.msra.mxu1 %v7797_v22 }
  0x27   :  { %172 = vmatprep.subr.mxu0 %v7518_v2  ;;  %252 = vmatprep.subr.mxu1 %v7518_v2 }
  0x28   :  { %173 = vmatpush1.msra.mxu0 %v7806_v23  ;;  %253 = vmatpush1.msra.mxu1 %v7811_v24 }
  0x29   :  { %174 = vmatprep.subr.mxu0 %v7518_v2  ;;  %254 = vmatprep.subr.mxu1 %v7518_v2 }
  0x2a   :  { %175 = vmatpush1.msra.mxu0 %v7820_v25  ;;  %255 = vmatpush1.msra.mxu1 %v7825_v26 }
  0x2b   :  { %176 = vmatprep.subr.mxu0 %v7518_v2  ;;  %256 = vmatprep.subr.mxu1 %v7518_v2 }
  0x2c   :  { %177 = vmatpush1.msra.mxu0 %v7834_v27  ;;  %257 = vmatpush1.msra.mxu1 %v7839_v28 }
  0x2d   :  { %30 = vsyncpa [#allocation6], 0  ;;  %178 = vmatprep.subr.mxu0 %v7518_v2  ;;  %258 = vmatprep.subr.mxu1 %v7518_v2  ;;  %v7878_v35 = vld [vmem:[%s9764_s6 + $0x90] sm:$0xff]  ;;  %v7883_v36 = vld [vmem:[%s9764_s6] sm:$0xff]  ;;  %v136_v37 = vrot.slane %v104_v31, 1  ;;  %v137_v38 = vrot.slane %v7851_v30, 1 }
  0x2e   :  { %179 = vmatpush1.msra.mxu0 %v7846_v29  ;;  %259 = vmatpush1.msra.mxu1 %v7861_v32  ;;  %vm132_vm0 = vcmask 1046528   ;;  %v133_v39 = vrot.slane %v103_v34, 1  ;;  %v134_v40 = vrot.slane %v7866_v33, 1  ;;  %v7894_v41 = vld [vmem:[%s9764_s6 + $0x118] sm:$0xff]  ;;  %v7899_v42 = vld [vmem:[%s9764_s6 + $0x88] sm:$0xff]  ;;  %v7908_v43 = vld [vmem:[%s9764_s6 + $0x110] sm:$0xff] }
  0x2f   :  { %180 = vmatprep.subr.mxu0 %v7518_v2  ;;  %260 = vmatprep.subr.mxu1 %v7518_v2  ;;  %v138_v44 = vsel %vm132_vm0, %v136_v37, %v137_v38  ;;  %vm145_vm1 = vcmask 130048   ;;  %v7918_v45 = vld [vmem:[%s9764_s6 + $0x80] sm:$0xff]  ;;  %v82_v47 = vld [vmem:[%s9765_s3 + $0x8] sm:$0xff]  ;;  %v7937_v49 = vld [vmem:[%s9764_s6 + $0x198] sm:$0xff]  ;;  %vm332_vm2 = vcmask 1045504   ;;  %v334_v34 = vrot.slane %v7866_v33, 2 }
  0x30   :  { %181 = vmatpush1.msra.mxu0 %v7878_v35  ;;  %261 = vmatpush1.msra.mxu1 %v7883_v36  ;;  %v135_v46 = vsel %vm132_vm0, %v133_v39, %v134_v40  ;;  %v81_v48 = vld [vmem:[%s9765_s3] sm:$0xff]  ;;  %v7945_v50 = vld [vmem:[%s9764_s6 + $0x190] sm:$0xff]  ;;  %v7954_v51 = vld [vmem:[%s9764_s6 + $0x188] sm:$0xff]  ;;  %s9766_s4 = sld [smem:[#allocation11_spill]]  ;;  %vm7519_vm3 = vmmov 0   ;;  %vm926_vm4 = vcmask 64512  }
  0x31   :  { %210 = vmatprep.subr.mxu0 %v7518_v2  ;;  %290 = vmatprep.subr.mxu1 %v7518_v2  ;;  %v7963_v52 = vld [vmem:[%s9764_s6 + $0x180] sm:$0xff]  ;;  %v7972_v53 = vld [vmem:[%s9764_s6 + $0x178] sm:$0xff]  ;;  %v7981_v54 = vld [vmem:[%s9764_s6 + $0x170] sm:$0xff]  ;;  %s9767_s0 = sld [smem:[#allocation10_spill]]  ;;  %vm1441_vm5 = vcmask 648192   ;;  %vm1439_vm6 = vcmask 654336  }
  0x32   :  { %211 = vmatpush2.msra.mxu0 %v7894_v41  ;;  %291 = vmatpush2.msra.mxu1 %v7899_v42  ;;  %v7990_v55 = vld [vmem:[%s9764_s6 + $0x168] sm:$0xff]  ;;  %v7999_v56 = vld [vmem:[%s9764_s6 + $0x160] sm:$0xff]  ;;  %v8008_v57 = vld [vmem:[%s9764_s6 + $0x158] sm:$0xff]  ;;  %s9768_s30 = sld [smem:[#allocation12_spill]]  ;;  %vm2291_vm7 = vcmask 523264   ;;  %vm2953_vm8 = vcmask 390144  }
  0x33   :  { %212 = vmatprep.subr.mxu0 %v7518_v2  ;;  %292 = vmatprep.subr.mxu1 %v7518_v2  ;;  %v8017_v58 = vld [vmem:[%s9764_s6 + $0x150] sm:$0xff]  ;;  %v8026_v59 = vld [vmem:[%s9764_s6 + $0x148] sm:$0xff]  ;;  %v8035_v60 = vld [vmem:[%s9764_s6 + $0x140] sm:$0xff]  ;;  %s9769_s1 = sld [smem:[#allocation13_spill]]  ;;  %vm3283_vm9 = vcmask 392192   ;;  %vm3746_vm10 = vcmask 257024  }
  0x34   :  { %213 = vmatpush2.msra.mxu0 %v7908_v43  ;;  %6019 = vmatprep.mubr.msk.f32.mxu0 %vm145_vm1, %v138_v44  ;;  %v106_v61 = vld [vmem:[%s9765_s3 + $0x28] sm:$0x1]  ;;  %v105_v62 = vld [vmem:[%s9765_s3 + $0x20] sm:$0x1]  ;;  %v8050_v63 = vld [vmem:[%s9764_s6 + $0x138] sm:$0xff]  ;;  %s9771_s2 = sld [smem:[#allocation15_spill]] }
  0x35   :  { %293 = vmatpush2.msra.mxu1 %v7918_v45  ;;  %215 = vmatmul.mubr.f32.vlgmr.msra.gmra.mxu0 %v135_v46  ;;  %v8119_v37 = vld [vmem:[%s9764_s6 + $0x1a8] sm:$0xff]  ;;  %v8134_v46 = vld [vmem:[%s9764_s6 + $0x1a0] sm:$0xff]  ;;  %s9773_s27 = sld [smem:[#allocation16_spill]]  ;;  %vm3783_vm11 = vcmask 261120   ;;  %vm4099_vm12 = vcmask 1043456   ;;  %vm4095_vm13 = vcmask 31744  }
  0x36   :  { %6021 = vmatprep.mubr.msk.f32.mxu1 %vm145_vm1, %v82_v47  ;;  %349 = vmatprep.subr.mxu0 %v7518_v2  ;;  %v307_v47 = vld [vmem:[%s9765_s3 + $0x20] sm:$0x3]  ;;  %vm5027_vm14 = vcmask 190464   ;;  %vm5063_vm15 = vcmask 195584  }
  0x37   :  { %468 = vmatprep.subr.mxu1 %v7518_v2  ;;  %295 = vmatmul.mubr.f32.vlgmr.msra.gmra.mxu1 %v81_v48 }
  0x38   :  { %350 = vmatpush1.msra.mxu0 %v7937_v49  ;;  %469 = vmatpush1.msra.mxu1 %v7654_v0  ;;  %v141_v0 = vrot.slane %v106_v61, 1 }
  0x39   :  { %351 = vmatprep.subr.mxu0 %v7518_v2  ;;  %470 = vmatprep.subr.mxu1 %v7518_v2 }
  0x3a   :  { %352 = vmatpush1.msra.mxu0 %v7945_v50  ;;  %471 = vmatpush1.msra.mxu1 %v7666_v3  ;;  %v8059_v3 = vld [vmem:[%s9764_s6 + $0x130] sm:$0xff] }
  0x3b   :  { %353 = vmatprep.subr.mxu0 %v7518_v2  ;;  %472 = vmatprep.subr.mxu1 %v7518_v2 }
  0x3c   :  { %354 = vmatpush1.msra.mxu0 %v7954_v51  ;;  %473 = vmatpush1.msra.mxu1 %v7680_v5  ;;  %v139_v5 = vrot.slane %v105_v62, 1 }
  0x3d   :  { %355 = vmatprep.subr.mxu0 %v7518_v2  ;;  %474 = vmatprep.subr.mxu1 %v7518_v2 }
  0x3e   :  { %356 = vmatpush1.msra.mxu0 %v7963_v52  ;;  %475 = vmatpush1.msra.mxu1 %v7694_v7  ;;  %v8068_v7 = vld [vmem:[%s9764_s6 + $0x128] sm:$0xff] }
  0x3f   :  { %357 = vmatprep.subr.mxu0 %v7518_v2  ;;  %476 = vmatprep.subr.mxu1 %v7518_v2 }
  0x40   :  { %358 = vmatpush1.msra.mxu0 %v7972_v53  ;;  %477 = vmatpush1.msra.mxu1 %v7708_v9  ;;  %v142_v9 = vsel %vm132_vm0, %v137_v38, %v141_v0 }
  0x41   :  { %359 = vmatprep.subr.mxu0 %v7518_v2  ;;  %478 = vmatprep.subr.mxu1 %v7518_v2 }
  0x42   :  { %360 = vmatpush1.msra.mxu0 %v7981_v54  ;;  %479 = vmatpush1.msra.mxu1 %v7722_v11  ;;  %v306_v11 = vld [vmem:[%s9765_s3 + $0x8] sm:$0xfc] }
  0x43   :  { %361 = vmatprep.subr.mxu0 %v7518_v2  ;;  %480 = vmatprep.subr.mxu1 %v7518_v2 }
  0x44   :  { %362 = vmatpush1.msra.mxu0 %v7990_v55  ;;  %481 = vmatpush1.msra.mxu1 %v7736_v13  ;;  %v140_v13 = vsel %vm132_vm0, %v134_v40, %v139_v5 }
  0x45   :  { %363 = vmatprep.subr.mxu0 %v7518_v2  ;;  %482 = vmatprep.subr.mxu1 %v7518_v2 }
  0x46   :  { %364 = vmatpush1.msra.mxu0 %v7999_v56  ;;  %483 = vmatpush1.msra.mxu1 %v7750_v15  ;;  %v305_v15 = vld [vmem:[%s9765_s3] sm:$0xfc] }
  0x47   :  { %365 = vmatprep.subr.mxu0 %v7518_v2  ;;  %484 = vmatprep.subr.mxu1 %v7518_v2  ;;  %v333_v31 = vrot.slane %v305_v15, 2  ;;  %v762_v15 = vld [vmem:[%s9766_s4] sm:$0xff] }
  0x48   :  { %366 = vmatpush1.msra.mxu0 %v8008_v57  ;;  %485 = vmatpush1.msra.mxu1 %v7764_v17  ;;  %v8091_v17 = vld [vmem:[%s9764_s6 + $0x120] sm:$0xff]  ;;  %s9772_s6 = sld [smem:[#allocation17_spill]] }
  0x49   :  { %367 = vmatprep.subr.mxu0 %v7518_v2  ;;  %486 = vmatprep.subr.mxu1 %v7518_v2  ;;  %v335_v48 = vsel %vm332_vm2, %v333_v31, %v334_v34 }
  0x4a   :  { %368 = vmatpush1.msra.mxu0 %v8017_v58  ;;  %487 = vmatpush1.msra.mxu1 %v7778_v19  ;;  %v8096_v19 = vld [vmem:[%s9765_s3 + $0x48] sm:$0xff] }
  0x4b   :  { %369 = vmatprep.subr.mxu0 %v7518_v2  ;;  %488 = vmatprep.subr.mxu1 %v7518_v2  ;;  %v456_v39 = vrot.slane %v8096_v19, 1 }
  0x4c   :  { %370 = vmatpush1.msra.mxu0 %v8026_v59  ;;  %489 = vmatpush1.msra.mxu1 %v7792_v21  ;;  %v6049_v21 = vld [vmem:[%s9765_s3 + $0x38] sm:$0xfe] }
  0x4d   :  { %371 = vmatprep.subr.mxu0 %v7518_v2  ;;  %490 = vmatprep.subr.mxu1 %v7518_v2  ;;  %v455_v38 = vrot.slane %v6049_v21, 1 }
  0x4e   :  { %372 = vmatpush1.msra.mxu0 %v8035_v60  ;;  %491 = vmatpush1.msra.mxu1 %v7806_v23  ;;  %v336_v23 = vrot.slane %v306_v11, 2  ;;  %v764_v11 = vld [vmem:[%s9766_s4 + $0x10] sm:$0xff] }
  0x4f   :  { %373 = vmatprep.subr.mxu0 %v7518_v2  ;;  %492 = vmatprep.subr.mxu1 %v7518_v2 }
  0x50   :  { %374 = vmatpush1.msra.mxu0 %v8050_v63  ;;  %493 = vmatpush1.msra.mxu1 %v7820_v25  ;;  %v337_v25 = vrot.slane %v7851_v30, 2 }
  0x51   :  { %375 = vmatprep.subr.mxu0 %v7518_v2  ;;  %494 = vmatprep.subr.mxu1 %v7518_v2 }
  0x52   :  { %376 = vmatpush1.msra.mxu0 %v8059_v3  ;;  %495 = vmatpush1.msra.mxu1 %v7834_v27  ;;  %v8107_v27 = vld [vmem:[%s9765_s3 + $0x40] sm:$0xff] }
  0x53   :  { %377 = vmatprep.subr.mxu0 %v7518_v2  ;;  %496 = vmatprep.subr.mxu1 %v7518_v2  ;;  %v453_v44 = vrot.slane %v8107_v27, 1 }
  0x54   :  { %378 = vmatpush1.msra.mxu0 %v8068_v7  ;;  %497 = vmatpush1.msra.mxu1 %v7846_v29  ;;  %v6048_v29 = vld [vmem:[%s9765_s3 + $0x30] sm:$0xfe] }
  0x55   :  { %6020 = vmatprep.mubr.msk.f32.mxu0 %vm145_vm1, %v142_v9  ;;  %379 = vmatprep.subr.mxu0 %v7518_v2  ;;  %v452_v40 = vrot.slane %v6048_v29, 1  ;;  %v765_v9 = vld [vmem:[%s9766_s4 + $0x18] sm:$0xff] }
  0x56   :  { %498 = vmatprep.subr.mxu1 %v7518_v2  ;;  %220 = vmatmul.mubr.f32.gmra.mxu0 %v140_v13  ;;  %v763_v13 = vld [vmem:[%s9766_s4 + $0x8] sm:$0xff] }
  0x57   :  { %380 = vmatpush1.msra.mxu0 %v8091_v17  ;;  %499 = vmatpush1.msra.mxu1 %v7878_v35  ;;  %v308_v35 = vld [vmem:[%s9765_s3 + $0x28] sm:$0x3]  ;;  %v454_v62 = vsel %vm132_vm0, %v452_v40, %v453_v44 }
  0x58   :  { %6022 = vmatprep.mubr.msk.f32.mxu1 %vm145_vm1, %v7851_v30  ;;  %409 = vmatprep.subr.mxu0 %v7518_v2  ;;  %v338_v30 = vsel %vm332_vm2, %v336_v23, %v337_v25  ;;  %v341_v61 = vrot.slane %v308_v35, 2 }
  0x59   :  { %528 = vmatprep.subr.mxu1 %v7518_v2  ;;  %300 = vmatmul.mubr.f32.gmra.mxu1 %v7866_v33  ;;  %v457_v33 = vsel %vm132_vm0, %v455_v38, %v456_v39 }
  0x5a   :  { %410 = vmatpush2.msra.mxu0 %v8119_v37  ;;  %529 = vmatpush2.msra.mxu1 %v7894_v41  ;;  %v339_v41 = vrot.slane %v307_v47, 2  ;;  %v342_v0 = vsel %vm332_vm2, %v337_v25, %v341_v61 }
  0x5b   :  { %411 = vmatprep.subr.mxu0 %v7518_v2  ;;  %530 = vmatprep.subr.mxu1 %v7518_v2 }
  0x5c   :  { %412 = vmatpush2.msra.mxu0 %v8134_v46  ;;  %6041 = vmatprep.mubr.msk.f32.mxu0 %vm145_vm1, %v338_v30  ;;  %v340_v5 = vsel %vm332_vm2, %v334_v34, %v339_v41 }
  0x5d   :  { %531 = vmatpush2.msra.mxu1 %v7908_v43  ;;  %414 = vmatmul.mubr.f32.vlgmr.msra.gmra.mxu0 %v335_v48  ;;  %v6045_v43 = vld [vmem:[%s9765_s3 + $0x38] sm:$0xff]  ;;  %v6043_v48 = vld [vmem:[%s9767_s0] ss:$0 sm:$0xff]  ;;  %s9770_s0 = sld [smem:[#allocation14_spill]] }
  0x5e   :  { %6052 = vmatprep.mubr.msk.f32.mxu1 %vm145_vm1, %v457_v33  ;;  %548 = vmatprep.subr.mxu0 %v7518_v2 }
  0x5f   :  { %647 = vmatprep.subr.mxu1 %v7518_v2  ;;  %533 = vmatmul.mubr.f32.vlgmr.msra.gmra.mxu1 %v454_v62 }
  0x60   :  { %549 = vmatpush1.msra.mxu0 %v7659_v1  ;;  %648 = vmatpush1.msra.mxu1 %v7937_v49  ;;  %v6051_v1 = vld [vmem:[%s9765_s3 + $0x58] sm:$0x1]  ;;  %v6044_v49 = vld [vmem:[%s9765_s3 + $0x30] sm:$0xff] }
  0x61   :  { %550 = vmatprep.subr.mxu0 %v7518_v2  ;;  %649 = vmatprep.subr.mxu1 %v7518_v2 }
  0x62   :  { %6042 = vmatprep.mubr.msk.f32.mxu0 %vm145_vm1, %v342_v0  ;;  %551 = vmatpush1.msra.mxu0 %v7671_v4  ;;  %v6050_v4 = vld [vmem:[%s9765_s3 + $0x50] sm:$0x1] }
  0x63   :  { %650 = vmatpush1.msra.mxu1 %v7945_v50  ;;  %419 = vmatmul.mubr.f32.gmra.mxu0 %v340_v5 }
  0x64   :  { %552 = vmatprep.subr.mxu0 %v7518_v2  ;;  %651 = vmatprep.subr.mxu1 %v7518_v2 }
  0x65   :  { %553 = vmatpush1.msra.mxu0 %v7685_v6  ;;  %652 = vmatpush1.msra.mxu1 %v7954_v51  ;;  %v460_v6 = vrot.slane %v6051_v1, 1 }
  0x66   :  { %554 = vmatprep.subr.mxu0 %v7518_v2  ;;  %653 = vmatprep.subr.mxu1 %v7518_v2 }
  0x67   :  { %555 = vmatpush1.msra.mxu0 %v7699_v8  ;;  %654 = vmatpush1.msra.mxu1 %v7963_v52  ;;  %v458_v8 = vrot.slane %v6050_v4, 1 }
  0x68   :  { %556 = vmatprep.subr.mxu0 %v7518_v2  ;;  %655 = vmatprep.subr.mxu1 %v7518_v2 }
  0x69   :  { %557 = vmatpush1.msra.mxu0 %v7713_v10  ;;  %656 = vmatpush1.msra.mxu1 %v7972_v53  ;;  %v6057_v10 = vld [vmem:[%s9765_s3 + $0x38] sm:$0xfc]  ;;  %v776_v53 = vld [vmem:[%s9766_s4 + $0x70] sm:$0xff] }
  0x6a   :  { %558 = vmatprep.subr.mxu0 %v7518_v2  ;;  %657 = vmatprep.subr.mxu1 %v7518_v2 }
  0x6b   :  { %559 = vmatpush1.msra.mxu0 %v7727_v12  ;;  %658 = vmatpush1.msra.mxu1 %v7981_v54  ;;  %v461_v12 = vsel %vm132_vm0, %v456_v39, %v460_v6  ;;  %v775_v54 = vld [vmem:[%s9766_s4 + $0x68] sm:$0xff] }
  0x6c   :  { %560 = vmatprep.subr.mxu0 %v7518_v2  ;;  %659 = vmatprep.subr.mxu1 %v7518_v2 }
  0x6d   :  { %561 = vmatpush1.msra.mxu0 %v7741_v14  ;;  %660 = vmatpush1.msra.mxu1 %v7990_v55  ;;  %v6056_v14 = vld [vmem:[%s9765_s3 + $0x30] sm:$0xfc]  ;;  %v774_v55 = vld [vmem:[%s9766_s4 + $0x60] sm:$0xff] }
  0x6e   :  { %562 = vmatprep.subr.mxu0 %v7518_v2  ;;  %661 = vmatprep.subr.mxu1 %v7518_v2 }
  0x6f   :  { %563 = vmatpush1.msra.mxu0 %v7755_v16  ;;  %662 = vmatpush1.msra.mxu1 %v7999_v56  ;;  %v6059_v16 = vld [vmem:[%s9765_s3 + $0x58] sm:$0x3] }
  0x70   :  { %564 = vmatprep.subr.mxu0 %v7518_v2  ;;  %663 = vmatprep.subr.mxu1 %v7518_v2  ;;  %v773_v56 = vld [vmem:[%s9766_s4 + $0x58] sm:$0xff] }
  0x71   :  { %565 = vmatpush1.msra.mxu0 %v7769_v18  ;;  %664 = vmatpush1.msra.mxu1 %v8008_v57  ;;  %v459_v18 = vsel %vm132_vm0, %v453_v44, %v458_v8  ;;  %v772_v57 = vld [vmem:[%s9766_s4 + $0x50] sm:$0xff]  ;;  %vm5379_vm0 = vcmask 1042432  }
  0x72   :  { %566 = vmatprep.subr.mxu0 %v7518_v2  ;;  %665 = vmatprep.subr.mxu1 %v7518_v2 }
  0x73   :  { %567 = vmatpush1.msra.mxu0 %v7783_v20  ;;  %666 = vmatpush1.msra.mxu1 %v8017_v58  ;;  %v634_v20 = vrot.slane %v6057_v10, 2  ;;  %v771_v58 = vld [vmem:[%s9766_s4 + $0x48] sm:$0xff] }
  0x74   :  { %568 = vmatprep.subr.mxu0 %v7518_v2  ;;  %667 = vmatprep.subr.mxu1 %v7518_v2 }
  0x75   :  { %569 = vmatpush1.msra.mxu0 %v7797_v22  ;;  %668 = vmatpush1.msra.mxu1 %v8026_v59  ;;  %v635_v22 = vrot.slane %v8096_v19, 2  ;;  %v770_v59 = vld [vmem:[%s9766_s4 + $0x40] sm:$0xff] }
  0x76   :  { %570 = vmatprep.subr.mxu0 %v7518_v2  ;;  %669 = vmatprep.subr.mxu1 %v7518_v2 }
  0x77   :  { %571 = vmatpush1.msra.mxu0 %v7811_v24  ;;  %670 = vmatpush1.msra.mxu1 %v8035_v60  ;;  %v631_v24 = vrot.slane %v6056_v14, 2  ;;  %v769_v60 = vld [vmem:[%s9766_s4 + $0x38] sm:$0xff] }
  0x78   :  { %572 = vmatprep.subr.mxu0 %v7518_v2  ;;  %671 = vmatprep.subr.mxu1 %v7518_v2 }
  0x79   :  { %573 = vmatpush1.msra.mxu0 %v7825_v26  ;;  %672 = vmatpush1.msra.mxu1 %v8050_v63  ;;  %v632_v26 = vrot.slane %v8107_v27, 2  ;;  %v768_v63 = vld [vmem:[%s9766_s4 + $0x30] sm:$0xff] }
  0x7a   :  { %574 = vmatprep.subr.mxu0 %v7518_v2  ;;  %673 = vmatprep.subr.mxu1 %v7518_v2 }
  0x7b   :  { %575 = vmatpush1.msra.mxu0 %v7839_v28  ;;  %674 = vmatpush1.msra.mxu1 %v8059_v3  ;;  %v639_v28 = vrot.slane %v6059_v16, 2  ;;  %v633_v50 = vsel %vm332_vm2, %v631_v24, %v632_v26  ;;  %v767_v3 = vld [vmem:[%s9766_s4 + $0x28] sm:$0xff] }
  0x7c   :  { %576 = vmatprep.subr.mxu0 %v7518_v2  ;;  %675 = vmatprep.subr.mxu1 %v7518_v2 }
  0x7d   :  { %577 = vmatpush1.msra.mxu0 %v7861_v32  ;;  %676 = vmatpush1.msra.mxu1 %v8068_v7  ;;  %v6058_v32 = vld [vmem:[%s9765_s3 + $0x50] sm:$0x3]  ;;  %v766_v7 = vld [vmem:[%s9766_s4 + $0x20] sm:$0xff] }
  0x7e   :  { %578 = vmatprep.subr.mxu0 %v7518_v2  ;;  %677 = vmatprep.subr.mxu1 %v7518_v2  ;;  %v637_v51 = vrot.slane %v6058_v32, 2 }
  0x7f   :  { %6053 = vmatprep.mubr.msk.f32.mxu1 %vm145_vm1, %v461_v12  ;;  %579 = vmatpush1.msra.mxu0 %v7883_v36  ;;  %v636_v36 = vsel %vm332_vm2, %v634_v20, %v635_v22 }
  0x80   :  { %678 = vmatpush1.msra.mxu1 %v8091_v17  ;;  %608 = vmatprep.subr.mxu0 %v7518_v2  ;;  %v638_v52 = vsel %vm332_vm2, %v632_v26, %v637_v51 }
  0x81   :  { %538 = vmatmul.mubr.f32.gmra.mxu1 %v459_v18  ;;  %707 = vmatprep.subr.mxu1 %v7518_v2 }
  0x82   :  { %609 = vmatpush2.msra.mxu0 %v7899_v42  ;;  %708 = vmatpush2.msra.mxu1 %v8119_v37  ;;  %v640_v42 = vsel %vm332_vm2, %v635_v22, %v639_v28  ;;  %vm5680_vm2 = vcmask 57344  }
  0x83   :  { %610 = vmatprep.subr.mxu0 %v7518_v2  ;;  %709 = vmatprep.subr.mxu1 %v7518_v2 }
  0x84   :  { %611 = vmatpush2.msra.mxu0 %v7918_v45  ;;  %6054 = vmatprep.mubr.msk.f32.mxu0 %vm145_vm1, %v6045_v43  ;;  %v777_v45 = vld [vmem:[%s9766_s4 + $0x78] sm:$0xff] }
  0x85   :  { %710 = vmatpush2.msra.mxu1 %v8134_v46  ;;  %6060 = vmatprep.mubr.msk.f32.mxu1 %vm145_vm1, %v636_v36 }
  0x86   :  { %613 = vmatmul.mubr.f32.vlgmr.msra.gmra.mxu0 %v6044_v49  ;;  %712 = vmatmul.mubr.f32.vlgmr.msra.gmra.mxu1 %v633_v50 }
  0x87   :  { %6055 = vmatprep.mubr.msk.f32.mxu0 %vm145_vm1, %v8096_v19  ;;  %6061 = vmatprep.mubr.msk.f32.mxu1 %vm145_vm1, %v640_v42 }
  0x88   :  { %6641 = vmatprep.subr.mxu0 %v7518_v2  ;;  %6676 = vmatprep.subr.mxu1 %v7518_v2 }
  0x89   :  { %6642 = vmatpush3.msra.mxu0 %v777_v45  ;;  %6677 = vmatpush3.msra.mxu1 %v777_v45 }
  0x8a   :  { %618 = vmatmul.mubr.f32.gmra.mxu0 %v8107_v27  ;;  %717 = vmatmul.mubr.f32.gmra.mxu1 %v638_v52 }
  0x8b   :  { %6643 = vmatprep.subr.mxu0 %v7518_v2  ;;  %6678 = vmatprep.subr.mxu1 %v7518_v2 }
  0x8c   :  { %6644 = vmatpush3.msra.mxu0 %v776_v53  ;;  %6679 = vmatpush3.msra.mxu1 %v776_v53 }
  0x8d   :  { %6645 = vmatprep.subr.mxu0 %v7518_v2  ;;  %6680 = vmatprep.subr.mxu1 %v7518_v2 }
  0x8e   :  { %6646 = vmatpush3.msra.mxu0 %v775_v54  ;;  %6681 = vmatpush3.msra.mxu1 %v775_v54 }
  0x8f   :  { %6647 = vmatprep.subr.mxu0 %v7518_v2  ;;  %6682 = vmatprep.subr.mxu1 %v7518_v2 }
  0x90   :  { %6648 = vmatpush3.msra.mxu0 %v774_v55  ;;  %6683 = vmatpush3.msra.mxu1 %v774_v55 }
  0x91   :  { %6649 = vmatprep.subr.mxu0 %v7518_v2  ;;  %6684 = vmatprep.subr.mxu1 %v7518_v2 }
  0x92   :  { %6650 = vmatpush3.msra.mxu0 %v773_v56  ;;  %6685 = vmatpush3.msra.mxu1 %v773_v56 }
  0x93   :  { %6651 = vmatprep.subr.mxu0 %v7518_v2  ;;  %6686 = vmatprep.subr.mxu1 %v7518_v2 }
  0x94   :  { %6652 = vmatpush3.msra.mxu0 %v772_v57  ;;  %6687 = vmatpush3.msra.mxu1 %v772_v57 }
  0x95   :  { %6653 = vmatprep.subr.mxu0 %v7518_v2  ;;  %6688 = vmatprep.subr.mxu1 %v7518_v2 }
  0x96   :  { %6654 = vmatpush3.msra.mxu0 %v771_v58  ;;  %6689 = vmatpush3.msra.mxu1 %v771_v58 }
  0x97   :  { %6655 = vmatprep.subr.mxu0 %v7518_v2  ;;  %6690 = vmatprep.subr.mxu1 %v7518_v2 }
  0x98   :  { %6656 = vmatpush3.msra.mxu0 %v770_v59  ;;  %6691 = vmatpush3.msra.mxu1 %v770_v59 }
  0x99   :  { %6657 = vmatprep.subr.mxu0 %v7518_v2  ;;  %6692 = vmatprep.subr.mxu1 %v7518_v2 }
  0x9a   :  { %6658 = vmatpush3.msra.mxu0 %v769_v60  ;;  %6693 = vmatpush3.msra.mxu1 %v769_v60 }
  0x9b   :  { %6659 = vmatprep.subr.mxu0 %v7518_v2  ;;  %6694 = vmatprep.subr.mxu1 %v7518_v2 }
  0x9c   :  { %6660 = vmatpush3.msra.mxu0 %v768_v63  ;;  %6695 = vmatpush3.msra.mxu1 %v768_v63 }
  0x9d   :  { %6661 = vmatprep.subr.mxu0 %v7518_v2  ;;  %6696 = vmatprep.subr.mxu1 %v7518_v2 }
  0x9e   :  { %6662 = vmatpush3.msra.mxu0 %v767_v3  ;;  %6697 = vmatpush3.msra.mxu1 %v767_v3 }
  0x9f   :  { %6663 = vmatprep.subr.mxu0 %v7518_v2  ;;  %6698 = vmatprep.subr.mxu1 %v7518_v2 }
  0xa0   :  { %6664 = vmatpush3.msra.mxu0 %v766_v7  ;;  %6699 = vmatpush3.msra.mxu1 %v766_v7 }
  0xa1   :  { %6665 = vmatprep.subr.mxu0 %v7518_v2  ;;  %6700 = vmatprep.subr.mxu1 %v7518_v2 }
  0xa2   :  { %6666 = vmatpush3.msra.mxu0 %v765_v9  ;;  %6701 = vmatpush3.msra.mxu1 %v765_v9 }
  0xa3   :  { %6667 = vmatprep.subr.mxu0 %v7518_v2  ;;  %6702 = vmatprep.subr.mxu1 %v7518_v2 }
  0xa4   :  { %6668 = vmatpush3.msra.mxu0 %v764_v11  ;;  %6703 = vmatpush3.msra.mxu1 %v764_v11 }
  0xa5   :  { %6669 = vmatprep.subr.mxu0 %v7518_v2  ;;  %6704 = vmatprep.subr.mxu1 %v7518_v2 }
  0xa6   :  { %6670 = vmatpush3.msra.mxu0 %v763_v13  ;;  %6673 = vmatprep.mubr.msk.f32.mxu0 %vm7519_vm3, %v7518_v2 }
  0xa7   :  { %6671 = vmatprep.subr.mxu0 %v7518_v2  ;;  %6705 = vmatpush3.msra.mxu1 %v763_v13 }
  0xa8   :  { %6672 = vmatpush3.msra.mxu0 %v762_v15  ;;  %6706 = vmatprep.subr.mxu1 %v7518_v2 }
  0xa9   :  { %6707 = vmatpush3.msra.mxu1 %v762_v15  ;;  %6708 = vmatprep.mubr.msk.f32.mxu1 %vm7519_vm3, %v7518_v2 }
  0xaa   :  { %6711 = vmatprep.subr.mxu0 %v7518_v2  ;;  %6716 = vmatprep.subr.mxu1 %v7518_v2 }
  0xf5   :  { %v216_v17 = vpop.f32.mrf.mxu0 }
  0xf7   :  { %v296_v19 = vpop.f32.mrf.mxu1  ;;  %v218_v21 = vpop.f32.mrf.mxu0 }
  0xf8   :  { %v297_v23 = vadd.f32 %v296_v19, %v216_v17 }
  0xf9   :  { %v298_v25 = vpop.f32.mrf.mxu1 }
 0x116   :  { %v221_v27 = vpop.f32.mrf.mxu0 }
 0x118   :  { %v223_v29 = vpop.f32.mrf.mxu0 }
 0x119   :  { %v301_v31 = vpop.f32.mrf.mxu1 }
 0x11a   :  { %v302_v46 = vadd.f32 %v301_v31, %v221_v27 }
 0x11b   :  { %v303_v34 = vpop.f32.mrf.mxu1 }
 0x11d   :  { %v415_v37 = vpop.f32.mrf.mxu0 }
 0x11e   :  { %v424_v47 = vadd.f32 %v415_v37, %v297_v23 }
 0x11f   :  { %v534_v38 = vpop.f32.mrf.mxu1  ;;  %v417_v39 = vpop.f32.mrf.mxu0 }
 0x120   :  { %v433_v61 = vadd.f32 %v6043_v48, %v424_v47 }
 0x121   :  { %v536_v40 = vpop.f32.mrf.mxu1 }
 0x122   :  { %v8364_v0 = vmax.f32 %v433_v61, 0.0  ;;  %v925_v40 = vld [vmem:[%s9768_s30] sm:$0xff] }
 0x123   :  { %v420_v44 = vpop.f32.mrf.mxu0 }
 0x124   :  { %v425_v30 = vadd.f32 %v420_v44, %v302_v46  ;;  %v735_v8 = vmul.f32 %v8364_v0, %v8364_v0 }
 0x125   :  { %v422_v35 = vpop.f32.mrf.mxu0 }
 0x126   :  { %v434_v33 = vadd.f32 %v6043_v48, %v425_v30 }
 0x128   :  { %v8362_v62 = vmax.f32 %v434_v33, 0.0 }
 0x12a   :  { %v736_v1 = vmul.f32 %v8362_v62, %v8362_v62  ;;  %v728_v10 = vadd.f32 %v8362_v62, %v8364_v0 }
 0x12c   :  { %v737_v18 = vadd.f32 %v736_v1, %v735_v8  ;;  %v729_v26 = vrot.slane %v728_v10, 4 }
 0x12e   :  { %v738_v49 = vrot.slane %v737_v18, 4  ;;  %v730_v51 = vadd.f32 %v729_v26, %v728_v10 }
 0x130   :  { %v739_v45 = vadd.f32 %v738_v49, %v737_v18  ;;  %v731_v54 = vrot.slane %v730_v51, 2 }
 0x132   :  { %v740_v58 = vrot.slane %v739_v45, 2  ;;  %v732_v63 = vadd.f32 %v731_v54, %v730_v51  ;;  %v8438_v51 = vld [vmem:[%s9770_s0 + $0xf8] sm:$0xff]  ;;  %v8464_v54 = vld [vmem:[%s9770_s0 + $0xe8] sm:$0xff] }
 0x134   :  { %v741_v9 = vadd.f32 %v740_v58, %v739_v45  ;;  %v733_v15 = vrot.slane %v732_v63, 1  ;;  %v8459_v45 = vld [vmem:[%s9770_s0 + $0x68] sm:$0xff]  ;;  %v8492_v58 = vld [vmem:[%s9770_s0 + $0xd8] sm:$0xff] }
 0x136   :  { %v742_v21 = vrot.slane %v741_v9, 1  ;;  %v734_v27 = vadd.f32 %v733_v15, %v732_v63  ;;  %v8515_v63 = vld [vmem:[%s9770_s0 + $0x48] sm:$0xff]  ;;  %v8557_v15 = vld [vmem:[%s9770_s0 + $0x30] sm:$0xff] }
 0x138   :  { %v743_v37 = vadd.f32 %v742_v21, %v741_v9  ;;  %v8534_v9 = vld [vmem:[%s9770_s0 + $0xc0] sm:$0xff]  ;;  %v8576_v21 = vld [vmem:[%s9770_s0 + $0xa8] sm:$0xff] }
 0x141   :  { %v539_v41 = vpop.f32.mrf.mxu1 }
 0x143   :  { %v541_v5 = vpop.f32.mrf.mxu1 }
 0x146   :  { %v614_v4 = vpop.f32.mrf.mxu0  ;;  %v713_v6 = vpop.f32.mrf.mxu1 }
 0x147   :  { %v615_v12 = vadd.f32 %v614_v4, %v534_v38  ;;  %v8394_v4 = vld [vmem:[%s9769_s1] sm:$0xff] }
 0x148   :  { %v616_v14 = vpop.f32.mrf.mxu0  ;;  %v715_v16 = vpop.f32.mrf.mxu1 }
 0x149   :  { %v722_v20 = vadd.f32 %v713_v6, %v615_v12  ;;  %v8399_v6 = vld [vmem:[%s9769_s1 + $0x10] sm:$0xff]  ;;  %v1073_v12 = vlaneseq }
 0x14a   :  { %v619_v22 = vpop.f32.mrf.mxu0  ;;  %v718_v24 = vpop.f32.mrf.mxu1 }
 0x14b   :  { %v724_v28 = vadd.f32 %v6043_v48, %v722_v20  ;;  %v620_v32 = vadd.f32 %v619_v22, %v539_v41  ;;  %v1074_v14 = vshrl.u32 %v1073_v12, 7 }
 0x14c   :  { %v621_v43 = vpop.f32.mrf.mxu0  ;;  %v720_v36 = vpop.f32.mrf.mxu1 }
 0x14d   :  { %v723_v50 = vadd.f32 %v718_v24, %v620_v32  ;;  %v8372_v42 = vmax.f32 %v724_v28, 0.0  ;;  %v8405_v16 = vsub.s32 0, %v1074_v14 }
 0x14f   :  { %v725_v52 = vadd.f32 %v6043_v48, %v723_v50  ;;  %v752_v55 = vmul.f32 %v8372_v42, %v8372_v42  ;;  %v6067_v50 = vld [vmem:[%s9769_s1 + $0x18] sm:$0x3] }
 0x151   :  { %v8374_v53 = vmax.f32 %v725_v52, 0.0  ;;  %v8450_v52 = vld [vmem:[%s9770_s0 + $0xf0] sm:$0xff] }
 0x153   :  { %v744_v56 = vadd.f32 %v8374_v53, %v8372_v42  ;;  %v753_v57 = vmul.f32 %v8374_v53, %v8374_v53 }
 0x155   :  { %v745_v59 = vrot.slane %v744_v56, 4  ;;  %v754_v60 = vadd.f32 %v753_v57, %v752_v55  ;;  %v8473_v55 = vld [vmem:[%s9770_s0 + $0x60] sm:$0xff]  ;;  %v8487_v57 = vld [vmem:[%s9770_s0 + $0x58] sm:$0xff] }
 0x157   :  { %v746_v3 = vadd.f32 %v745_v59, %v744_v56  ;;  %v755_v7 = vrot.slane %v754_v60, 4  ;;  %v8478_v56 = vld [vmem:[%s9770_s0 + $0xe0] sm:$0xff]  ;;  %v8501_v59 = vld [vmem:[%s9770_s0 + $0x50] sm:$0xff] }
 0x159   :  { %v747_v11 = vrot.slane %v746_v3, 2  ;;  %v756_v13 = vadd.f32 %v755_v7, %v754_v60  ;;  %v8506_v60 = vld [vmem:[%s9770_s0 + $0xd0] sm:$0xff]  ;;  %v8529_v7 = vld [vmem:[%s9770_s0 + $0x40] sm:$0xff] }
 0x15b   :  { %v748_v17 = vadd.f32 %v747_v11, %v746_v3  ;;  %v757_v19 = vrot.slane %v756_v13, 2  ;;  %v8520_v3 = vld [vmem:[%s9770_s0 + $0xc8] sm:$0xff]  ;;  %v8543_v11 = vld [vmem:[%s9770_s0 + $0x38] sm:$0xff] }
 0x15d   :  { %v749_v23 = vrot.slane %v748_v17, 1  ;;  %v758_v25 = vadd.f32 %v757_v19, %v756_v13  ;;  %v8548_v13 = vld [vmem:[%s9770_s0 + $0xb8] sm:$0xff]  ;;  %v8571_v19 = vld [vmem:[%s9770_s0 + $0x28] sm:$0xff] }
 0x15f   :  { %v750_v29 = vadd.f32 %v749_v23, %v748_v17  ;;  %v759_v31 = vrot.slane %v758_v25, 1  ;;  %v8562_v17 = vld [vmem:[%s9770_s0 + $0xb0] sm:$0xff]  ;;  %v8585_v23 = vld [vmem:[%s9770_s0 + $0x20] sm:$0xff] }
 0x161   :  { %v751_v34 = vadd.f32 %v750_v29, %v734_v27  ;;  %v760_v38 = vadd.f32 %v759_v31, %v758_v25  ;;  %v8590_v25 = vld [vmem:[%s9770_s0 + $0xa0] sm:$0xff]  ;;  %v8599_v27 = vld [vmem:[%s9770_s0 + $0x18] sm:$0xff]  ;;  %v8613_v31 = vld [vmem:[%s9770_s0 + $0x10] sm:$0xff] }
 0x162   :  { %v8604_v29 = vld [vmem:[%s9770_s0 + $0x98] sm:$0xff] }
 0x163   :  { %6674 = vmatmul.mubr.f32.vlgmr.msra.gmra.mxu0 %v751_v34  ;;  %v761_v39 = vadd.f32 %v760_v38, %v743_v37  ;;  %v8618_v34 = vld [vmem:[%s9770_s0 + $0x90] sm:$0xff]  ;;  %v8627_v37 = vld [vmem:[%s9770_s0 + $0x8] sm:$0xff] }
 0x164   :  { %6713 = vmatprep.mubr.msk.f32.mxu0 %vm7519_vm3, %v7518_v2  ;;  %6712 = vmatpush3.msra.mxu0 %v925_v40  ;;  %v8632_v38 = vld [vmem:[%s9770_s0 + $0x88] sm:$0xff] }
 0x165   :  { %6709 = vmatmul.mubr.f32.vlgmr.msra.gmra.mxu1 %v761_v39  ;;  %v8641_v39 = vld [vmem:[%s9770_s0] sm:$0xff] }
 0x166   :  { %6718 = vmatprep.mubr.msk.f32.mxu1 %vm7519_vm3, %v7518_v2  ;;  %6717 = vmatpush3.msra.mxu1 %v925_v40  ;;  %v8646_v40 = vld [vmem:[%s9770_s0 + $0x80] sm:$0xff] }
 0x223   :  { %v844_v44 = vpop.f32.mrf.mxu0 }
 0x224   :  { %v848_v35 = vmul.f32 0.001953125, %v844_v44 }
 0x225   :  { %v6675_v46 = vpop.f32.mrf.mxu0  ;;  %v915_v30 = vpop.f32.mrf.mxu1 }
 0x226   :  { %v920_v47 = vmul.f32 %v848_v35, %v848_v35  ;;  %v919_v48 = vmul.f32 0.001953125, %v915_v30  ;;  %6714 = vmatmul.mubr.msk.f32.vlgmr.msra.gmra.mxu0 %vm926_vm4, %v848_v35 }
 0x227   :  { %v6710_v33 = vpop.f32.mrf.mxu1  ;;  %6725 = vmatprep.mubr.msk.f32.mxu0 %vm145_vm1, %v8394_v4 }
 0x228   :  { %v921_v61 = vsub.f32 %v919_v48, %v920_v47 }
 0x22a   :  { %v922_v41 = vmax.f32 %v921_v61, 0.0  ;;  %v1448_v61 = vld [vmem:[%s9769_s1 + $0x8] sm:$0x3] }
 0x22c   :  { %v923_v5 = vadd.f32 1e-05, %v922_v41  ;;  %v6089_v41 = vld [vmem:[%s9769_s1 + $0x18] sm:$0x3] }
 0x22e   :  { %7488 = vrsqrt.f32 %v923_v5 }
 0x23b   :  { %v7489_v1 = vpop.eup %7488 }
 0x23c   :  { %6719 = vmatmul.mubr.msk.f32.vlgmr.msra.gmra.mxu1 %vm926_vm4, %v7489_v1 }
 0x23d   :  { %6732 = vmatprep.mubr.msk.f32.mxu1 %vm145_vm1, %v8399_v6 }
 0x2e6   :  { %v996_v8 = vpop.f32.mrf.mxu0 }
 0x2e7   :  { %v8408_v18 = vrot.slane %v996_v8, %v8405_v16 }
 0x2e8   :  { %v6715_v10 = vpop.f32.mrf.mxu0 }
 0x2e9   :  { %v1078_v22 = vsub.f32 %v8362_v62, %v8408_v18  ;;  %v1443_v24 = vsub.f32 %v8372_v42, %v8408_v18  ;;  %v1077_v32 = vsub.f32 %v8364_v0, %v8408_v18  ;;  %v1086_v62 = vld [vmem:[%s9769_s1 + $0x8] sm:$0x3]  ;;  %v8433_v0 = vld [vmem:[%s9770_s0 + $0x78] sm:$0xff]  ;;  %v8445_v42 = vld [vmem:[%s9770_s0 + $0x70] sm:$0xff]  ;;  %v1444_v44 = vsub.f32 %v8374_v53, %v8408_v18 }
 0x2fc   :  { %v1069_v20 = vpop.f32.mrf.mxu1 }
 0x2fd   :  { %v8415_v26 = vrot.slane %v1069_v20, %v8405_v16 }
 0x2fe   :  { %v6720_v28 = vpop.f32.mrf.mxu1 }
 0x2ff   :  { %v1084_v43 = vmul.f32 %v8415_v26, %v1078_v22  ;;  %v8421_v36 = vmul.f32 %v1443_v24, %v8415_v26  ;;  %v1083_v49 = vmul.f32 %v8415_v26, %v1077_v32  ;;  %v1446_v35 = vmul.f32 %v1444_v44, %v8415_v26  ;;  %v8746_v26 = vld [vmem:[%s9771_s2 + $0x98] sm:$0xff]  ;;  %v8751_v28 = vld [vmem:[%s9771_s2 + $0x48] sm:$0xff]  ;;  %v8756_v32 = vld [vmem:[%s9771_s2 + $0x90] sm:$0xff] }
 0x301   :  { %6721 = vmatprep.subr.mxu0 %v1084_v43  ;;  %6728 = vmatprep.subr.mxu1 %v1084_v43 }
 0x302   :  { %6722 = vmatpush3.msra.mxu0 %v1084_v43  ;;  %6729 = vmatpush3.msra.mxu1 %v1084_v43  ;;  %v8761_v43 = vld [vmem:[%s9771_s2 + $0x40] sm:$0xff] }
 0x303   :  { %6723 = vmatprep.subr.mxu0 %v1083_v49  ;;  %6730 = vmatprep.subr.mxu1 %v1083_v49 }
 0x304   :  { %6724 = vmatpush3.msra.mxu0 %v1083_v49  ;;  %6731 = vmatpush3.msra.mxu1 %v1083_v49  ;;  %v8775_v49 = vld [vmem:[%s9771_s2 + $0x38] sm:$0xff] }
 0x305   :  { %6726 = vmatmul.mubr.msk.f32.vlgmr.msra.gmra.mxu0 %vm145_vm1, %v1086_v62  ;;  %6733 = vmatmul.mubr.msk.f32.vlgmr.msra.gmra.mxu1 %vm145_vm1, %v6067_v50  ;;  %v8784_v62 = vld [vmem:[%s9771_s2 + $0x80] sm:$0xff]  ;;  %v8789_v50 = vld [vmem:[%s9771_s2 + $0x30] sm:$0xff] }
 0x306   :  { %6735 = vmatprep.subr.mxu0 %v8433_v0  ;;  %6770 = vmatprep.subr.mxu1 %v8438_v51 }
 0x307   :  { %6736 = vmatpush3.msra.mxu0 %v8433_v0  ;;  %6771 = vmatpush3.msra.mxu1 %v8438_v51 }
 0x308   :  { %6737 = vmatprep.subr.mxu0 %v8445_v42  ;;  %6772 = vmatprep.subr.mxu1 %v8450_v52 }
 0x309   :  { %6738 = vmatpush3.msra.mxu0 %v8445_v42  ;;  %6773 = vmatpush3.msra.mxu1 %v8450_v52 }
 0x30a   :  { %6739 = vmatprep.subr.mxu0 %v8459_v45  ;;  %6774 = vmatprep.subr.mxu1 %v8464_v54 }
 0x30b   :  { %6740 = vmatpush3.msra.mxu0 %v8459_v45  ;;  %6775 = vmatpush3.msra.mxu1 %v8464_v54 }
 0x30c   :  { %6741 = vmatprep.subr.mxu0 %v8473_v55  ;;  %6776 = vmatprep.subr.mxu1 %v8478_v56 }
 0x30d   :  { %6742 = vmatpush3.msra.mxu0 %v8473_v55  ;;  %6777 = vmatpush3.msra.mxu1 %v8478_v56 }
 0x30e   :  { %6743 = vmatprep.subr.mxu0 %v8487_v57  ;;  %6778 = vmatprep.subr.mxu1 %v8492_v58 }
 0x30f   :  { %6744 = vmatpush3.msra.mxu0 %v8487_v57  ;;  %6779 = vmatpush3.msra.mxu1 %v8492_v58 }
 0x310   :  { %6745 = vmatprep.subr.mxu0 %v8501_v59  ;;  %6780 = vmatprep.subr.mxu1 %v8506_v60 }
 0x311   :  { %6746 = vmatpush3.msra.mxu0 %v8501_v59  ;;  %6781 = vmatpush3.msra.mxu1 %v8506_v60 }
 0x312   :  { %6747 = vmatprep.subr.mxu0 %v8515_v63  ;;  %6782 = vmatprep.subr.mxu1 %v8520_v3 }
 0x313   :  { %6748 = vmatpush3.msra.mxu0 %v8515_v63  ;;  %6783 = vmatpush3.msra.mxu1 %v8520_v3 }
 0x314   :  { %6749 = vmatprep.subr.mxu0 %v8529_v7  ;;  %6784 = vmatprep.subr.mxu1 %v8534_v9 }
 0x315   :  { %6750 = vmatpush3.msra.mxu0 %v8529_v7  ;;  %6785 = vmatpush3.msra.mxu1 %v8534_v9 }
 0x316   :  { %6751 = vmatprep.subr.mxu0 %v8543_v11  ;;  %6786 = vmatprep.subr.mxu1 %v8548_v13 }
 0x317   :  { %6752 = vmatpush3.msra.mxu0 %v8543_v11  ;;  %6787 = vmatpush3.msra.mxu1 %v8548_v13 }
 0x318   :  { %6753 = vmatprep.subr.mxu0 %v8557_v15  ;;  %6788 = vmatprep.subr.mxu1 %v8562_v17 }
 0x319   :  { %6754 = vmatpush3.msra.mxu0 %v8557_v15  ;;  %6789 = vmatpush3.msra.mxu1 %v8562_v17 }
 0x31a   :  { %6755 = vmatprep.subr.mxu0 %v8571_v19  ;;  %6790 = vmatprep.subr.mxu1 %v8576_v21 }
 0x31b   :  { %6756 = vmatpush3.msra.mxu0 %v8571_v19  ;;  %6791 = vmatpush3.msra.mxu1 %v8576_v21 }
 0x31c   :  { %6757 = vmatprep.subr.mxu0 %v8585_v23  ;;  %6792 = vmatprep.subr.mxu1 %v8590_v25 }
 0x31d   :  { %6758 = vmatpush3.msra.mxu0 %v8585_v23  ;;  %6793 = vmatpush3.msra.mxu1 %v8590_v25 }
 0x31e   :  { %6759 = vmatprep.subr.mxu0 %v8599_v27  ;;  %6794 = vmatprep.subr.mxu1 %v8604_v29 }
 0x31f   :  { %6760 = vmatpush3.msra.mxu0 %v8599_v27  ;;  %6795 = vmatpush3.msra.mxu1 %v8604_v29 }
 0x320   :  { %6761 = vmatprep.subr.mxu0 %v8613_v31  ;;  %6796 = vmatprep.subr.mxu1 %v8618_v34 }
 0x321   :  { %6762 = vmatpush3.msra.mxu0 %v8613_v31  ;;  %6797 = vmatpush3.msra.mxu1 %v8618_v34 }
 0x322   :  { %6763 = vmatprep.subr.mxu0 %v8627_v37  ;;  %6798 = vmatprep.subr.mxu1 %v8632_v38 }
 0x323   :  { %6764 = vmatpush3.msra.mxu0 %v8627_v37  ;;  %6799 = vmatpush3.msra.mxu1 %v8632_v38 }
 0x324   :  { %6765 = vmatprep.subr.mxu0 %v8641_v39  ;;  %6800 = vmatprep.subr.mxu1 %v8646_v40 }
 0x325   :  { %6766 = vmatpush3.msra.mxu0 %v8641_v39  ;;  %6801 = vmatpush3.msra.mxu1 %v8646_v40 }
 0x326   :  { %6805 = vmatprep.subr.mxu0 %v1446_v35  ;;  %6812 = vmatprep.subr.mxu1 %v1446_v35 }
 0x3c5   :  { %v6727_v53 = vpop.f32.mrf.mxu0  ;;  %v6734_v46 = vpop.f32.mrf.mxu1 }
 0x3c6   :  { %v1253_v33 = vmax.f32 %v6727_v53, %v6734_v46 }
 0x3c7   :  { %v1159_v30 = vpop.f32.mrf.mxu0  ;;  %v1243_v47 = vpop.f32.mrf.mxu1 }
 0x3c8   :  { %v1252_v48 = vmax.f32 %v1159_v30, %v1243_v47 }
 0x3ca   :  { %6767 = vmatprep.mubr.f32.mxu0 %v1252_v48  ;;  %6802 = vmatprep.mubr.f32.mxu1 %v1252_v48 }
 0x3cb   :  { %6768 = vmatmul.mubr.f32.vlgmr.msra.gmra.mxu0 %v1253_v33  ;;  %6803 = vmatmul.mubr.f32.vlgmr.msra.gmra.mxu1 %v1253_v33 }
 0x3cc   :  { %6806 = vmatpush3.msra.mxu0 %v1446_v35  ;;  %6813 = vmatpush3.msra.mxu1 %v1446_v35 }
 0x3cd   :  { %6807 = vmatprep.subr.mxu0 %v8421_v36  ;;  %6814 = vmatprep.subr.mxu1 %v8421_v36 }
 0x3ce   :  { %6808 = vmatpush3.msra.mxu0 %v8421_v36  ;;  %6815 = vmatpush3.msra.mxu1 %v8421_v36  ;;  %v8770_v36 = vld [vmem:[%s9771_s2 + $0x88] sm:$0xff] }
 0x3cf   :  { %6809 = vmatprep.mubr.msk.f32.mxu0 %vm145_vm1, %v8394_v4  ;;  %6816 = vmatprep.mubr.msk.f32.mxu1 %vm145_vm1, %v8399_v6 }
 0x3d0   :  { %6810 = vmatmul.mubr.msk.f32.vlgmr.msra.gmra.mxu0 %vm145_vm1, %v1448_v61  ;;  %6817 = vmatmul.mubr.msk.f32.vlgmr.msra.gmra.mxu1 %vm145_vm1, %v6089_v41  ;;  %vm5375_vm1 = vcmask 23552  }
 0x3d1   :  { %6819 = vmatprep.subr.mxu0 %v8433_v0  ;;  %6854 = vmatprep.subr.mxu1 %v8438_v51 }
 0x3d2   :  { %6820 = vmatpush3.msra.mxu0 %v8433_v0  ;;  %6855 = vmatpush3.msra.mxu1 %v8438_v51  ;;  %v8798_v0 = vld [vmem:[%s9771_s2 + $0x78] sm:$0xff]  ;;  %v8803_v51 = vld [vmem:[%s9771_s2 + $0x28] sm:$0xff] }
 0x3d3   :  { %6821 = vmatprep.subr.mxu0 %v8445_v42  ;;  %6856 = vmatprep.subr.mxu1 %v8450_v52 }
 0x3d4   :  { %6822 = vmatpush3.msra.mxu0 %v8445_v42  ;;  %6857 = vmatpush3.msra.mxu1 %v8450_v52  ;;  %v8812_v42 = vld [vmem:[%s9771_s2 + $0x70] sm:$0xff]  ;;  %v8817_v52 = vld [vmem:[%s9771_s2 + $0x20] sm:$0xff] }
 0x3d5   :  { %6823 = vmatprep.subr.mxu0 %v8459_v45  ;;  %6858 = vmatprep.subr.mxu1 %v8464_v54 }
 0x3d6   :  { %6824 = vmatpush3.msra.mxu0 %v8459_v45  ;;  %6859 = vmatpush3.msra.mxu1 %v8464_v54  ;;  %v8826_v45 = vld [vmem:[%s9771_s2 + $0x68] sm:$0xff]  ;;  %v8831_v54 = vld [vmem:[%s9771_s2 + $0x18] sm:$0xff] }
 0x3d7   :  { %6825 = vmatprep.subr.mxu0 %v8473_v55  ;;  %6860 = vmatprep.subr.mxu1 %v8478_v56 }
 0x3d8   :  { %6826 = vmatpush3.msra.mxu0 %v8473_v55  ;;  %6861 = vmatpush3.msra.mxu1 %v8478_v56  ;;  %v8840_v55 = vld [vmem:[%s9771_s2 + $0x60] sm:$0xff]  ;;  %v8845_v56 = vld [vmem:[%s9771_s2 + $0x10] sm:$0xff] }
 0x3d9   :  { %6827 = vmatprep.subr.mxu0 %v8487_v57  ;;  %6862 = vmatprep.subr.mxu1 %v8492_v58 }
 0x3da   :  { %6828 = vmatpush3.msra.mxu0 %v8487_v57  ;;  %6863 = vmatpush3.msra.mxu1 %v8492_v58  ;;  %v8854_v57 = vld [vmem:[%s9771_s2 + $0x58] sm:$0xff]  ;;  %v8859_v58 = vld [vmem:[%s9771_s2 + $0x8] sm:$0xff] }
 0x3db   :  { %6829 = vmatprep.subr.mxu0 %v8501_v59  ;;  %6864 = vmatprep.subr.mxu1 %v8506_v60 }
 0x3dc   :  { %6830 = vmatpush3.msra.mxu0 %v8501_v59  ;;  %6865 = vmatpush3.msra.mxu1 %v8506_v60  ;;  %v8868_v59 = vld [vmem:[%s9771_s2 + $0x50] sm:$0xff]  ;;  %v8875_v60 = vld [vmem:[%s9771_s2] sm:$0xff] }
 0x3dd   :  { %6831 = vmatprep.subr.mxu0 %v8515_v63  ;;  %6866 = vmatprep.subr.mxu1 %v8520_v3 }
 0x3de   :  { %6832 = vmatpush3.msra.mxu0 %v8515_v63  ;;  %6867 = vmatpush3.msra.mxu1 %v8520_v3 }
 0x3df   :  { %6833 = vmatprep.subr.mxu0 %v8529_v7  ;;  %6868 = vmatprep.subr.mxu1 %v8534_v9 }
 0x3e0   :  { %6834 = vmatpush3.msra.mxu0 %v8529_v7  ;;  %6869 = vmatpush3.msra.mxu1 %v8534_v9  ;;  %v8888_v7 = vld [vmem:[%s9771_s2 + $0xe8] sm:$0xff]  ;;  %v8896_v9 = vld [vmem:[%s9771_s2 + $0xe0] sm:$0xff] }
 0x3e1   :  { %6835 = vmatprep.subr.mxu0 %v8543_v11  ;;  %6870 = vmatprep.subr.mxu1 %v8548_v13 }
 0x3e2   :  { %6836 = vmatpush3.msra.mxu0 %v8543_v11  ;;  %6871 = vmatpush3.msra.mxu1 %v8548_v13  ;;  %v8906_v11 = vld [vmem:[%s9771_s2 + $0xd8] sm:$0xff]  ;;  %v8915_v13 = vld [vmem:[%s9771_s2 + $0xd0] sm:$0xff] }
 0x3e3   :  { %6837 = vmatprep.subr.mxu0 %v8557_v15  ;;  %6872 = vmatprep.subr.mxu1 %v8562_v17 }
 0x3e4   :  { %6838 = vmatpush3.msra.mxu0 %v8557_v15  ;;  %6873 = vmatpush3.msra.mxu1 %v8562_v17  ;;  %v8924_v15 = vld [vmem:[%s9771_s2 + $0xc8] sm:$0xff]  ;;  %v8933_v17 = vld [vmem:[%s9771_s2 + $0xc0] sm:$0xff] }
 0x3e5   :  { %6839 = vmatprep.subr.mxu0 %v8571_v19  ;;  %6874 = vmatprep.subr.mxu1 %v8576_v21 }
 0x3e6   :  { %6840 = vmatpush3.msra.mxu0 %v8571_v19  ;;  %6875 = vmatpush3.msra.mxu1 %v8576_v21  ;;  %v8942_v19 = vld [vmem:[%s9771_s2 + $0xb8] sm:$0xff]  ;;  %v8951_v21 = vld [vmem:[%s9771_s2 + $0xb0] sm:$0xff] }
 0x3e7   :  { %6841 = vmatprep.subr.mxu0 %v8585_v23  ;;  %6876 = vmatprep.subr.mxu1 %v8590_v25 }
 0x3e8   :  { %6842 = vmatpush3.msra.mxu0 %v8585_v23  ;;  %6877 = vmatpush3.msra.mxu1 %v8590_v25  ;;  %v8960_v23 = vld [vmem:[%s9771_s2 + $0xa8] sm:$0xff]  ;;  %v8969_v25 = vld [vmem:[%s9771_s2 + $0xa0] sm:$0xff] }
 0x3e9   :  { %6843 = vmatprep.subr.mxu0 %v8599_v27  ;;  %6878 = vmatprep.subr.mxu1 %v8604_v29 }
 0x3ea   :  { %6844 = vmatpush3.msra.mxu0 %v8599_v27  ;;  %6879 = vmatpush3.msra.mxu1 %v8604_v29 }
 0x3eb   :  { %6845 = vmatprep.subr.mxu0 %v8613_v31  ;;  %6880 = vmatprep.subr.mxu1 %v8618_v34 }
 0x3ec   :  { %6846 = vmatpush3.msra.mxu0 %v8613_v31  ;;  %6881 = vmatpush3.msra.mxu1 %v8618_v34 }
 0x3ed   :  { %6847 = vmatprep.subr.mxu0 %v8627_v37  ;;  %6882 = vmatprep.subr.mxu1 %v8632_v38 }
 0x3ee   :  { %6848 = vmatpush3.msra.mxu0 %v8627_v37  ;;  %6883 = vmatpush3.msra.mxu1 %v8632_v38 }
 0x3ef   :  { %6849 = vmatprep.subr.mxu0 %v8641_v39  ;;  %6884 = vmatprep.subr.mxu1 %v8646_v40 }
 0x3f0   :  { %6850 = vmatpush3.msra.mxu0 %v8641_v39  ;;  %6885 = vmatpush3.msra.mxu1 %v8646_v40 }
 0x3f1   :  { %6889 = vmatprep.subr.mxu0 %v7518_v2  ;;  %6912 = vmatprep.subr.mxu1 %v7518_v2 }
 0x48b   :  { %v6769_v5 = vpop.f32.mrf.mxu0  ;;  %v6804_v1 = vpop.f32.mrf.mxu1 }
 0x48c   :  { %v1438_v4 = vmax.f32 %v6769_v5, %v6804_v1  ;;  %v2331_v5 = vld [vmem:[%s9772_s6 + $0x38] sm:$0xff]  ;;  %v2330_v1 = vld [vmem:[%s9772_s6 + $0x30] sm:$0xff] }
 0x48d   :  { %v1336_v6 = vpop.f32.mrf.mxu0  ;;  %v1428_v8 = vpop.f32.mrf.mxu1 }
 0x48e   :  { %1442 = vst.msk [vmem:[#allocation2 + $0x8] sm:$0x3] %vm1441_vm5, %v1438_v4  ;;  %v1437_v10 = vmax.f32 %v1336_v6, %v1428_v8  ;;  %v2329_v4 = vld [vmem:[%s9772_s6 + $0x28] sm:$0xff]  ;;  %v2328_v6 = vld [vmem:[%s9772_s6 + $0x20] sm:$0xff]  ;;  %v2327_v8 = vld [vmem:[%s9772_s6 + $0x18] sm:$0xff] }
 0x490   :  { %1440 = vst.msk [vmem:[#allocation2] sm:$0xff] %vm1439_vm6, %v1437_v10  ;;  %v6811_v12 = vpop.f32.mrf.mxu0  ;;  %v6818_v14 = vpop.f32.mrf.mxu1  ;;  %v2326_v10 = vld [vmem:[%s9772_s6 + $0x10] sm:$0xff] }
 0x491   :  { %v1614_v24 = vmax.f32 %v6811_v12, %v6818_v14  ;;  %v2325_v12 = vld [vmem:[%s9772_s6 + $0x8] sm:$0xff]  ;;  %v2324_v14 = vld [vmem:[%s9772_s6] sm:$0xff] }
 0x492   :  { %v1521_v18 = vpop.f32.mrf.mxu0  ;;  %v1604_v20 = vpop.f32.mrf.mxu1 }
 0x493   :  { %v1613_v22 = vmax.f32 %v1521_v18, %v1604_v20 }
 0x495   :  { %6851 = vmatprep.mubr.f32.mxu0 %v1613_v22  ;;  %6886 = vmatprep.mubr.f32.mxu1 %v1613_v22  ;;  %v6131_v22 = vld [vmem:[%s9773_s27] ss:$0 sm:$0xff] }
 0x496   :  { %6852 = vmatmul.mubr.f32.vlgmr.msra.gmra.mxu0 %v1614_v24  ;;  %6887 = vmatmul.mubr.f32.vlgmr.msra.gmra.mxu1 %v1614_v24 }
 0x497   :  { %6890 = vmatpush3.msra.mxu0 %v8746_v26  ;;  %6913 = vmatpush3.msra.mxu1 %v8751_v28  ;;  %v1813_v63 = vld [vmem:[#allocation2 + $0x1] sm:$0xff] }
 0x498   :  { %6891 = vmatprep.subr.mxu0 %v7518_v2  ;;  %6914 = vmatprep.subr.mxu1 %v7518_v2  ;;  %v1802_v3 = vld [vmem:[#allocation2] sm:$0xff] }
 0x499   :  { %6892 = vmatpush3.msra.mxu0 %v8756_v32  ;;  %6915 = vmatpush3.msra.mxu1 %v8761_v43  ;;  %v1971_v27 = vld [vmem:[#allocation2 + $0x2] sm:$0xff] }
 0x49a   :  { %6893 = vmatprep.subr.mxu0 %v7518_v2  ;;  %6916 = vmatprep.subr.mxu1 %v7518_v2 }
 0x49b   :  { %6894 = vmatpush3.msra.mxu0 %v8770_v36  ;;  %6917 = vmatpush3.msra.mxu1 %v8775_v49 }
 0x49c   :  { %6895 = vmatprep.subr.mxu0 %v7518_v2  ;;  %6918 = vmatprep.subr.mxu1 %v7518_v2 }
 0x49d   :  { %6896 = vmatpush3.msra.mxu0 %v8784_v62  ;;  %6919 = vmatpush3.msra.mxu1 %v8789_v50 }
 0x49e   :  { %6897 = vmatprep.subr.mxu0 %v7518_v2  ;;  %6920 = vmatprep.subr.mxu1 %v7518_v2 }
 0x49f   :  { %6898 = vmatpush3.msra.mxu0 %v8798_v0  ;;  %6921 = vmatpush3.msra.mxu1 %v8803_v51 }
 0x4a0   :  { %6899 = vmatprep.subr.mxu0 %v7518_v2  ;;  %6922 = vmatprep.subr.mxu1 %v7518_v2 }
 0x4a1   :  { %6900 = vmatpush3.msra.mxu0 %v8812_v42  ;;  %6923 = vmatpush3.msra.mxu1 %v8817_v52 }
 0x4a2   :  { %6901 = vmatprep.subr.mxu0 %v7518_v2  ;;  %6924 = vmatprep.subr.mxu1 %v7518_v2 }
 0x4a3   :  { %6902 = vmatpush3.msra.mxu0 %v8826_v45  ;;  %6925 = vmatpush3.msra.mxu1 %v8831_v54 }
 0x4a4   :  { %6903 = vmatprep.subr.mxu0 %v7518_v2  ;;  %6926 = vmatprep.subr.mxu1 %v7518_v2 }
 0x4a5   :  { %6904 = vmatpush3.msra.mxu0 %v8840_v55  ;;  %6927 = vmatpush3.msra.mxu1 %v8845_v56 }
 0x4a6   :  { %6905 = vmatprep.subr.mxu0 %v7518_v2  ;;  %6928 = vmatprep.subr.mxu1 %v7518_v2 }
 0x4a7   :  { %6906 = vmatpush3.msra.mxu0 %v8854_v57  ;;  %6929 = vmatpush3.msra.mxu1 %v8859_v58 }
 0x4a8   :  { %6907 = vmatprep.subr.mxu0 %v7518_v2  ;;  %6930 = vmatprep.subr.mxu1 %v7518_v2 }
 0x4a9   :  { %6908 = vmatpush3.msra.mxu0 %v8868_v59  ;;  %6909 = vmatprep.mubr.msk.f32.mxu0 %vm7519_vm3, %v7518_v2 }
 0x4aa   :  { %6931 = vmatpush3.msra.mxu1 %v8875_v60  ;;  %6932 = vmatprep.mubr.msk.f32.mxu1 %vm7519_vm3, %v7518_v2 }
 0x4ab   :  { %6910 = vmatmul.mubr.msk.f32.vlgmr.msra.gmra.mxu0 %vm1439_vm6, %v1813_v63  ;;  %6933 = vmatmul.mubr.msk.f32.vlgmr.msra.gmra.mxu1 %vm1439_vm6, %v1802_v3 }
 0x4ac   :  { %6935 = vmatprep.subr.mxu0 %v7518_v2  ;;  %6955 = vmatprep.mubr.msk.f32.mxu0 %vm7519_vm3, %v7518_v2 }
 0x4ad   :  { %6936 = vmatpush3.msra.mxu0 %v8888_v7  ;;  %6958 = vmatprep.subr.mxu1 %v7518_v2 }
 0x4ae   :  { %6937 = vmatprep.subr.mxu0 %v7518_v2  ;;  %6959 = vmatpush3.msra.mxu1 %v8746_v26 }
 0x4af   :  { %6938 = vmatpush3.msra.mxu0 %v8896_v9  ;;  %6960 = vmatprep.subr.mxu1 %v7518_v2 }
 0x4b0   :  { %6939 = vmatprep.subr.mxu0 %v7518_v2  ;;  %6961 = vmatpush3.msra.mxu1 %v8756_v32 }
 0x4b1   :  { %6940 = vmatpush3.msra.mxu0 %v8906_v11  ;;  %6962 = vmatprep.subr.mxu1 %v7518_v2 }
 0x4b2   :  { %6941 = vmatprep.subr.mxu0 %v7518_v2  ;;  %6963 = vmatpush3.msra.mxu1 %v8770_v36 }
 0x4b3   :  { %6942 = vmatpush3.msra.mxu0 %v8915_v13  ;;  %6964 = vmatprep.subr.mxu1 %v7518_v2 }
 0x4b4   :  { %6943 = vmatprep.subr.mxu0 %v7518_v2  ;;  %6965 = vmatpush3.msra.mxu1 %v8784_v62 }
 0x4b5   :  { %6944 = vmatpush3.msra.mxu0 %v8924_v15  ;;  %6966 = vmatprep.subr.mxu1 %v7518_v2 }
 0x4b6   :  { %6945 = vmatprep.subr.mxu0 %v7518_v2  ;;  %6967 = vmatpush3.msra.mxu1 %v8798_v0 }
 0x4b7   :  { %6946 = vmatpush3.msra.mxu0 %v8933_v17  ;;  %6968 = vmatprep.subr.mxu1 %v7518_v2 }
 0x4b8   :  { %6947 = vmatprep.subr.mxu0 %v7518_v2  ;;  %6969 = vmatpush3.msra.mxu1 %v8812_v42 }
 0x4b9   :  { %6948 = vmatpush3.msra.mxu0 %v8942_v19  ;;  %6970 = vmatprep.subr.mxu1 %v7518_v2 }
 0x4ba   :  { %6949 = vmatprep.subr.mxu0 %v7518_v2  ;;  %6971 = vmatpush3.msra.mxu1 %v8826_v45 }
 0x4bb   :  { %6950 = vmatpush3.msra.mxu0 %v8951_v21  ;;  %6972 = vmatprep.subr.mxu1 %v7518_v2 }
 0x4bc   :  { %6951 = vmatprep.subr.mxu0 %v7518_v2  ;;  %6973 = vmatpush3.msra.mxu1 %v8840_v55 }
 0x4bd   :  { %6952 = vmatpush3.msra.mxu0 %v8960_v23  ;;  %6974 = vmatprep.subr.mxu1 %v7518_v2 }
 0x4be   :  { %6953 = vmatprep.subr.mxu0 %v7518_v2  ;;  %6975 = vmatpush3.msra.mxu1 %v8854_v57 }
 0x4bf   :  { %6954 = vmatpush3.msra.mxu0 %v8969_v25  ;;  %6976 = vmatprep.subr.mxu1 %v7518_v2 }
 0x4c0   :  { %6956 = vmatmul.mubr.msk.f32.vlgmr.msra.gmra.mxu0 %vm1439_vm6, %v1971_v27  ;;  %6981 = vmatprep.subr.mxu0 %v7518_v2 }
 0x4c1   :  { %6982 = vmatpush3.msra.mxu0 %v8751_v28  ;;  %6977 = vmatpush3.msra.mxu1 %v8868_v59 }
 0x4c2   :  { %6983 = vmatprep.subr.mxu0 %v7518_v2  ;;  %6978 = vmatprep.mubr.msk.f32.mxu1 %vm7519_vm3, %v7518_v2 }
 0x4c3   :  { %6984 = vmatpush3.msra.mxu0 %v8761_v43  ;;  %7001 = vmatprep.mubr.msk.f32.mxu0 %vm7519_vm3, %v7518_v2 }
 0x4c4   :  { %6985 = vmatprep.subr.mxu0 %v7518_v2  ;;  %7004 = vmatprep.subr.mxu1 %v7518_v2 }
 0x4c5   :  { %6986 = vmatpush3.msra.mxu0 %v8775_v49 }
 0x4c6   :  { %6987 = vmatprep.subr.mxu0 %v7518_v2 }
 0x4c7   :  { %6988 = vmatpush3.msra.mxu0 %v8789_v50 }
 0x4c8   :  { %6989 = vmatprep.subr.mxu0 %v7518_v2 }
 0x4c9   :  { %6990 = vmatpush3.msra.mxu0 %v8803_v51 }
 0x4ca   :  { %6991 = vmatprep.subr.mxu0 %v7518_v2 }
 0x4cb   :  { %6992 = vmatpush3.msra.mxu0 %v8817_v52 }
 0x4cc   :  { %6993 = vmatprep.subr.mxu0 %v7518_v2 }
 0x4cd   :  { %6994 = vmatpush3.msra.mxu0 %v8831_v54 }
 0x4ce   :  { %6995 = vmatprep.subr.mxu0 %v7518_v2 }
 0x4cf   :  { %6996 = vmatpush3.msra.mxu0 %v8845_v56 }
 0x4d0   :  { %6997 = vmatprep.subr.mxu0 %v7518_v2 }
 0x4d1   :  { %6998 = vmatpush3.msra.mxu0 %v8859_v58 }
 0x4d2   :  { %6999 = vmatprep.subr.mxu0 %v7518_v2 }
 0x4d3   :  { %7000 = vmatpush3.msra.mxu0 %v8875_v60 }
 0x4d4   :  { %7027 = vmatprep.subr.mxu0 %v7518_v2 }
 0x556   :  { %v6853_v29 = vpop.f32.mrf.mxu0  ;;  %v6888_v31 = vpop.f32.mrf.mxu1 }
 0x557   :  { %v1798_v34 = vmax.f32 %v6853_v29, %v6888_v31 }
 0x558   :  { %v1697_v37 = vpop.f32.mrf.mxu0  ;;  %v1788_v38 = vpop.f32.mrf.mxu1 }
 0x559   :  { %1801 = vst.msk [vmem:[#allocation2 + $0x18] sm:$0x3] %vm1441_vm5, %v1798_v34  ;;  %v1797_v39 = vmax.f32 %v1697_v37, %v1788_v38 }
 0x55b   :  { %1800 = vst.msk [vmem:[#allocation2 + $0x10] sm:$0xff] %vm1439_vm6, %v1797_v39 }
 0x562   :  { %v2067_v40 = vld [vmem:[#allocation2 + $0x11] sm:$0xff] }
 0x563   :  { %v2066_v44 = vld [vmem:[#allocation2 + $0x10] sm:$0xff]  ;;  %6979 = vmatmul.mubr.msk.f32.vlgmr.msra.gmra.mxu1 %vm1439_vm6, %v2067_v40 }
 0x564   :  { %7002 = vmatmul.mubr.msk.f32.vlgmr.msra.gmra.mxu0 %vm1439_vm6, %v2066_v44  ;;  %7005 = vmatpush3.msra.mxu1 %v8888_v7  ;;  %v2214_v48 = vld [vmem:[#allocation2 + $0x12] sm:$0xff] }
 0x565   :  { %7024 = vmatprep.mubr.msk.f32.mxu1 %vm7519_vm3, %v7518_v2  ;;  %7006 = vmatprep.subr.mxu1 %v7518_v2 }
 0x566   :  { %7043 = vmatprep.mubr.msk.f32.mxu0 %vm7519_vm3, %v7518_v2  ;;  %7007 = vmatpush3.msra.mxu1 %v8896_v9 }
 0x567   :  { %7008 = vmatprep.subr.mxu1 %v7518_v2  ;;  %7028 = vmatpush3.msra.mxu0 %v2331_v5 }
 0x568   :  { %7009 = vmatpush3.msra.mxu1 %v8906_v11  ;;  %7029 = vmatprep.subr.mxu0 %v7518_v2 }
 0x569   :  { %7010 = vmatprep.subr.mxu1 %v7518_v2  ;;  %7030 = vmatpush3.msra.mxu0 %v2330_v1 }
 0x56a   :  { %7011 = vmatpush3.msra.mxu1 %v8915_v13  ;;  %7031 = vmatprep.subr.mxu0 %v7518_v2 }
 0x56b   :  { %v1894_v35 = vpop.f32.mrf.mxu0  ;;  %v1967_v53 = vpop.f32.mrf.mxu1  ;;  %7012 = vmatprep.subr.mxu1 %v7518_v2  ;;  %7032 = vmatpush3.msra.mxu0 %v2329_v4 }
 0x56c   :  { %v1968_v46 = vadd.f32 %v1967_v53, %v1894_v35  ;;  %7013 = vmatpush3.msra.mxu1 %v8924_v15  ;;  %7033 = vmatprep.subr.mxu0 %v7518_v2  ;;  %v2485_v35 = vld [vmem:[%s9731_s10] sm:$0xff] }
 0x56d   :  { %v6911_v30 = vpop.f32.mrf.mxu0  ;;  %v6934_v47 = vpop.f32.mrf.mxu1  ;;  %7014 = vmatprep.subr.mxu1 %v7518_v2  ;;  %7034 = vmatpush3.msra.mxu0 %v2328_v6 }
 0x56e   :  { %7015 = vmatpush3.msra.mxu1 %v8933_v17  ;;  %7035 = vmatprep.subr.mxu0 %v7518_v2 }
 0x56f   :  { %7016 = vmatprep.subr.mxu1 %v7518_v2  ;;  %7036 = vmatpush3.msra.mxu0 %v2327_v8 }
 0x570   :  { %7017 = vmatpush3.msra.mxu1 %v8942_v19  ;;  %7037 = vmatprep.subr.mxu0 %v7518_v2 }
 0x571   :  { %7018 = vmatprep.subr.mxu1 %v7518_v2  ;;  %7038 = vmatpush3.msra.mxu0 %v2326_v10 }
 0x572   :  { %7019 = vmatpush3.msra.mxu1 %v8951_v21  ;;  %7039 = vmatprep.subr.mxu0 %v7518_v2 }
 0x573   :  { %7020 = vmatprep.subr.mxu1 %v7518_v2  ;;  %7040 = vmatpush3.msra.mxu0 %v2325_v12 }
 0x574   :  { %7021 = vmatpush3.msra.mxu1 %v8960_v23  ;;  %7041 = vmatprep.subr.mxu0 %v7518_v2 }
 0x575   :  { %7022 = vmatprep.subr.mxu1 %v7518_v2  ;;  %7042 = vmatpush3.msra.mxu0 %v2324_v14 }
 0x576   :  { %7023 = vmatpush3.msra.mxu1 %v8969_v25  ;;  %7065 = vmatprep.subr.mxu0 %v7518_v2 }
 0x577   :  { %7025 = vmatmul.mubr.msk.f32.vlgmr.msra.gmra.mxu1 %vm1439_vm6, %v2214_v48  ;;  %7046 = vmatprep.subr.mxu1 %v7518_v2 }
 0x578   :  { %7062 = vmatprep.mubr.msk.f32.mxu1 %vm7519_vm3, %v7518_v2  ;;  %7047 = vmatpush3.msra.mxu1 %v2331_v5 }
 0x579   :  { %7048 = vmatprep.subr.mxu1 %v7518_v2 }
 0x57a   :  { %7049 = vmatpush3.msra.mxu1 %v2330_v1 }
 0x57b   :  { %7050 = vmatprep.subr.mxu1 %v7518_v2 }
 0x57c   :  { %7051 = vmatpush3.msra.mxu1 %v2329_v4 }
 0x57d   :  { %7052 = vmatprep.subr.mxu1 %v7518_v2 }
 0x57e   :  { %7053 = vmatpush3.msra.mxu1 %v2328_v6 }
 0x57f   :  { %7054 = vmatprep.subr.mxu1 %v7518_v2 }
 0x580   :  { %v2052_v33 = vpop.f32.mrf.mxu0  ;;  %7055 = vmatpush3.msra.mxu1 %v2327_v8 }
 0x581   :  { %v2056_v61 = vadd.f32 %v2052_v33, %v1968_v46  ;;  %7056 = vmatprep.subr.mxu1 %v7518_v2 }
 0x582   :  { %v6957_v41 = vpop.f32.mrf.mxu0  ;;  %7057 = vmatpush3.msra.mxu1 %v2326_v10 }
 0x583   :  { %7058 = vmatprep.subr.mxu1 %v7518_v2  ;;  %v2064_v28 = vadd.f32 %v6131_v22, %v2056_v61 }
 0x584   :  { %7059 = vmatpush3.msra.mxu1 %v2325_v12 }
 0x585   :  { %7060 = vmatprep.subr.mxu1 %v7518_v2  ;;  %v9080_v32 = vmax.f32 %v2064_v28, 0.0  ;;  %v2642_v28 = vld [vmem:[%s9732_s11] sm:$0x3f] }
 0x586   :  { %7061 = vmatpush3.msra.mxu1 %v2324_v14 }
 0x587   :  { %7070 = vmatprep.subr.mxu1 %v7518_v2  ;;  %v2299_v43 = vmul.f32 %v9080_v32, %v9080_v32  ;;  %v2292_v36 = vsel %vm2291_vm7, %v9080_v32, 0.0 }
 0x588   :  { %v2293_v62 = vrot.slane %v2292_v36, 4 }
 0x589   :  { %v2300_v49 = vsel %vm2291_vm7, %v2299_v43, 0.0  ;;  %v6140_v43 = vld [vmem:[%s9732_s11 + $0x8] sm:$0x3f] }
 0x58a   :  { %v2301_v0 = vrot.slane %v2300_v49, 4  ;;  %v2294_v52 = vadd.f32 %v2293_v62, %v2292_v36  ;;  %v9125_v36 = vld [vmem:[%s9733_s12 + $0x78] sm:$0xff]  ;;  %v9139_v62 = vld [vmem:[%s9733_s12 + $0x70] sm:$0xff] }
 0x58c   :  { %v2302_v55 = vadd.f32 %v2301_v0, %v2300_v49  ;;  %v2295_v57 = vrot.slane %v2294_v52, 2  ;;  %v9134_v49 = vld [vmem:[%s9733_s12 + $0x30] sm:$0xff]  ;;  %v9153_v0 = vld [vmem:[%s9733_s12 + $0x68] sm:$0xff] }
 0x58e   :  { %v2303_v60 = vrot.slane %v2302_v55, 2  ;;  %v2296_v7 = vadd.f32 %v2295_v57, %v2294_v52  ;;  %v2795_v52 = vld [vmem:[%s9733_s12 + $0x18] sm:$0xff]  ;;  %v6144_v57 = vld [vmem:[%s9733_s12 + $0x48] sm:$0xff] }
 0x590   :  { %v2304_v13 = vadd.f32 %v2303_v60, %v2302_v55  ;;  %v2297_v19 = vrot.slane %v2296_v7, 1  ;;  %v6145_v55 = vld [vmem:[%s9733_s12 + $0x50] sm:$0xff] }
 0x592   :  { %v2305_v25 = vrot.slane %v2304_v13, 1  ;;  %v2298_v31 = vadd.f32 %v2297_v19, %v2296_v7 }
 0x594   :  { %v2306_v39 = vadd.f32 %v2305_v25, %v2304_v13  ;;  %v6153_v13 = vld [vmem:[%s9732_s11 + $0x8] sm:$0x3f] }
 0x623   :  { %v2137_v18 = vpop.f32.mrf.mxu1 }
 0x624   :  { %v2210_v20 = vpop.f32.mrf.mxu0 }
 0x625   :  { %v6980_v24 = vpop.f32.mrf.mxu1  ;;  %v2211_v50 = vadd.f32 %v2210_v20, %v2137_v18 }
 0x626   :  { %v7003_v26 = vpop.f32.mrf.mxu0 }
 0x637   :  { %v2284_v51 = vpop.f32.mrf.mxu1 }
 0x638   :  { %v2288_v42 = vadd.f32 %v2284_v51, %v2211_v50  ;;  %v9148_v50 = vld [vmem:[%s9733_s12 + $0x28] sm:$0xff]  ;;  %v9162_v51 = vld [vmem:[%s9733_s12 + $0x20] sm:$0xff] }
 0x639   :  { %v7026_v45 = vpop.f32.mrf.mxu1 }
 0x63a   :  { %v2289_v54 = vadd.f32 %v6131_v22, %v2288_v42  ;;  %v9167_v42 = vld [vmem:[%s9733_s12 + $0x60] sm:$0xff]  ;;  %v6146_v45 = vld [vmem:[%s9733_s12 + $0x58] sm:$0xff] }
 0x63c   :  { %v2290_v56 = vmax.f32 %v2289_v54, 0.0  ;;  %v2794_v54 = vld [vmem:[%s9733_s12 + $0x10] sm:$0xff] }
 0x63e   :  { %v2307_v58 = vsel %vm2291_vm7, %v2290_v56, 0.0  ;;  %v2315_v59 = vmul.f32 %v2290_v56, %v2290_v56 }
 0x63f   :  { %v2308_v63 = vrot.slane %v2307_v58, 4 }
 0x640   :  { %v2316_v3 = vsel %vm2291_vm7, %v2315_v59, 0.0  ;;  %v6143_v59 = vld [vmem:[%s9733_s12 + $0x40] sm:$0xff] }
 0x641   :  { %v2309_v9 = vadd.f32 %v2308_v63, %v2307_v58  ;;  %v2317_v11 = vrot.slane %v2316_v3, 4  ;;  %v2792_v58 = vld [vmem:[%s9733_s12] sm:$0xff] }
 0x643   :  { %v2310_v15 = vrot.slane %v2309_v9, 2  ;;  %v2318_v17 = vadd.f32 %v2317_v11, %v2316_v3  ;;  %v2957_v11 = vld [vmem:[%s9732_s11] sm:$0x3f] }
 0x645   :  { %v2311_v21 = vadd.f32 %v2310_v15, %v2309_v9  ;;  %v2319_v23 = vrot.slane %v2318_v17, 2 }
 0x647   :  { %v2312_v27 = vrot.slane %v2311_v21, 1  ;;  %v2320_v29 = vadd.f32 %v2319_v23, %v2318_v17 }
 0x649   :  { %v2313_v34 = vadd.f32 %v2312_v27, %v2311_v21  ;;  %v2321_v37 = vrot.slane %v2320_v29, 1 }
 0x64b   :  { %v2314_v38 = vadd.f32 %v2313_v34, %v2298_v31  ;;  %v2322_v40 = vadd.f32 %v2321_v37, %v2320_v29  ;;  %v6170_v31 = vld [vmem:[%s9734_s13 + $0x58] sm:$0xff]  ;;  %v9266_v34 = vld [vmem:[%s9734_s13 + $0x28] sm:$0xff] }
 0x64d   :  { %7044 = vmatmul.mubr.msk.f32.vlgmr.msra.gmra.mxu0 %vm2291_vm7, %v2314_v38  ;;  %v2323_v44 = vadd.f32 %v2322_v40, %v2306_v39  ;;  %v6169_v39 = vld [vmem:[%s9734_s13 + $0x50] sm:$0xff]  ;;  %v9276_v40 = vld [vmem:[%s9734_s13 + $0x20] sm:$0xff] }
 0x64e   :  { %7067 = vmatprep.mubr.msk.f32.mxu0 %vm7519_vm3, %v7518_v2  ;;  %7066 = vmatpush3.msra.mxu0 %v2485_v35 }
 0x64f   :  { %7063 = vmatmul.mubr.msk.f32.vlgmr.msra.gmra.mxu1 %vm2291_vm7, %v2323_v44  ;;  %7075 = vmatprep.subr.mxu0 %v7518_v2  ;;  %v6168_v44 = vld [vmem:[%s9734_s13 + $0x48] sm:$0xff] }
 0x650   :  { %7072 = vmatprep.mubr.msk.f32.mxu1 %vm7519_vm3, %v7518_v2  ;;  %7071 = vmatpush3.msra.mxu1 %v2485_v35  ;;  %v9287_v35 = vld [vmem:[%s9734_s13 + $0x18] sm:$0xff] }
 0x651   :  { %7080 = vmatprep.subr.mxu1 %v7518_v2 }
 0x70d   :  { %v2401_v53 = vpop.f32.mrf.mxu0 }
 0x70e   :  { %v2405_v46 = vmul.f32 0.0078125, %v2401_v53  ;;  %v6167_v53 = vld [vmem:[%s9734_s13 + $0x40] sm:$0xff] }
 0x70f   :  { %v7045_v30 = vpop.f32.mrf.mxu0  ;;  %v2475_v47 = vpop.f32.mrf.mxu1 }
 0x710   :  { %v2480_v48 = vmul.f32 %v2405_v46, %v2405_v46  ;;  %v2479_v33 = vmul.f32 0.0078125, %v2475_v47  ;;  %7068 = vmatmul.mubr.msk.f32.vlgmr.msra.gmra.mxu0 %vm926_vm4, %v2405_v46  ;;  %v9298_v46 = vld [vmem:[%s9734_s13 + $0x10] sm:$0xff]  ;;  %v6166_v30 = vld [vmem:[%s9734_s13 + $0x38] sm:$0xff]  ;;  %v9309_v47 = vld [vmem:[%s9734_s13 + $0x8] sm:$0xff] }
 0x711   :  { %v7064_v61 = vpop.f32.mrf.mxu1  ;;  %7077 = vmatprep.mubr.msk.f32.mxu0 %vm7519_vm3, %v7518_v2 }
 0x712   :  { %v2481_v41 = vsub.f32 %v2479_v33, %v2480_v48  ;;  %v6165_v48 = vld [vmem:[%s9734_s13 + $0x30] sm:$0xff]  ;;  %v3269_v33 = vld [vmem:[%s9734_s13] sm:$0xff] }
 0x714   :  { %v2482_v5 = vmax.f32 %v2481_v41, 0.0 }
 0x716   :  { %v2483_v1 = vadd.f32 1e-05, %v2482_v5  ;;  %v6178_v5 = vld [vmem:[%s9734_s13 + $0x88] sm:$0xff] }
 0x718   :  { %7490 = vrsqrt.f32 %v2483_v1  ;;  %v9336_v1 = vld [vmem:[%s9734_s13 + $0x80] sm:$0xff] }
 0x725   :  { %v7491_v4 = vpop.eup %7490 }
 0x726   :  { %7073 = vmatmul.mubr.msk.f32.vlgmr.msra.gmra.mxu1 %vm926_vm4, %v7491_v4  ;;  %v6176_v4 = vld [vmem:[%s9734_s13 + $0x78] sm:$0xff] }
 0x727   :  { %7082 = vmatprep.mubr.msk.f32.mxu1 %vm7519_vm3, %v7518_v2 }
 0x7d0   :  { %v2555_v6 = vpop.f32.mrf.mxu0 }
 0x7d1   :  { %v2635_v10 = vrot.slane %v2555_v6, %v8405_v16  ;;  %v6175_v6 = vld [vmem:[%s9734_s13 + $0x70] sm:$0xff] }
 0x7d2   :  { %v7069_v8 = vpop.f32.mrf.mxu0 }
 0x7d3   :  { %v2636_v14 = vsub.f32 %v9080_v32, %v2635_v10  ;;  %v2955_v18 = vsub.f32 %v2290_v56, %v2635_v10  ;;  %v9120_v32 = vld [vmem:[%s9733_s12 + $0x38] sm:$0xff]  ;;  %v2793_v56 = vld [vmem:[%s9733_s12 + $0x8] sm:$0xff]  ;;  %v6173_v10 = vld [vmem:[%s9734_s13 + $0x60] sm:$0xff] }
 0x7d4   :  { %v6174_v8 = vld [vmem:[%s9734_s13 + $0x68] sm:$0xff] }
 0x7e6   :  { %v2628_v12 = vpop.f32.mrf.mxu1 }
 0x7e7   :  { %v2640_v20 = vrot.slane %v2628_v12, %v8405_v16 }
 0x7e8   :  { %v7074_v22 = vpop.f32.mrf.mxu1 }
 0x7e9   :  { %v2641_v24 = vmul.f32 %v2640_v20, %v2636_v14  ;;  %v9109_v26 = vmul.f32 %v2955_v18, %v2640_v20 }
 0x7eb   :  { %7076 = vmatpush3.msra.mxu0 %v2641_v24  ;;  %7081 = vmatpush3.msra.mxu1 %v2641_v24 }
 0x7ec   :  { %7078 = vmatmul.mubr.msk.f32.vlgmr.msra.gmra.mxu0 %vm926_vm4, %v2642_v28  ;;  %7083 = vmatmul.mubr.msk.f32.vlgmr.msra.gmra.mxu1 %vm926_vm4, %v6140_v43 }
 0x7ed   :  { %7085 = vmatprep.subr.mxu0 %v7518_v2  ;;  %7104 = vmatprep.subr.mxu1 %v7518_v2 }
 0x7ee   :  { %7086 = vmatpush3.msra.mxu0 %v9120_v32  ;;  %7105 = vmatpush3.msra.mxu1 %v9125_v36 }
 0x7ef   :  { %7087 = vmatprep.subr.mxu0 %v7518_v2  ;;  %7106 = vmatprep.subr.mxu1 %v7518_v2 }
 0x7f0   :  { %7088 = vmatpush3.msra.mxu0 %v9134_v49  ;;  %7107 = vmatpush3.msra.mxu1 %v9139_v62 }
 0x7f1   :  { %7089 = vmatprep.subr.mxu0 %v7518_v2  ;;  %7108 = vmatprep.subr.mxu1 %v7518_v2 }
 0x7f2   :  { %7090 = vmatpush3.msra.mxu0 %v9148_v50  ;;  %7109 = vmatpush3.msra.mxu1 %v9153_v0 }
 0x7f3   :  { %7091 = vmatprep.subr.mxu0 %v7518_v2  ;;  %7110 = vmatprep.subr.mxu1 %v7518_v2 }
 0x7f4   :  { %7092 = vmatpush3.msra.mxu0 %v9162_v51  ;;  %7111 = vmatpush3.msra.mxu1 %v9167_v42 }
 0x7f5   :  { %7093 = vmatprep.subr.mxu0 %v7518_v2  ;;  %7112 = vmatprep.subr.mxu1 %v7518_v2 }
 0x7f6   :  { %7094 = vmatpush3.msra.mxu0 %v2795_v52  ;;  %7113 = vmatpush3.msra.mxu1 %v6146_v45 }
 0x7f7   :  { %7095 = vmatprep.subr.mxu0 %v7518_v2  ;;  %7114 = vmatprep.subr.mxu1 %v7518_v2 }
 0x7f8   :  { %7096 = vmatpush3.msra.mxu0 %v2794_v54  ;;  %7115 = vmatpush3.msra.mxu1 %v6145_v55 }
 0x7f9   :  { %7097 = vmatprep.subr.mxu0 %v7518_v2  ;;  %7116 = vmatprep.subr.mxu1 %v7518_v2 }
 0x7fa   :  { %7098 = vmatpush3.msra.mxu0 %v2793_v56  ;;  %7117 = vmatpush3.msra.mxu1 %v6144_v57 }
 0x7fb   :  { %7099 = vmatprep.subr.mxu0 %v7518_v2  ;;  %7118 = vmatprep.subr.mxu1 %v7518_v2 }
 0x7fc   :  { %7101 = vmatprep.mubr.msk.f32.mxu0 %vm7519_vm3, %v7518_v2  ;;  %7120 = vmatprep.mubr.msk.f32.mxu1 %vm7519_vm3, %v7518_v2 }
 0x7fd   :  { %7100 = vmatpush3.msra.mxu0 %v2792_v58  ;;  %7119 = vmatpush3.msra.mxu1 %v6143_v59 }
 0x7fe   :  { %7123 = vmatprep.subr.mxu0 %v7518_v2  ;;  %7128 = vmatprep.subr.mxu1 %v7518_v2 }
 0x8ac   :  { %v2712_v60 = vpop.f32.mrf.mxu0  ;;  %v2787_v63 = vpop.f32.mrf.mxu1 }
 0x8ad   :  { %v2791_v3 = vmax.f32 %v2712_v60, %v2787_v63 }
 0x8ae   :  { %v7079_v7 = vpop.f32.mrf.mxu0  ;;  %v7084_v9 = vpop.f32.mrf.mxu1 }
 0x8af   :  { %7102 = vmatmul.mubr.msk.f32.vlgmr.msra.gmra.mxu0 %vm2291_vm7, %v2791_v3  ;;  %7121 = vmatmul.mubr.msk.f32.vlgmr.msra.gmra.mxu1 %vm2291_vm7, %v2791_v3 }
 0x8b0   :  { %7124 = vmatpush3.msra.mxu0 %v9109_v26  ;;  %7129 = vmatpush3.msra.mxu1 %v9109_v26 }
 0x8b1   :  { %7125 = vmatprep.mubr.msk.f32.mxu0 %vm7519_vm3, %v7518_v2  ;;  %7130 = vmatprep.mubr.msk.f32.mxu1 %vm7519_vm3, %v7518_v2 }
 0x8b2   :  { %7133 = vmatprep.subr.mxu0 %v7518_v2  ;;  %7152 = vmatprep.subr.mxu1 %v7518_v2 }
 0x8b3   :  { %7126 = vmatmul.mubr.msk.f32.vlgmr.msra.gmra.mxu0 %vm926_vm4, %v2957_v11  ;;  %7131 = vmatmul.mubr.msk.f32.vlgmr.msra.gmra.mxu1 %vm926_vm4, %v6153_v13 }
 0x8b4   :  { %7134 = vmatpush3.msra.mxu0 %v9120_v32  ;;  %7153 = vmatpush3.msra.mxu1 %v9125_v36 }
 0x8b5   :  { %7135 = vmatprep.subr.mxu0 %v7518_v2  ;;  %7154 = vmatprep.subr.mxu1 %v7518_v2 }
 0x8b6   :  { %7136 = vmatpush3.msra.mxu0 %v9134_v49  ;;  %7155 = vmatpush3.msra.mxu1 %v9139_v62 }
 0x8b7   :  { %7137 = vmatprep.subr.mxu0 %v7518_v2  ;;  %7156 = vmatprep.subr.mxu1 %v7518_v2 }
 0x8b8   :  { %7138 = vmatpush3.msra.mxu0 %v9148_v50  ;;  %7157 = vmatpush3.msra.mxu1 %v9153_v0 }
 0x8b9   :  { %7139 = vmatprep.subr.mxu0 %v7518_v2  ;;  %7158 = vmatprep.subr.mxu1 %v7518_v2 }
 0x8ba   :  { %7140 = vmatpush3.msra.mxu0 %v9162_v51  ;;  %7159 = vmatpush3.msra.mxu1 %v9167_v42 }
 0x8bb   :  { %7141 = vmatprep.subr.mxu0 %v7518_v2  ;;  %7160 = vmatprep.subr.mxu1 %v7518_v2 }
 0x8bc   :  { %7142 = vmatpush3.msra.mxu0 %v2795_v52  ;;  %7161 = vmatpush3.msra.mxu1 %v6146_v45  ;;  %v3782_v52 = vld [vmem:[%s9736_s15 + $0x18] sm:$0xff]  ;;  %v3781_v45 = vld [vmem:[%s9736_s15 + $0x10] sm:$0xff] }
 0x8bd   :  { %7143 = vmatprep.subr.mxu0 %v7518_v2  ;;  %7162 = vmatprep.subr.mxu1 %v7518_v2 }
 0x8be   :  { %7144 = vmatpush3.msra.mxu0 %v2794_v54  ;;  %7163 = vmatpush3.msra.mxu1 %v6145_v55  ;;  %v3780_v54 = vld [vmem:[%s9736_s15 + $0x8] sm:$0xff]  ;;  %v3779_v55 = vld [vmem:[%s9736_s15] sm:$0xff] }
 0x8bf   :  { %7145 = vmatprep.subr.mxu0 %v7518_v2  ;;  %7164 = vmatprep.subr.mxu1 %v7518_v2 }
 0x8c0   :  { %7146 = vmatpush3.msra.mxu0 %v2793_v56  ;;  %7165 = vmatpush3.msra.mxu1 %v6144_v57  ;;  %v6180_v56 = vld [vmem:[%s9735_s14] ss:$0 sm:$0xff] }
 0x8c1   :  { %7147 = vmatprep.subr.mxu0 %v7518_v2  ;;  %7166 = vmatprep.subr.mxu1 %v7518_v2 }
 0x8c2   :  { %7148 = vmatpush3.msra.mxu0 %v2792_v58  ;;  %7167 = vmatpush3.msra.mxu1 %v6143_v59 }
 0x8c3   :  { %7149 = vmatprep.mubr.msk.f32.mxu0 %vm7519_vm3, %v7518_v2  ;;  %7168 = vmatprep.mubr.msk.f32.mxu1 %vm7519_vm3, %v7518_v2 }
 0x8c4   :  { %7171 = vmatprep.subr.mxu0 %v7518_v2  ;;  %7186 = vmatprep.subr.mxu1 %v7518_v2 }
 0x96f   :  { %v2869_v15 = vpop.f32.mrf.mxu0  ;;  %v2948_v17 = vpop.f32.mrf.mxu1 }
 0x970   :  { %v2952_v19 = vmax.f32 %v2869_v15, %v2948_v17 }
 0x971   :  { %v7103_v21 = vpop.f32.mrf.mxu0  ;;  %v7122_v23 = vpop.f32.mrf.mxu1 }
 0x972   :  { %2954 = vst.msk [vmem:[#allocation3] sm:$0x3f] %vm2953_vm8, %v2952_v19 }
 0x973   :  { %v3027_v25 = vpop.f32.mrf.mxu0  ;;  %v3101_v27 = vpop.f32.mrf.mxu1 }
 0x974   :  { %v3105_v29 = vmax.f32 %v3027_v25, %v3101_v27 }
 0x975   :  { %v7127_v37 = vpop.f32.mrf.mxu0  ;;  %v7132_v38 = vpop.f32.mrf.mxu1 }
 0x976   :  { %7150 = vmatmul.mubr.msk.f32.vlgmr.msra.gmra.mxu0 %vm2291_vm7, %v3105_v29  ;;  %7169 = vmatmul.mubr.msk.f32.vlgmr.msra.gmra.mxu1 %vm2291_vm7, %v3105_v29 }
 0x977   :  { %7172 = vmatpush3.msra.mxu0 %v6170_v31  ;;  %7187 = vmatpush3.msra.mxu1 %v9266_v34 }
 0x978   :  { %7173 = vmatprep.subr.mxu0 %v7518_v2  ;;  %7188 = vmatprep.subr.mxu1 %v7518_v2 }
 0x979   :  { %7174 = vmatpush3.msra.mxu0 %v6169_v39  ;;  %7189 = vmatpush3.msra.mxu1 %v9276_v40  ;;  %v3275_v61 = vld [vmem:[#allocation3 + $0x1] sm:$0xf] }
 0x97a   :  { %7175 = vmatprep.subr.mxu0 %v7518_v2  ;;  %7190 = vmatprep.subr.mxu1 %v7518_v2  ;;  %v3268_v41 = vld [vmem:[#allocation3] sm:$0xf] }
 0x97b   :  { %7176 = vmatpush3.msra.mxu0 %v6168_v44  ;;  %7191 = vmatpush3.msra.mxu1 %v9287_v35  ;;  %v3430_v12 = vld [vmem:[#allocation3 + $0x2] sm:$0xf] }
 0x97c   :  { %7177 = vmatprep.subr.mxu0 %v7518_v2  ;;  %7192 = vmatprep.subr.mxu1 %v7518_v2 }
 0x97d   :  { %7178 = vmatpush3.msra.mxu0 %v6167_v53  ;;  %7193 = vmatpush3.msra.mxu1 %v9298_v46 }
 0x97e   :  { %7179 = vmatprep.subr.mxu0 %v7518_v2  ;;  %7194 = vmatprep.subr.mxu1 %v7518_v2 }
 0x97f   :  { %7180 = vmatpush3.msra.mxu0 %v6166_v30  ;;  %7195 = vmatpush3.msra.mxu1 %v9309_v47 }
 0x980   :  { %7181 = vmatprep.subr.mxu0 %v7518_v2  ;;  %7196 = vmatprep.subr.mxu1 %v7518_v2 }
 0x981   :  { %7182 = vmatpush3.msra.mxu0 %v6165_v48  ;;  %7183 = vmatprep.mubr.msk.f32.mxu0 %vm7519_vm3, %v7518_v2 }
 0x982   :  { %7197 = vmatpush3.msra.mxu1 %v3269_v33  ;;  %7198 = vmatprep.mubr.msk.f32.mxu1 %vm7519_vm3, %v7518_v2 }
 0x983   :  { %7184 = vmatmul.mubr.msk.f32.vlgmr.msra.gmra.mxu0 %vm3283_vm9, %v3275_v61  ;;  %7199 = vmatmul.mubr.msk.f32.vlgmr.msra.gmra.mxu1 %vm3283_vm9, %v3268_v41 }
 0x984   :  { %7201 = vmatprep.subr.mxu0 %v7518_v2  ;;  %7213 = vmatprep.mubr.msk.f32.mxu0 %vm7519_vm3, %v7518_v2 }
 0x985   :  { %7202 = vmatpush3.msra.mxu0 %v6178_v5  ;;  %7216 = vmatprep.subr.mxu1 %v7518_v2 }
 0x986   :  { %7203 = vmatprep.subr.mxu0 %v7518_v2  ;;  %7217 = vmatpush3.msra.mxu1 %v6170_v31 }
 0x987   :  { %7204 = vmatpush3.msra.mxu0 %v9336_v1  ;;  %7218 = vmatprep.subr.mxu1 %v7518_v2 }
 0x988   :  { %7205 = vmatprep.subr.mxu0 %v7518_v2  ;;  %7219 = vmatpush3.msra.mxu1 %v6169_v39 }
 0x989   :  { %7206 = vmatpush3.msra.mxu0 %v6176_v4  ;;  %7220 = vmatprep.subr.mxu1 %v7518_v2 }
 0x98a   :  { %7207 = vmatprep.subr.mxu0 %v7518_v2  ;;  %7221 = vmatpush3.msra.mxu1 %v6168_v44 }
 0x98b   :  { %7208 = vmatpush3.msra.mxu0 %v6175_v6  ;;  %7222 = vmatprep.subr.mxu1 %v7518_v2 }
 0x98c   :  { %7209 = vmatprep.subr.mxu0 %v7518_v2  ;;  %7223 = vmatpush3.msra.mxu1 %v6167_v53 }
 0x98d   :  { %7210 = vmatpush3.msra.mxu0 %v6174_v8  ;;  %7224 = vmatprep.subr.mxu1 %v7518_v2 }
 0x98e   :  { %7211 = vmatprep.subr.mxu0 %v7518_v2  ;;  %7225 = vmatpush3.msra.mxu1 %v6166_v30 }
 0x98f   :  { %7212 = vmatpush3.msra.mxu0 %v6173_v10  ;;  %7226 = vmatprep.subr.mxu1 %v7518_v2 }
 0x990   :  { %7214 = vmatmul.mubr.msk.f32.vlgmr.msra.gmra.mxu0 %vm3283_vm9, %v3430_v12  ;;  %7231 = vmatprep.subr.mxu0 %v7518_v2 }
 0x991   :  { %7232 = vmatpush3.msra.mxu0 %v9266_v34  ;;  %7227 = vmatpush3.msra.mxu1 %v6165_v48 }
 0x992   :  { %7233 = vmatprep.subr.mxu0 %v7518_v2  ;;  %7228 = vmatprep.mubr.msk.f32.mxu1 %vm7519_vm3, %v7518_v2 }
 0x993   :  { %7234 = vmatpush3.msra.mxu0 %v9276_v40  ;;  %7243 = vmatprep.mubr.msk.f32.mxu0 %vm7519_vm3, %v7518_v2 }
 0x994   :  { %7235 = vmatprep.subr.mxu0 %v7518_v2  ;;  %7246 = vmatprep.subr.mxu1 %v7518_v2 }
 0x995   :  { %7236 = vmatpush3.msra.mxu0 %v9287_v35 }
 0x996   :  { %7237 = vmatprep.subr.mxu0 %v7518_v2 }
 0x997   :  { %7238 = vmatpush3.msra.mxu0 %v9298_v46 }
 0x998   :  { %7239 = vmatprep.subr.mxu0 %v7518_v2 }
 0x999   :  { %7240 = vmatpush3.msra.mxu0 %v9309_v47 }
 0x99a   :  { %7241 = vmatprep.subr.mxu0 %v7518_v2 }
 0x99b   :  { %7242 = vmatpush3.msra.mxu0 %v3269_v33 }
 0x99c   :  { %7261 = vmatprep.subr.mxu0 %v7518_v2 }
 0xa36   :  { %v3183_v14 = vpop.f32.mrf.mxu0  ;;  %v3261_v18 = vpop.f32.mrf.mxu1 }
 0xa37   :  { %v3265_v20 = vmax.f32 %v3183_v14, %v3261_v18 }
 0xa38   :  { %v7151_v22 = vpop.f32.mrf.mxu0  ;;  %v7170_v24 = vpop.f32.mrf.mxu1 }
 0xa39   :  { %3267 = vst.msk [vmem:[#allocation3 + $0x8] sm:$0x3f] %vm2953_vm8, %v3265_v20  ;;  %v3937_v22 = vld [vmem:[%s9737_s16] sm:$0xff] }
 0xa40   :  { %v3522_v26 = vld [vmem:[#allocation3 + $0x9] sm:$0xf] }
 0xa41   :  { %v3521_v28 = vld [vmem:[#allocation3 + $0x8] sm:$0xf]  ;;  %7229 = vmatmul.mubr.msk.f32.vlgmr.msra.gmra.mxu1 %vm3283_vm9, %v3522_v26 }
 0xa42   :  { %7244 = vmatmul.mubr.msk.f32.vlgmr.msra.gmra.mxu0 %vm3283_vm9, %v3521_v28  ;;  %7247 = vmatpush3.msra.mxu1 %v6178_v5  ;;  %v3669_v50 = vld [vmem:[#allocation3 + $0xa] sm:$0xf] }
 0xa43   :  { %7258 = vmatprep.mubr.msk.f32.mxu1 %vm7519_vm3, %v7518_v2  ;;  %v3353_v43 = vpop.f32.mrf.mxu0  ;;  %v3426_v32 = vpop.f32.mrf.mxu1  ;;  %7248 = vmatprep.subr.mxu1 %v7518_v2 }
 0xa44   :  { %7269 = vmatprep.mubr.msk.f32.mxu0 %vm7519_vm3, %v7518_v2  ;;  %v3427_v36 = vadd.f32 %v3426_v32, %v3353_v43  ;;  %7249 = vmatpush3.msra.mxu1 %v9336_v1 }
 0xa45   :  { %v7185_v49 = vpop.f32.mrf.mxu0  ;;  %v7200_v62 = vpop.f32.mrf.mxu1  ;;  %7250 = vmatprep.subr.mxu1 %v7518_v2  ;;  %7262 = vmatpush3.msra.mxu0 %v3782_v52 }
 0xa46   :  { %7251 = vmatpush3.msra.mxu1 %v6176_v4  ;;  %7263 = vmatprep.subr.mxu0 %v7518_v2 }
 0xa47   :  { %7252 = vmatprep.subr.mxu1 %v7518_v2  ;;  %7264 = vmatpush3.msra.mxu0 %v3781_v45 }
 0xa48   :  { %7253 = vmatpush3.msra.mxu1 %v6175_v6  ;;  %7265 = vmatprep.subr.mxu0 %v7518_v2 }
 0xa49   :  { %7254 = vmatprep.subr.mxu1 %v7518_v2  ;;  %7266 = vmatpush3.msra.mxu0 %v3780_v54 }
 0xa4a   :  { %7255 = vmatpush3.msra.mxu1 %v6174_v8  ;;  %7267 = vmatprep.subr.mxu0 %v7518_v2 }
 0xa4b   :  { %7256 = vmatprep.subr.mxu1 %v7518_v2  ;;  %7268 = vmatpush3.msra.mxu0 %v3779_v55 }
 0xa4c   :  { %7257 = vmatpush3.msra.mxu1 %v6173_v10  ;;  %7283 = vmatprep.subr.mxu0 %v7518_v2 }
 0xa4d   :  { %7259 = vmatmul.mubr.msk.f32.vlgmr.msra.gmra.mxu1 %vm3283_vm9, %v3669_v50  ;;  %7272 = vmatprep.subr.mxu1 %v7518_v2 }
 0xa4e   :  { %7280 = vmatprep.mubr.msk.f32.mxu1 %vm7519_vm3, %v7518_v2  ;;  %7273 = vmatpush3.msra.mxu1 %v3782_v52 }
 0xa4f   :  { %7274 = vmatprep.subr.mxu1 %v7518_v2 }
 0xa50   :  { %v3507_v0 = vpop.f32.mrf.mxu0  ;;  %7275 = vmatpush3.msra.mxu1 %v3781_v45 }
 0xa51   :  { %v3511_v51 = vadd.f32 %v3507_v0, %v3427_v36  ;;  %7276 = vmatprep.subr.mxu1 %v7518_v2 }
 0xa52   :  { %v7215_v42 = vpop.f32.mrf.mxu0  ;;  %7277 = vmatpush3.msra.mxu1 %v3780_v54 }
 0xa53   :  { %7278 = vmatprep.subr.mxu1 %v7518_v2  ;;  %v3519_v57 = vadd.f32 %v6180_v56, %v3511_v51 }
 0xa54   :  { %7279 = vmatpush3.msra.mxu1 %v3779_v55 }
 0xa55   :  { %7288 = vmatprep.subr.mxu1 %v7518_v2  ;;  %v9422_v60 = vmax.f32 %v3519_v57, 0.0 }
 0xa57   :  { %v3754_v7 = vmul.f32 %v9422_v60, %v9422_v60  ;;  %v3747_v9 = vsel %vm3746_vm10, %v9422_v60, 0.0 }
 0xa58   :  { %v3748_v13 = vrot.slane %v3747_v9, 4 }
 0xa59   :  { %v3755_v11 = vsel %vm3746_vm10, %v3754_v7, 0.0  ;;  %v6190_v7 = vld [vmem:[%s9738_s17 + $0x4] sm:$0xf] }
 0xa5a   :  { %v3756_v17 = vrot.slane %v3755_v11, 4  ;;  %v3749_v23 = vadd.f32 %v3748_v13, %v3747_v9  ;;  %v6197_v9 = vld [vmem:[%s9739_s18 + $0x38] sm:$0xff]  ;;  %v6196_v13 = vld [vmem:[%s9739_s18 + $0x30] sm:$0xff] }
 0xa5c   :  { %v3757_v29 = vadd.f32 %v3756_v17, %v3755_v11  ;;  %v3750_v34 = vrot.slane %v3749_v23, 2  ;;  %v4251_v11 = vld [vmem:[%s9739_s18 + $0x10] sm:$0xff]  ;;  %v6195_v17 = vld [vmem:[%s9739_s18 + $0x28] sm:$0xff] }
 0xa5e   :  { %v3758_v39 = vrot.slane %v3757_v29, 2  ;;  %v3751_v35 = vadd.f32 %v3750_v34, %v3749_v23  ;;  %v4405_v34 = vld [vmem:[%s9738_s17] sm:$0xf] }
 0xa60   :  { %v3759_v30 = vadd.f32 %v3758_v39, %v3757_v29  ;;  %v3752_v33 = vrot.slane %v3751_v35, 1 }
 0xa62   :  { %v3760_v5 = vrot.slane %v3759_v30, 1  ;;  %v3753_v6 = vadd.f32 %v3752_v33, %v3751_v35 }
 0xa64   :  { %v3761_v14 = vadd.f32 %v3760_v5, %v3759_v30  ;;  %v4714_v5 = vld [vmem:[%s9740_s19 + $0x10] sm:$0xff] }
 0xb01   :  { %v3592_v58 = vpop.f32.mrf.mxu1 }
 0xb02   :  { %v3665_v59 = vpop.f32.mrf.mxu0 }
 0xb03   :  { %v7230_v63 = vpop.f32.mrf.mxu1  ;;  %v3666_v15 = vadd.f32 %v3665_v59, %v3592_v58 }
 0xb04   :  { %v7245_v3 = vpop.f32.mrf.mxu0 }
 0xb05   :  { %v4094_v3 = vld [vmem:[%s9738_s17] sm:$0xf] }
 0xb0d   :  { %v3739_v19 = vpop.f32.mrf.mxu1 }
 0xb0e   :  { %v3743_v21 = vadd.f32 %v3739_v19, %v3666_v15  ;;  %v4250_v15 = vld [vmem:[%s9739_s18 + $0x8] sm:$0xff]  ;;  %v4249_v19 = vld [vmem:[%s9739_s18] sm:$0xff] }
 0xb0f   :  { %v7260_v25 = vpop.f32.mrf.mxu1 }
 0xb10   :  { %v3744_v27 = vadd.f32 %v6180_v56, %v3743_v21  ;;  %v6194_v21 = vld [vmem:[%s9739_s18 + $0x20] sm:$0xff] }
 0xb12   :  { %v9429_v31 = vmax.f32 %v3744_v27, 0.0 }
 0xb14   :  { %v3762_v37 = vsel %vm3746_vm10, %v9429_v31, 0.0  ;;  %v3770_v38 = vmul.f32 %v9429_v31, %v9429_v31 }
 0xb15   :  { %v3763_v40 = vrot.slane %v3762_v37, 4 }
 0xb16   :  { %v3771_v44 = vsel %vm3746_vm10, %v3770_v38, 0.0 }
 0xb17   :  { %v3764_v53 = vadd.f32 %v3763_v40, %v3762_v37  ;;  %v3772_v46 = vrot.slane %v3771_v44, 4  ;;  %v6201_v37 = vld [vmem:[%s9738_s17 + $0x4] sm:$0xf] }
 0xb19   :  { %v3765_v47 = vrot.slane %v3764_v53, 2  ;;  %v3773_v48 = vadd.f32 %v3772_v46, %v3771_v44 }
 0xb1b   :  { %v3766_v61 = vadd.f32 %v3765_v47, %v3764_v53  ;;  %v3774_v41 = vrot.slane %v3773_v48, 2  ;;  %v6213_v47 = vld [vmem:[%s9740_s19 + $0x38] sm:$0xff] }
 0xb1d   :  { %v3767_v1 = vrot.slane %v3766_v61, 1  ;;  %v3775_v4 = vadd.f32 %v3774_v41, %v3773_v48  ;;  %v4715_v48 = vld [vmem:[%s9740_s19 + $0x18] sm:$0xff]  ;;  %v6212_v41 = vld [vmem:[%s9740_s19 + $0x30] sm:$0xff] }
 0xb1f   :  { %v3768_v8 = vadd.f32 %v3767_v1, %v3766_v61  ;;  %v3776_v10 = vrot.slane %v3775_v4, 1  ;;  %v6211_v1 = vld [vmem:[%s9740_s19 + $0x28] sm:$0xff] }
 0xb21   :  { %v3769_v12 = vadd.f32 %v3768_v8, %v3753_v6  ;;  %v3777_v18 = vadd.f32 %v3776_v10, %v3775_v4  ;;  %v4713_v4 = vld [vmem:[%s9740_s19 + $0x8] sm:$0xff]  ;;  %v6210_v6 = vld [vmem:[%s9740_s19 + $0x20] sm:$0xff] }
 0xb22   :  { %v4712_v8 = vld [vmem:[%s9740_s19] sm:$0xff] }
 0xb23   :  { %7270 = vmatmul.mubr.msk.f32.vlgmr.msra.gmra.mxu0 %vm3783_vm11, %v3769_v12  ;;  %v3778_v20 = vadd.f32 %v3777_v18, %v3761_v14 }
 0xb24   :  { %7285 = vmatprep.mubr.msk.f32.mxu0 %vm7519_vm3, %v7518_v2  ;;  %7284 = vmatpush3.msra.mxu0 %v3937_v22 }
 0xb25   :  { %7281 = vmatmul.mubr.msk.f32.vlgmr.msra.gmra.mxu1 %vm3783_vm11, %v3778_v20  ;;  %7293 = vmatprep.subr.mxu0 %v7518_v2 }
 0xb26   :  { %7290 = vmatprep.mubr.msk.f32.mxu1 %vm7519_vm3, %v7518_v2  ;;  %7289 = vmatpush3.msra.mxu1 %v3937_v22 }
 0xb27   :  { %7298 = vmatprep.subr.mxu1 %v7518_v2 }
 0xbe3   :  { %v3853_v24 = vpop.f32.mrf.mxu0 }
 0xbe4   :  { %v3857_v26 = vmul.f32 0.03125, %v3853_v24 }
 0xbe5   :  { %v7271_v28 = vpop.f32.mrf.mxu0  ;;  %v3927_v43 = vpop.f32.mrf.mxu1 }
 0xbe6   :  { %v3932_v32 = vmul.f32 %v3857_v26, %v3857_v26  ;;  %v3931_v36 = vmul.f32 0.03125, %v3927_v43  ;;  %7286 = vmatmul.mubr.msk.f32.vlgmr.msra.gmra.mxu0 %vm926_vm4, %v3857_v26 }
 0xbe7   :  { %v7282_v49 = vpop.f32.mrf.mxu1  ;;  %7295 = vmatprep.mubr.msk.f32.mxu0 %vm7519_vm3, %v7518_v2 }
 0xbe8   :  { %v3933_v62 = vsub.f32 %v3931_v36, %v3932_v32 }
 0xbea   :  { %v3934_v50 = vmax.f32 %v3933_v62, 0.0 }
 0xbec   :  { %v3935_v0 = vadd.f32 1e-05, %v3934_v50  ;;  %v5062_v50 = vld [vmem:[%s9742_s21 + $0x10] sm:$0xff] }
 0xbee   :  { %7492 = vrsqrt.f32 %v3935_v0  ;;  %v5061_v0 = vld [vmem:[%s9742_s21 + $0x8] sm:$0xff] }
 0xbfb   :  { %v7493_v51 = vpop.eup %7492 }
 0xbfc   :  { %7291 = vmatmul.mubr.msk.f32.vlgmr.msra.gmra.mxu1 %vm926_vm4, %v7493_v51  ;;  %v5060_v51 = vld [vmem:[%s9742_s21] sm:$0xff] }
 0xbfd   :  { %7300 = vmatprep.mubr.msk.f32.mxu1 %vm7519_vm3, %v7518_v2 }
 0xca6   :  { %v4007_v42 = vpop.f32.mrf.mxu0 }
 0xca7   :  { %v4087_v45 = vrot.slane %v4007_v42, %v8405_v16  ;;  %v6216_v42 = vld [vmem:[%s9741_s20] ss:$0 sm:$0xff] }
 0xca8   :  { %v7287_v52 = vpop.f32.mrf.mxu0 }
 0xca9   :  { %v4088_v55 = vsub.f32 %v9422_v60, %v4087_v45  ;;  %v4403_v56 = vsub.f32 %v9429_v31, %v4087_v45  ;;  %v4252_v60 = vld [vmem:[%s9739_s18 + $0x18] sm:$0xff] }
 0xcbc   :  { %v4080_v54 = vpop.f32.mrf.mxu1 }
 0xcbd   :  { %v4092_v57 = vrot.slane %v4080_v54, %v8405_v16 }
 0xcbe   :  { %v7292_v58 = vpop.f32.mrf.mxu1 }
 0xcbf   :  { %v4093_v59 = vmul.f32 %v4092_v57, %v4088_v55  ;;  %v4404_v63 = vmul.f32 %v4403_v56, %v4092_v57 }
 0xcc1   :  { %7294 = vmatpush3.msk.msra.mxu0 %vm4099_vm12, %v4093_v59  ;;  %7299 = vmatpush3.msk.msra.mxu1 %vm4099_vm12, %v4093_v59 }
 0xcc2   :  { %7296 = vmatmul.mubr.msk.f32.vlgmr.msra.gmra.mxu0 %vm4095_vm13, %v4094_v3  ;;  %7301 = vmatmul.mubr.msk.f32.vlgmr.msra.gmra.mxu1 %vm4095_vm13, %v6190_v7 }
 0xcc3   :  { %7303 = vmatprep.subr.mxu0 %v7518_v2  ;;  %7314 = vmatprep.subr.mxu1 %v7518_v2 }
 0xcc4   :  { %7304 = vmatpush3.msra.mxu0 %v4252_v60  ;;  %7315 = vmatpush3.msra.mxu1 %v6197_v9 }
 0xcc5   :  { %7305 = vmatprep.subr.mxu0 %v7518_v2  ;;  %7316 = vmatprep.subr.mxu1 %v7518_v2 }
 0xcc6   :  { %7306 = vmatpush3.msra.mxu0 %v4251_v11  ;;  %7317 = vmatpush3.msra.mxu1 %v6196_v13 }
 0xcc7   :  { %7307 = vmatprep.subr.mxu0 %v7518_v2  ;;  %7318 = vmatprep.subr.mxu1 %v7518_v2 }
 0xcc8   :  { %7308 = vmatpush3.msra.mxu0 %v4250_v15  ;;  %7319 = vmatpush3.msra.mxu1 %v6195_v17 }
 0xcc9   :  { %7309 = vmatprep.subr.mxu0 %v7518_v2  ;;  %7320 = vmatprep.subr.mxu1 %v7518_v2 }
 0xcca   :  { %7311 = vmatprep.mubr.msk.f32.mxu0 %vm7519_vm3, %v7518_v2  ;;  %7322 = vmatprep.mubr.msk.f32.mxu1 %vm7519_vm3, %v7518_v2 }
 0xccb   :  { %7310 = vmatpush3.msra.mxu0 %v4249_v19  ;;  %7321 = vmatpush3.msra.mxu1 %v6194_v21 }
 0xccc   :  { %7325 = vmatprep.subr.mxu0 %v7518_v2  ;;  %7330 = vmatprep.subr.mxu1 %v7518_v2 }
 0xd82   :  { %v4169_v23 = vpop.f32.mrf.mxu0  ;;  %v4244_v25 = vpop.f32.mrf.mxu1 }
 0xd83   :  { %v4248_v27 = vmax.f32 %v4169_v23, %v4244_v25 }
 0xd84   :  { %v7297_v29 = vpop.f32.mrf.mxu0  ;;  %v7302_v31 = vpop.f32.mrf.mxu1 }
 0xd85   :  { %7312 = vmatmul.mubr.msk.f32.vlgmr.msra.gmra.mxu0 %vm3783_vm11, %v4248_v27  ;;  %7323 = vmatmul.mubr.msk.f32.vlgmr.msra.gmra.mxu1 %vm3783_vm11, %v4248_v27 }
 0xd86   :  { %7326 = vmatpush3.msk.msra.mxu0 %vm4099_vm12, %v4404_v63  ;;  %7331 = vmatpush3.msk.msra.mxu1 %vm4099_vm12, %v4404_v63 }
 0xd87   :  { %7327 = vmatprep.mubr.msk.f32.mxu0 %vm7519_vm3, %v7518_v2  ;;  %7332 = vmatprep.mubr.msk.f32.mxu1 %vm7519_vm3, %v7518_v2 }
 0xd88   :  { %7335 = vmatprep.subr.mxu0 %v7518_v2  ;;  %7346 = vmatprep.subr.mxu1 %v7518_v2 }
 0xd89   :  { %7328 = vmatmul.mubr.msk.f32.vlgmr.msra.gmra.mxu0 %vm4095_vm13, %v4405_v34  ;;  %7333 = vmatmul.mubr.msk.f32.vlgmr.msra.gmra.mxu1 %vm4095_vm13, %v6201_v37 }
 0xd8a   :  { %7336 = vmatpush3.msra.mxu0 %v4252_v60  ;;  %7347 = vmatpush3.msra.mxu1 %v6197_v9 }
 0xd8b   :  { %7337 = vmatprep.subr.mxu0 %v7518_v2  ;;  %7348 = vmatprep.subr.mxu1 %v7518_v2 }
 0xd8c   :  { %7338 = vmatpush3.msra.mxu0 %v4251_v11  ;;  %7349 = vmatpush3.msra.mxu1 %v6196_v13 }
 0xd8d   :  { %7339 = vmatprep.subr.mxu0 %v7518_v2  ;;  %7350 = vmatprep.subr.mxu1 %v7518_v2 }
 0xd8e   :  { %7340 = vmatpush3.msra.mxu0 %v4250_v15  ;;  %7351 = vmatpush3.msra.mxu1 %v6195_v17 }
 0xd8f   :  { %7341 = vmatprep.subr.mxu0 %v7518_v2  ;;  %7352 = vmatprep.subr.mxu1 %v7518_v2 }
 0xd90   :  { %7342 = vmatpush3.msra.mxu0 %v4249_v19  ;;  %7353 = vmatpush3.msra.mxu1 %v6194_v21 }
 0xd91   :  { %7343 = vmatprep.mubr.msk.f32.mxu0 %vm7519_vm3, %v7518_v2  ;;  %7354 = vmatprep.mubr.msk.f32.mxu1 %vm7519_vm3, %v7518_v2 }
 0xd92   :  { %7357 = vmatprep.subr.mxu0 %v7518_v2  ;;  %7368 = vmatprep.subr.mxu1 %v7518_v2 }
 0xe45   :  { %v4322_v38 = vpop.f32.mrf.mxu0  ;;  %v4397_v39 = vpop.f32.mrf.mxu1 }
 0xe46   :  { %v4401_v40 = vmax.f32 %v4322_v38, %v4397_v39 }
 0xe47   :  { %v7313_v44 = vpop.f32.mrf.mxu0  ;;  %v7324_v35 = vpop.f32.mrf.mxu1 }
 0xe48   :  { %4402 = vst.msk [vmem:[#allocation4] sm:$0xf] %vm3746_vm10, %v4401_v40 }
 0xe49   :  { %v4478_v53 = vpop.f32.mrf.mxu0  ;;  %v4552_v46 = vpop.f32.mrf.mxu1 }
 0xe4a   :  { %v4556_v30 = vmax.f32 %v4478_v53, %v4552_v46 }
 0xe4b   :  { %v7329_v33 = vpop.f32.mrf.mxu0  ;;  %v7334_v61 = vpop.f32.mrf.mxu1 }
 0xe4c   :  { %7344 = vmatmul.mubr.msk.f32.vlgmr.msra.gmra.mxu0 %vm3783_vm11, %v4556_v30  ;;  %7355 = vmatmul.mubr.msk.f32.vlgmr.msra.gmra.mxu1 %vm3783_vm11, %v4556_v30 }
 0xe4d   :  { %7358 = vmatpush3.msra.mxu0 %v6213_v47  ;;  %7369 = vmatpush3.msra.mxu1 %v4715_v48 }
 0xe4e   :  { %7359 = vmatprep.subr.mxu0 %v7518_v2  ;;  %7370 = vmatprep.subr.mxu1 %v7518_v2 }
 0xe4f   :  { %7360 = vmatpush3.msra.mxu0 %v6212_v41  ;;  %7371 = vmatpush3.msra.mxu1 %v4714_v5  ;;  %v4716_v10 = vld [vmem:[#allocation4 + $0x1] sm:$0x7] }
 0xe50   :  { %7361 = vmatprep.subr.mxu0 %v7518_v2  ;;  %7372 = vmatprep.subr.mxu1 %v7518_v2  ;;  %v4711_v12 = vld [vmem:[#allocation4] sm:$0x7] }
 0xe51   :  { %7362 = vmatpush3.msra.mxu0 %v6211_v1  ;;  %7373 = vmatpush3.msra.mxu1 %v4713_v4 }
 0xe52   :  { %7363 = vmatprep.subr.mxu0 %v7518_v2  ;;  %7374 = vmatprep.subr.mxu1 %v7518_v2 }
 0xe53   :  { %7364 = vmatpush3.msra.mxu0 %v6210_v6  ;;  %7365 = vmatprep.mubr.msk.f32.mxu0 %vm7519_vm3, %v7518_v2 }
 0xe54   :  { %7375 = vmatpush3.msra.mxu1 %v4712_v8  ;;  %7376 = vmatprep.mubr.msk.f32.mxu1 %vm7519_vm3, %v7518_v2 }
 0xe55   :  { %7366 = vmatmul.mubr.msk.f32.vlgmr.msra.gmra.mxu0 %vm3783_vm11, %v4716_v10  ;;  %7377 = vmatmul.mubr.msk.f32.vlgmr.msra.gmra.mxu1 %vm3783_vm11, %v4711_v12 }
 0xe56   :  { %7379 = vmatprep.subr.mxu0 %v7518_v2  ;;  %7390 = vmatprep.subr.mxu1 %v7518_v2 }
 0xe57   :  { %7380 = vmatpush3.msra.mxu0 %v6213_v47  ;;  %7391 = vmatpush3.msra.mxu1 %v4715_v48 }
 0xe58   :  { %7381 = vmatprep.subr.mxu0 %v7518_v2  ;;  %7392 = vmatprep.subr.mxu1 %v7518_v2 }
 0xe59   :  { %7382 = vmatpush3.msra.mxu0 %v6212_v41  ;;  %7393 = vmatpush3.msra.mxu1 %v4714_v5 }
 0xe5a   :  { %7383 = vmatprep.subr.mxu0 %v7518_v2  ;;  %7394 = vmatprep.subr.mxu1 %v7518_v2 }
 0xe5b   :  { %7384 = vmatpush3.msra.mxu0 %v6211_v1  ;;  %7395 = vmatpush3.msra.mxu1 %v4713_v4  ;;  %v5217_v4 = vld [vmem:[%s9743_s22] sm:$0xff] }
 0xe5c   :  { %7385 = vmatprep.subr.mxu0 %v7518_v2  ;;  %7396 = vmatprep.subr.mxu1 %v7518_v2 }
 0xe5d   :  { %7386 = vmatpush3.msra.mxu0 %v6210_v6  ;;  %7387 = vmatprep.mubr.msk.f32.mxu0 %vm7519_vm3, %v7518_v2 }
 0xe5e   :  { %7397 = vmatpush3.msra.mxu1 %v4712_v8  ;;  %7398 = vmatprep.mubr.msk.f32.mxu1 %vm7519_vm3, %v7518_v2 }
 0xe5f   :  { %7401 = vmatprep.subr.mxu0 %v7518_v2  ;;  %7410 = vmatprep.subr.mxu1 %v7518_v2 }
 0xf0c   :  { %v4630_v14 = vpop.f32.mrf.mxu0  ;;  %v4704_v18 = vpop.f32.mrf.mxu1 }
 0xf0d   :  { %v4708_v20 = vmax.f32 %v4630_v14, %v4704_v18 }
 0xf0e   :  { %v7345_v22 = vpop.f32.mrf.mxu0  ;;  %v7356_v24 = vpop.f32.mrf.mxu1 }
 0xf0f   :  { %4710 = vst.msk [vmem:[#allocation4 + $0x4] sm:$0xf] %vm3746_vm10, %v4708_v20 }
 0xf15   :  { %v4791_v26 = vpop.f32.mrf.mxu0  ;;  %v4864_v28 = vpop.f32.mrf.mxu1 }
 0xf16   :  { %v4865_v43 = vadd.f32 %v4864_v28, %v4791_v26  ;;  %v4878_v32 = vld [vmem:[#allocation4 + $0x5] sm:$0x7] }
 0xf17   :  { %v4877_v36 = vld [vmem:[#allocation4 + $0x4] sm:$0x7]  ;;  %v7367_v49 = vpop.f32.mrf.mxu0  ;;  %v7378_v62 = vpop.f32.mrf.mxu1  ;;  %7388 = vmatmul.mubr.msk.f32.vlgmr.msra.gmra.mxu0 %vm3783_vm11, %v4878_v32 }
 0xf18   :  { %7399 = vmatmul.mubr.msk.f32.vlgmr.msra.gmra.mxu1 %vm3783_vm11, %v4877_v36  ;;  %7407 = vmatprep.mubr.msk.f32.mxu0 %vm7519_vm3, %v7518_v2  ;;  %v4875_v52 = vadd.f32 %v6216_v42, %v4865_v43 }
 0xf19   :  { %7416 = vmatprep.mubr.msk.f32.mxu1 %vm7519_vm3, %v7518_v2  ;;  %7402 = vmatpush3.msra.mxu0 %v5062_v50 }
 0xf1a   :  { %7411 = vmatpush3.msra.mxu1 %v5062_v50  ;;  %7403 = vmatprep.subr.mxu0 %v7518_v2  ;;  %v9613_v45 = vmax.f32 %v4875_v52, 0.0 }
 0xf1b   :  { %7412 = vmatprep.subr.mxu1 %v7518_v2  ;;  %7404 = vmatpush3.msra.mxu0 %v5061_v0 }
 0xf1c   :  { %7413 = vmatpush3.msra.mxu1 %v5061_v0  ;;  %7405 = vmatprep.subr.mxu0 %v7518_v2  ;;  %v5035_v54 = vmul.f32 %v9613_v45, %v9613_v45  ;;  %v5028_v55 = vsel %vm5027_vm14, %v9613_v45, 0.0 }
 0xf1d   :  { %7414 = vmatprep.subr.mxu1 %v7518_v2  ;;  %7406 = vmatpush3.msra.mxu0 %v5060_v51  ;;  %v5029_v57 = vrot.slane %v5028_v55, 4 }
 0xf1e   :  { %7415 = vmatpush3.msra.mxu1 %v5060_v51  ;;  %7419 = vmatprep.subr.mxu0 %v7518_v2  ;;  %v5036_v56 = vsel %vm5027_vm14, %v5035_v54, 0.0  ;;  %v5374_v54 = vld [vmem:[%s9744_s23] sm:$0x1] }
 0xf1f   :  { %7424 = vmatprep.subr.mxu1 %v7518_v2  ;;  %v5037_v58 = vrot.slane %v5036_v56, 4  ;;  %v5030_v7 = vadd.f32 %v5029_v57, %v5028_v55  ;;  %v6225_v55 = vld [vmem:[%s9744_s23 + $0x1] sm:$0x1] }
 0xf20   :  { %v6230_v57 = vld [vmem:[%s9745_s24 + $0x20] sm:$0xff] }
 0xf21   :  { %v5038_v13 = vadd.f32 %v5037_v58, %v5036_v56  ;;  %v5031_v17 = vrot.slane %v5030_v7, 2  ;;  %v5530_v56 = vld [vmem:[%s9745_s24 + $0x8] sm:$0xff]  ;;  %v5529_v58 = vld [vmem:[%s9745_s24] sm:$0xff] }
 0xf23   :  { %v5039_v23 = vrot.slane %v5038_v13, 2  ;;  %v5032_v29 = vadd.f32 %v5031_v17, %v5030_v7 }
 0xf25   :  { %v5040_v37 = vadd.f32 %v5039_v23, %v5038_v13  ;;  %v5033_v40 = vrot.slane %v5032_v29, 1  ;;  %v6235_v13 = vld [vmem:[%s9744_s23 + $0x1] sm:$0x1] }
 0xf27   :  { %v5041_v53 = vrot.slane %v5040_v37, 1  ;;  %v5034_v47 = vadd.f32 %v5033_v40, %v5032_v29 }
 0xf29   :  { %v5042_v41 = vadd.f32 %v5041_v53, %v5040_v37 }
 0xfd7   :  { %v4948_v59 = vpop.f32.mrf.mxu0 }
 0xfd8   :  { %v5021_v63 = vpop.f32.mrf.mxu1 }
 0xfd9   :  { %v5022_v3 = vadd.f32 %v5021_v63, %v4948_v59  ;;  %v7389_v60 = vpop.f32.mrf.mxu0  ;;  %v6229_v59 = vld [vmem:[%s9745_s24 + $0x18] sm:$0xff] }
 0xfda   :  { %v7400_v9 = vpop.f32.mrf.mxu1 }
 0xfdb   :  { %v5025_v11 = vadd.f32 %v6216_v42, %v5022_v3 }
 0xfdd   :  { %v9620_v15 = vmax.f32 %v5025_v11, 0.0  ;;  %v5684_v11 = vld [vmem:[%s9744_s23] sm:$0x1]  ;;  %s7520_s23 = smov [#allocation5]  }
 0xfde   :  { %s5993_s8 = sshll.u32 %s7520_s23, 4  ;;  %s5994_s8 = int_to_ptr.vmem [resolvable:$true] %s5993_s8 }
 0xfdf   :  { %v5043_v19 = vsel %vm5027_vm14, %v9620_v15, 0.0  ;;  %v5051_v21 = vmul.f32 %v9620_v15, %v9620_v15  ;;  %s7496_s3 = scalar_lea.vmem %s5994_s8, 32  ;;  %p7501_p1 = scmp.lt.s32.totalorder %s5994_s8, %s5994_s8 }
 0xfe0   :  { %v5044_v25 = vrot.slane %v5043_v19, 4  ;;  %p7497_p0 = scmp.ne.s32.totalorder %s5994_s8, %s7496_s3  ;;  %p7502_p2 = scmp.lt.s32.totalorder %s7496_s3, %s7496_s3 }
 0xfe1   :  { %v5052_v27 = vsel %vm5027_vm14, %v5051_v21, 0.0 }
 0xfe2   :  { %v5045_v31 = vadd.f32 %v5044_v25, %v5043_v19  ;;  %v5053_v34 = vrot.slane %v5052_v27, 4  ;;  %p7503_p3 = por %p7502_p2, %p7501_p1 }
 0xfe4   :  { %v5046_v38 = vrot.slane %v5045_v31, 2  ;;  %v5054_v39 = vadd.f32 %v5053_v34, %v5052_v27  ;;  %p7504_p4 = pnand %p7503_p3, %p7497_p0 }
 0xfe6   :  { %v5047_v44 = vadd.f32 %v5046_v38, %v5045_v31  ;;  %v5055_v35 = vrot.slane %v5054_v39, 2 }
 0xfe8   :  { %v5048_v46 = vrot.slane %v5047_v44, 1  ;;  %v5056_v30 = vadd.f32 %v5055_v35, %v5054_v39 }
 0xfea   :  { %v5049_v48 = vadd.f32 %v5048_v46, %v5047_v44  ;;  %v5057_v33 = vrot.slane %v5056_v30, 1 }
 0xfec   :  { %v5050_v61 = vadd.f32 %v5049_v48, %v5034_v47  ;;  %v5058_v5 = vadd.f32 %v5057_v33, %v5056_v30 }
 0xfee   :  { %7408 = vmatmul.mubr.msk.f32.vlgmr.msra.gmra.mxu0 %vm5063_vm15, %v5050_v61  ;;  %v5059_v1 = vadd.f32 %v5058_v5, %v5042_v41 }
 0xfef   :  { %7421 = vmatprep.mubr.msk.f32.mxu0 %vm7519_vm3, %v7518_v2  ;;  %7420 = vmatpush3.msra.mxu0 %v5217_v4 }
 0xff0   :  { %7417 = vmatmul.mubr.msk.f32.vlgmr.msra.gmra.mxu1 %vm5063_vm15, %v5059_v1  ;;  %7429 = vmatprep.subr.mxu0 %v7518_v2 }
 0xff1   :  { %7426 = vmatprep.mubr.msk.f32.mxu1 %vm7519_vm3, %v7518_v2  ;;  %7425 = vmatpush3.msra.mxu1 %v5217_v4 }
 0xff2   :  { %7434 = vmatprep.subr.mxu1 %v7518_v2 }
0x10ae   :  { %v5133_v6 = vpop.f32.mrf.mxu0 }
0x10af   :  { %v5137_v8 = vmul.f32 0.055555556, %v5133_v6 }
0x10b0   :  { %v7409_v10 = vpop.f32.mrf.mxu0  ;;  %v5207_v12 = vpop.f32.mrf.mxu1 }
0x10b1   :  { %v5212_v14 = vmul.f32 %v5137_v8, %v5137_v8  ;;  %v5211_v18 = vmul.f32 0.055555556, %v5207_v12  ;;  %7422 = vmatmul.mubr.msk.f32.vlgmr.msra.gmra.mxu0 %vm926_vm4, %v5137_v8 }
0x10b2   :  { %v7418_v20 = vpop.f32.mrf.mxu1  ;;  %7431 = vmatprep.mubr.msk.f32.mxu0 %vm7519_vm3, %v7518_v2 }
0x10b3   :  { %v5213_v22 = vsub.f32 %v5211_v18, %v5212_v14 }
0x10b5   :  { %v5214_v24 = vmax.f32 %v5213_v22, 0.0 }
0x10b7   :  { %v5215_v26 = vadd.f32 1e-05, %v5214_v24 }
0x10b9   :  { %7494 = vrsqrt.f32 %v5215_v26 }
0x10c6   :  { %v7495_v28 = vpop.eup %7494 }
0x10c7   :  { %7427 = vmatmul.mubr.msk.f32.vlgmr.msra.gmra.mxu1 %vm926_vm4, %v7495_v28 }
0x10c8   :  { %7436 = vmatprep.mubr.msk.f32.mxu1 %vm7519_vm3, %v7518_v2 }
0x1171   :  { %v5287_v43 = vpop.f32.mrf.mxu0 }
0x1172   :  { %v5367_v36 = vrot.slane %v5287_v43, %v8405_v16 }
0x1173   :  { %v7423_v32 = vpop.f32.mrf.mxu0 }
0x1174   :  { %v5368_v62 = vsub.f32 %v9613_v45, %v5367_v36  ;;  %v5682_v50 = vsub.f32 %v9620_v15, %v5367_v36  ;;  %v6231_v45 = vld [vmem:[%s9745_s24 + $0x28] sm:$0xff] }
0x1187   :  { %v5360_v49 = vpop.f32.mrf.mxu1 }
0x1188   :  { %v5372_v0 = vrot.slane %v5360_v49, %v8405_v16  ;;  %v5531_v16 = vld [vmem:[%s9745_s24 + $0x10] sm:$0xff] }
0x1189   :  { %v7428_v51 = vpop.f32.mrf.mxu1 }
0x118a   :  { %v5373_v42 = vmul.f32 %v5372_v0, %v5368_v62  ;;  %v5683_v52 = vmul.f32 %v5682_v50, %v5372_v0 }
0x118c   :  { %7430 = vmatpush3.msk.msra.mxu0 %vm5379_vm0, %v5373_v42  ;;  %7435 = vmatpush3.msk.msra.mxu1 %vm5379_vm0, %v5373_v42 }
0x118d   :  { %7432 = vmatmul.mubr.msk.f32.vlgmr.msra.gmra.mxu0 %vm5375_vm1, %v5374_v54  ;;  %7437 = vmatmul.mubr.msk.f32.vlgmr.msra.gmra.mxu1 %vm5375_vm1, %v6225_v55 }
0x118e   :  { %7439 = vmatprep.subr.mxu0 %v7518_v2  ;;  %7448 = vmatprep.subr.mxu1 %v7518_v2 }
0x118f   :  { %7440 = vmatpush3.msra.mxu0 %v5531_v16  ;;  %7449 = vmatpush3.msra.mxu1 %v6231_v45 }
0x1190   :  { %7441 = vmatprep.subr.mxu0 %v7518_v2  ;;  %7450 = vmatprep.subr.mxu1 %v7518_v2 }
0x1191   :  { %7442 = vmatpush3.msra.mxu0 %v5530_v56  ;;  %7451 = vmatpush3.msra.mxu1 %v6230_v57 }
0x1192   :  { %7443 = vmatprep.subr.mxu0 %v7518_v2  ;;  %7452 = vmatprep.subr.mxu1 %v7518_v2 }
0x1193   :  { %7445 = vmatprep.mubr.msk.f32.mxu0 %vm7519_vm3, %v7518_v2  ;;  %7454 = vmatprep.mubr.msk.f32.mxu1 %vm7519_vm3, %v7518_v2 }
0x1194   :  { %7444 = vmatpush3.msra.mxu0 %v5529_v58  ;;  %7453 = vmatpush3.msra.mxu1 %v6229_v59 }
0x1195   :  { %7457 = vmatprep.subr.mxu0 %v7518_v2  ;;  %7462 = vmatprep.subr.mxu1 %v7518_v2 }
0x124d   :  { %v5449_v63 = vpop.f32.mrf.mxu0  ;;  %v5524_v3 = vpop.f32.mrf.mxu1 }
0x124e   :  { %v5528_v7 = vmax.f32 %v5449_v63, %v5524_v3 }
0x124f   :  { %v7433_v60 = vpop.f32.mrf.mxu0  ;;  %v7438_v9 = vpop.f32.mrf.mxu1 }
0x1250   :  { %7446 = vmatmul.mubr.msk.f32.vlgmr.msra.gmra.mxu0 %vm5063_vm15, %v5528_v7  ;;  %7455 = vmatmul.mubr.msk.f32.vlgmr.msra.gmra.mxu1 %vm5063_vm15, %v5528_v7 }
0x1251   :  { %7458 = vmatpush3.msk.msra.mxu0 %vm5379_vm0, %v5683_v52  ;;  %7463 = vmatpush3.msk.msra.mxu1 %vm5379_vm0, %v5683_v52 }
0x1252   :  { %7459 = vmatprep.mubr.msk.f32.mxu0 %vm7519_vm3, %v7518_v2  ;;  %7464 = vmatprep.mubr.msk.f32.mxu1 %vm7519_vm3, %v7518_v2 }
0x1253   :  { %7467 = vmatprep.subr.mxu0 %v7518_v2  ;;  %7476 = vmatprep.subr.mxu1 %v7518_v2 }
0x1254   :  { %7460 = vmatmul.mubr.msk.f32.vlgmr.msra.gmra.mxu0 %vm5375_vm1, %v5684_v11  ;;  %7465 = vmatmul.mubr.msk.f32.vlgmr.msra.gmra.mxu1 %vm5375_vm1, %v6235_v13 }
0x1255   :  { %7468 = vmatpush3.msra.mxu0 %v5531_v16  ;;  %7477 = vmatpush3.msra.mxu1 %v6231_v45 }
0x1256   :  { %7469 = vmatprep.subr.mxu0 %v7518_v2  ;;  %7478 = vmatprep.subr.mxu1 %v7518_v2 }
0x1257   :  { %7470 = vmatpush3.msra.mxu0 %v5530_v56  ;;  %7479 = vmatpush3.msra.mxu1 %v6230_v57 }
0x1258   :  { %7471 = vmatprep.subr.mxu0 %v7518_v2  ;;  %7480 = vmatprep.subr.mxu1 %v7518_v2 }
0x1259   :  { %7472 = vmatpush3.msra.mxu0 %v5529_v58  ;;  %7473 = vmatprep.mubr.msk.f32.mxu0 %vm7519_vm3, %v7518_v2 }
0x125a   :  { %7481 = vmatpush3.msra.mxu1 %v6229_v59  ;;  %7482 = vmatprep.mubr.msk.f32.mxu1 %vm7519_vm3, %v7518_v2 }
0x1310   :  { %v5601_v15 = vpop.f32.mrf.mxu0  ;;  %v5675_v17 = vpop.f32.mrf.mxu1 }
0x1311   :  { %v5679_v19 = vmax.f32 %v5601_v15, %v5675_v17 }
0x1312   :  { %v7447_v21 = vpop.f32.mrf.mxu0  ;;  %v7456_v23 = vpop.f32.mrf.mxu1 }
0x1313   :  { %5681 = vst.msk [vmem:[#allocation5] sm:$0x1] %vm5680_vm2, %v5679_v19 }
0x1314   :  { %v5757_v25 = vpop.f32.mrf.mxu0  ;;  %v5831_v27 = vpop.f32.mrf.mxu1 }
0x1315   :  { %v5835_v29 = vmax.f32 %v5757_v25, %v5831_v27 }
0x1316   :  { %v7461_v31 = vpop.f32.mrf.mxu0  ;;  %v7466_v34 = vpop.f32.mrf.mxu1 }
0x1317   :  { %7474 = vmatmul.mubr.msk.f32.vlgmr.msra.gmra.mxu0 %vm5063_vm15, %v5835_v29  ;;  %7483 = vmatmul.mubr.msk.f32.vlgmr.msra.gmra.mxu1 %vm5063_vm15, %v5835_v29 }
0x13d7   :  { %v5908_v2 = vpop.f32.mrf.mxu0  ;;  %v5981_v37 = vpop.f32.mrf.mxu1 }
0x13d8   :  { %v5985_v38 = vmax.f32 %v5908_v2, %v5981_v37 }
0x13d9   :  { %v7475_v39 = vpop.f32.mrf.mxu0  ;;  %v7484_v40 = vpop.f32.mrf.mxu1 }
0x13da   :  { %5986 = vst.msk [vmem:[#allocation5 + $0x1] sm:$0x1] %vm5680_vm2, %v5985_v38 }
0x13db   :  { %7507 = shalt.err (!%p7504_p4)
}
0x13dc   :  { %5996 = dma.vmem_to_hbm [thread:$0]  %s5994_s8, 32, %s9746_s25, [#allocation6]  }
0x13dd   :  { %7516 = dma.done.wait [#allocation6], 32  }
0x13de   :  { %7517 = vsyncadd [#allocation6], 4294967264 }
0x13df   :  { %6000 = vsyncpa [#allocation6], 1 }

</bundles_post_ra>
